<compile_context>
chip_gen: v6e
topology: v6e:2x2x1
jax: 0.10.0
libtpu: 0.0.40
codegen_flags: <defaults>
</compile_context>

<pallas_src>
import functools

import jax
import jax.numpy as jnp
from jax import lax
from jax.experimental import pallas as pl
from jax.experimental.pallas import tpu as pltpu

LEAKINESS = 0.0       # reference GNNModel never passes leakiness=0.1 down; default 0.0
BN_EPS = 1e-5
VMEM_SPEC = pl.BlockSpec(memory_space=pltpu.MemorySpace.VMEM)

# trans-A contraction (contract dim 0 of both operands): (N,E) x (N,F) -> (E,F)
_TN_DIMS = (((0,), (0,)), ((), ()))


# ----------------------------------------------------------------------------
# Fused Pallas kernel: entire GNN forward in one program
# ----------------------------------------------------------------------------
def _gnn_fused_kernel(*refs, n_nodes, n_edges, n_graphs, edge_out, leakiness):
    it = iter(refs)
    x_ref = next(it)       # (N, node_in)  f32
    e_ref = next(it)       # (E, edge_in)  f32
    row_ref = next(it)     # (1, E) int32  : source node of each edge (lane-dense)
    col_ref = next(it)     # (1, E) int32  : dest node of each edge   (lane-dense)
    batch_ref = next(it)   # (1, N) int32  : graph id of each node    (lane-dense)

    def read_mlp(n_pieces):
        # first layer split into n_pieces blocks: (gamma_i, beta_i, W1_i), then c1,
        # then full layer-2 and layer-3 params.
        first = [(next(it)[...], next(it)[...], next(it)[...])
                 for _ in range(n_pieces)]
        c1 = next(it)[...]
        l2 = tuple(next(it)[...] for _ in range(4))
        l3 = tuple(next(it)[...] for _ in range(4))
        return first, c1, l2, l3

    edge_p = read_mlp(3)    # pieces: src | dst | edge_attr
    node1_p = read_mlp(2)   # pieces: x[row] | e'
    node2_p = read_mlp(2)   # pieces: x | agg
    glob_p = read_mlp(1)    # pieces: pooled nodes
    pred_w = next(it)[...]
    pred_b = next(it)[...]
    o_ref = next(it)        # (G, outdim) output

    f32 = jnp.float32
    bf16 = jnp.bfloat16

    def leaky(h):
        return jnp.maximum(h, leakiness * h)

    def bn(h, g, b):
        # training-mode BatchNorm1d: centered two-pass biased variance (f32 VPU).
        mu = jnp.mean(h, axis=0, keepdims=True)
        d = h - mu
        var = jnp.mean(d * d, axis=0, keepdims=True)
        return d * (g * lax.rsqrt(var + BN_EPS)) + b

    def mlp_tail(h, l2, l3):
        # LReLU -> BN -> Linear -> LReLU -> BN -> Linear (layers 2/3 of each MLP3)
        g2, b2, w2, c2 = l2
        g3, b3, w3, c3 = l3
        h = leaky(h)
        h = jnp.dot(bn(h, g2, b2), w2, preferred_element_type=f32) + c2
        h = leaky(h)
        return jnp.dot(bn(h, g3, b3), w3, preferred_element_type=f32) + c3

    xv = x_ref[...]
    ev = e_ref[...]

    # -- lane-dense one-hot incidence matrices, stored bf16 (exact 0/1) -------
    node_iota = lax.broadcasted_iota(jnp.int32, (n_nodes, n_edges), 0)
    oh_src_t = (node_iota == row_ref[...]).astype(bf16)      # (N, E): [n,e]=row[e]==n
    oh_dst_t = (node_iota == col_ref[...]).astype(bf16)      # (N, E): [n,e]=col[e]==n
    graph_iota = lax.broadcasted_iota(jnp.int32, (n_graphs, n_nodes), 0)
    oh_batch = (graph_iota == batch_ref[...]).astype(bf16)   # (G, N)

    # per-node / per-graph occurrence counts (exact: f32 MXU accumulation of 0/1)
    ones_e = jnp.ones((n_edges, 1), bf16)
    ones_n = jnp.ones((n_nodes, 1), bf16)
    cnt_src = jnp.dot(oh_src_t, ones_e, preferred_element_type=f32)   # (N, 1)
    cnt_dst = jnp.dot(oh_dst_t, ones_e, preferred_element_type=f32)   # (N, 1)
    cnt_gra = jnp.dot(oh_batch, ones_n, preferred_element_type=f32)   # (G, 1)

    inv_e = 1.0 / n_edges

    def fold_gathered_piece(cnt, g, b, w):
        # BN1 over the E gathered rows of x (stats derived from per-node counts)
        # + that piece's W1 block, both applied in NODE space; the gather then
        # emits the full 64-wide layer-1 contribution directly.
        mu = jnp.sum(cnt * xv, axis=0, keepdims=True) * inv_e
        d = xv - mu
        var = jnp.sum(cnt * (d * d), axis=0, keepdims=True) * inv_e
        x_aff = d * (g * lax.rsqrt(var + BN_EPS)) + b
        return jnp.dot(x_aff, w, preferred_element_type=f32)          # (N, fout)

    e_first, e_c1, e_l2, e_l3 = edge_p
    n1_first, n1_c1, n1_l2, n1_l3 = node1_p

    proj_src_edge = fold_gathered_piece(cnt_src, *e_first[0])    # (N, edge_out)
    proj_dst_edge = fold_gathered_piece(cnt_dst, *e_first[1])    # (N, edge_out)
    proj_src_node = fold_gathered_piece(cnt_src, *n1_first[0])   # (N, node_out)

    # Shared-LHS gather: both oh_src consumers in one 128-lane matmul.
    proj_src_cat = jnp.concatenate([proj_src_edge, proj_src_node], axis=1)
    gat_src = lax.dot_general(oh_src_t, proj_src_cat.astype(bf16), _TN_DIMS,
                              preferred_element_type=f32)        # (E, eo+no)
    gat_dst = lax.dot_general(oh_dst_t, proj_dst_edge.astype(bf16), _TN_DIMS,
                              preferred_element_type=f32)        # (E, edge_out)
    src_edge_h = gat_src[:, :edge_out]
    src_node_h = gat_src[:, edge_out:]

    # -- EdgeModel ------------------------------------------------------------
    ge, be, we = e_first[2]
    h = (e_c1 + src_edge_h + gat_dst
         + jnp.dot(bn(ev, ge, be), we, preferred_element_type=f32))
    e_out = mlp_tail(h, e_l2, e_l3)                              # (E, edge_out)

    # -- NodeModel stage 1 ------------------------------------------------------
    gep, bep, wep = n1_first[1]
    h = (n1_c1 + src_node_h
         + jnp.dot(bn(e_out, gep, bep), wep, preferred_element_type=f32))
    h = mlp_tail(h, n1_l2, n1_l3)                                # (E, node_out)

    # scatter-mean onto destination nodes: reuse oh_dst_t (natural matmul),
    # exact divide by the exact in-degree counts.
    agg_sum = jnp.dot(oh_dst_t, h.astype(bf16), preferred_element_type=f32)
    agg = agg_sum / jnp.maximum(cnt_dst, 1.0)                    # (N, node_out)

    # -- NodeModel stage 2 (standard BN over the N node rows) ------------------
    n2_first, n2_c1, n2_l2, n2_l3 = node2_p
    (gx, bx, wx), (ga, ba, wa) = n2_first
    h = (n2_c1
         + jnp.dot(bn(xv, gx, bx), wx, preferred_element_type=f32)
         + jnp.dot(bn(agg, ga, ba), wa, preferred_element_type=f32))
    x_new = mlp_tail(h, n2_l2, n2_l3)                            # (N, node_out)

    # -- GlobalModel ------------------------------------------------------------
    u_sum = jnp.dot(oh_batch, x_new.astype(bf16), preferred_element_type=f32)
    u_in = u_sum / jnp.maximum(cnt_gra, 1.0)                     # (G, node_out)

    g_first, g_c1, g_l2, g_l3 = glob_p
    gg, bg, wg = g_first[0]
    h = g_c1 + jnp.dot(bn(u_in, gg, bg), wg, preferred_element_type=f32)
    u = mlp_tail(h, g_l2, g_l3)                                  # (G, node_out)

    # -- global_predictor: Linear + Softmax(dim=1) ------------------------------
    logits = jnp.dot(u, pred_w, preferred_element_type=f32) + pred_b
    m = jnp.max(logits, axis=1, keepdims=True)
    ex = jnp.exp(logits - m)
    o_ref[...] = ex / jnp.sum(ex, axis=1, keepdims=True)


# ----------------------------------------------------------------------------
# Wrapper: single pallas_call for the whole forward
# ----------------------------------------------------------------------------
def gnn_forward(params, x, edge_index, edge_attr, batch, num_graphs):
    n_nodes, node_in = x.shape
    n_edges, edge_in = edge_attr.shape
    node_out, outdim = params["pred_w"].shape
    edge_out = params["edge_mlp"][2].shape[1]

    row = edge_index[0].astype(jnp.int32).reshape(1, n_edges)
    col = edge_index[1].astype(jnp.int32).reshape(1, n_edges)
    bat = batch.astype(jnp.int32).reshape(1, n_nodes)

    flat = [x, edge_attr, row, col, bat]
    flat += list(params["edge_mlp"])
    flat += list(params["node_mlp_1"])
    flat += list(params["node_mlp_2"])
    flat += list(params["global_mlp"])
    flat += [params["pred_w"], params["pred_b"]]

    # --- cost hint -----------------------------------------------------------
    def mlp3_flops(rows, fin, fout):
        return 2 * rows * fout * (fin + 2 * fout)

    flops = (2 * n_edges * n_nodes * (2 * edge_out + node_out)          # gathers
             + 2 * n_nodes * n_edges * node_out                         # scatter->N
             + 2 * num_graphs * n_nodes * node_out                      # pool->G
             + mlp3_flops(n_edges, 2 * node_in + edge_in, edge_out)     # edge MLP
             + mlp3_flops(n_edges, node_in + edge_out, node_out)        # node MLP 1
             + mlp3_flops(n_nodes, node_in + node_out, node_out)        # node MLP 2
             + mlp3_flops(num_graphs, node_out, node_out)               # global MLP
             + 2 * num_graphs * node_out * outdim)                      # predictor
    bytes_accessed = (sum(int(a.size) * a.dtype.itemsize for a in flat)
                      + num_graphs * outdim * 4)
    transcendentals = 15 * max(node_out, edge_out) + num_graphs * outdim

    # --- explicit VMEM budget sized from the resident set ---------------------
    onehot_bytes = 2 * n_edges * n_nodes * 2 + num_graphs * n_nodes * 2       # bf16
    inter_bytes = 4 * (n_edges * (3 * edge_out + 6 * node_out)                # f32 E-rows
                       + n_nodes * (8 * node_out + 4 * node_in)               # f32 N-rows
                       + num_graphs * 4 * node_out)
    param_bytes = sum(int(a.size) * a.dtype.itemsize for a in flat)
    resident = onehot_bytes + inter_bytes + param_bytes
    try:
        phys_vmem = pltpu.get_tpu_info().vmem_capacity_bytes
    except Exception:
        phys_vmem = 64 << 20          # conservative v7x per-TensorCore floor
    vmem_limit = int(min(phys_vmem - (4 << 20), max(32 << 20, 2 * resident)))
    # TODO(synk): if `resident` approaches the budget (large E*N, esp. on v7x),
    # switch to the edge-tiled grid variant instead of just raising the limit.

    kernel = functools.partial(
        _gnn_fused_kernel,
        n_nodes=n_nodes, n_edges=n_edges, n_graphs=num_graphs,
        edge_out=edge_out, leakiness=LEAKINESS)

    return pl.pallas_call(
        kernel,
        out_shape=jax.ShapeDtypeStruct((num_graphs, outdim), jnp.float32),
        in_specs=[VMEM_SPEC] * len(flat),
        out_specs=VMEM_SPEC,
        compiler_params=pltpu.CompilerParams(vmem_limit_bytes=vmem_limit),
        cost_estimate=pl.CostEstimate(flops=flops,
                                      transcendentals=transcendentals,
                                      bytes_accessed=bytes_accessed),
    )(*flat)


# ----------------------------------------------------------------------------
# Parameter initialization (deterministic, in-script), first layer pre-split
# ----------------------------------------------------------------------------
def init_linear(key, fin, fout):
    k1, k2 = jax.random.split(key)
    bound = 1.0 / (fin ** 0.5)
    w = jax.random.uniform(k1, (fin, fout), jnp.float32, -bound, bound)
    b = jax.random.uniform(k2, (1, fout), jnp.float32, -bound, bound)
    return w, b


def init_mlp3(key, fins, fout):
    """Params for BN(sum(fins)) -> Lin -> LReLU -> BN -> Lin -> LReLU -> BN -> Lin,
    with BN1 gamma/beta and W1 pre-split row-wise into len(fins) pieces so the
    kernel never has to concatenate its inputs."""
    fin = sum(fins)
    k1, k2, k3 = jax.random.split(key, 3)
    w1, c1 = init_linear(k1, fin, fout)
    w2, c2 = init_linear(k2, fout, fout)
    w3, c3 = init_linear(k3, fout, fout)
    pieces = []
    off = 0
    for s in fins:
        pieces += [jnp.ones((1, s), jnp.float32),    # BN1 gamma slice
                   jnp.zeros((1, s), jnp.float32),   # BN1 beta slice
                   w1[off:off + s, :]]               # W1 row block
        off += s
    ones = lambda f: jnp.ones((1, f), jnp.float32)
    zeros = lambda f: jnp.zeros((1, f), jnp.float32)
    return tuple(pieces) + (c1,
                            ones(fout), zeros(fout), w2, c2,
                            ones(fout), zeros(fout), w3, c3)


def init_gnn_params(key, node_in=9, edge_in=12, node_out=64, edge_out=64, outdim=6):
    k1, k2, k3, k4, k5 = jax.random.split(key, 5)
    pred_w, pred_b = init_linear(k5, node_out, outdim)
    return {
        "edge_mlp":   init_mlp3(k1, (node_in, node_in, edge_in), edge_out),
        "node_mlp_1": init_mlp3(k2, (node_in, edge_out), node_out),
        "node_mlp_2": init_mlp3(k3, (node_in, node_out), node_out),
        "global_mlp": init_mlp3(k4, (node_out,), node_out),
        "pred_w": pred_w,
        "pred_b": pred_b,
    }


# ----------------------------------------------------------------------------
if __name__ == "__main__":
    NODE_IN, EDGE_IN, NODE_OUT, EDGE_OUT, OUTDIM = 9, 12, 64, 64, 6
    N_NODES, N_EDGES, N_GRAPHS = 16, 24, 2

    key = jax.random.PRNGKey(0)
    kp, kx, ke, kr, kc = jax.random.split(key, 5)

    params = init_gnn_params(kp, NODE_IN, EDGE_IN, NODE_OUT, EDGE_OUT, OUTDIM)

    x = jax.random.normal(kx, (N_NODES, NODE_IN), jnp.float32)          # data.x
    edge_attr = jax.random.normal(ke, (N_EDGES, EDGE_IN), jnp.float32)  # data.edge_attr
    row = jax.random.randint(kr, (N_EDGES,), 0, N_NODES, jnp.int32)
    col = jax.random.randint(kc, (N_EDGES,), 0, N_NODES, jnp.int32)
    edge_index = jnp.stack([row, col], axis=0)                          # data.edge_index
    batch = jnp.concatenate([
        jnp.zeros((N_NODES // 2,), jnp.int32),
        jnp.ones((N_NODES - N_NODES // 2,), jnp.int32),
    ])                                                                  # batch vector

    fwd = jax.jit(functools.partial(gnn_forward, num_graphs=N_GRAPHS))
    u_pred = jax.block_until_ready(fwd(params, x, edge_index, edge_attr, batch))

    assert u_pred.shape == (N_GRAPHS, OUTDIM)
    assert bool(jnp.all(jnp.isfinite(u_pred)))
    # softmax rows sum to 1
    assert bool(jnp.allclose(jnp.sum(u_pred, axis=1), 1.0, atol=1e-4))
    print("KERNEL_OK")
</pallas_src>

<mosaic_0001>
module attributes {stable_mosaic.version = 11 : i64} {
  func.func @_gnn_fused_kernel(%arg0: memref<16x9xf32, #tpu.memory_space<vmem>>, %arg1: memref<24x12xf32, #tpu.memory_space<vmem>>, %arg2: memref<1x24xi32, #tpu.memory_space<vmem>>, %arg3: memref<1x24xi32, #tpu.memory_space<vmem>>, %arg4: memref<1x16xi32, #tpu.memory_space<vmem>>, %arg5: memref<1x9xf32, #tpu.memory_space<vmem>>, %arg6: memref<1x9xf32, #tpu.memory_space<vmem>>, %arg7: memref<9x64xf32, #tpu.memory_space<vmem>>, %arg8: memref<1x9xf32, #tpu.memory_space<vmem>>, %arg9: memref<1x9xf32, #tpu.memory_space<vmem>>, %arg10: memref<9x64xf32, #tpu.memory_space<vmem>>, %arg11: memref<1x12xf32, #tpu.memory_space<vmem>>, %arg12: memref<1x12xf32, #tpu.memory_space<vmem>>, %arg13: memref<12x64xf32, #tpu.memory_space<vmem>>, %arg14: memref<1x64xf32, #tpu.memory_space<vmem>>, %arg15: memref<1x64xf32, #tpu.memory_space<vmem>>, %arg16: memref<1x64xf32, #tpu.memory_space<vmem>>, %arg17: memref<64x64xf32, #tpu.memory_space<vmem>>, %arg18: memref<1x64xf32, #tpu.memory_space<vmem>>, %arg19: memref<1x64xf32, #tpu.memory_space<vmem>>, %arg20: memref<1x64xf32, #tpu.memory_space<vmem>>, %arg21: memref<64x64xf32, #tpu.memory_space<vmem>>, %arg22: memref<1x64xf32, #tpu.memory_space<vmem>>, %arg23: memref<1x9xf32, #tpu.memory_space<vmem>>, %arg24: memref<1x9xf32, #tpu.memory_space<vmem>>, %arg25: memref<9x64xf32, #tpu.memory_space<vmem>>, %arg26: memref<1x64xf32, #tpu.memory_space<vmem>>, %arg27: memref<1x64xf32, #tpu.memory_space<vmem>>, %arg28: memref<64x64xf32, #tpu.memory_space<vmem>>, %arg29: memref<1x64xf32, #tpu.memory_space<vmem>>, %arg30: memref<1x64xf32, #tpu.memory_space<vmem>>, %arg31: memref<1x64xf32, #tpu.memory_space<vmem>>, %arg32: memref<64x64xf32, #tpu.memory_space<vmem>>, %arg33: memref<1x64xf32, #tpu.memory_space<vmem>>, %arg34: memref<1x64xf32, #tpu.memory_space<vmem>>, %arg35: memref<1x64xf32, #tpu.memory_space<vmem>>, %arg36: memref<64x64xf32, #tpu.memory_space<vmem>>, %arg37: memref<1x64xf32, #tpu.memory_space<vmem>>, %arg38: memref<1x9xf32, #tpu.memory_space<vmem>>, %arg39: memref<1x9xf32, #tpu.memory_space<vmem>>, %arg40: memref<9x64xf32, #tpu.memory_space<vmem>>, %arg41: memref<1x64xf32, #tpu.memory_space<vmem>>, %arg42: memref<1x64xf32, #tpu.memory_space<vmem>>, %arg43: memref<64x64xf32, #tpu.memory_space<vmem>>, %arg44: memref<1x64xf32, #tpu.memory_space<vmem>>, %arg45: memref<1x64xf32, #tpu.memory_space<vmem>>, %arg46: memref<1x64xf32, #tpu.memory_space<vmem>>, %arg47: memref<64x64xf32, #tpu.memory_space<vmem>>, %arg48: memref<1x64xf32, #tpu.memory_space<vmem>>, %arg49: memref<1x64xf32, #tpu.memory_space<vmem>>, %arg50: memref<1x64xf32, #tpu.memory_space<vmem>>, %arg51: memref<64x64xf32, #tpu.memory_space<vmem>>, %arg52: memref<1x64xf32, #tpu.memory_space<vmem>>, %arg53: memref<1x64xf32, #tpu.memory_space<vmem>>, %arg54: memref<1x64xf32, #tpu.memory_space<vmem>>, %arg55: memref<64x64xf32, #tpu.memory_space<vmem>>, %arg56: memref<1x64xf32, #tpu.memory_space<vmem>>, %arg57: memref<1x64xf32, #tpu.memory_space<vmem>>, %arg58: memref<1x64xf32, #tpu.memory_space<vmem>>, %arg59: memref<64x64xf32, #tpu.memory_space<vmem>>, %arg60: memref<1x64xf32, #tpu.memory_space<vmem>>, %arg61: memref<1x64xf32, #tpu.memory_space<vmem>>, %arg62: memref<1x64xf32, #tpu.memory_space<vmem>>, %arg63: memref<64x64xf32, #tpu.memory_space<vmem>>, %arg64: memref<1x64xf32, #tpu.memory_space<vmem>>, %arg65: memref<64x6xf32, #tpu.memory_space<vmem>>, %arg66: memref<1x6xf32, #tpu.memory_space<vmem>>, %arg67: memref<2x6xf32, #tpu.memory_space<vmem>>) attributes {dimension_semantics = [], scalar_prefetch = 0 : i64, scratch_operands = 0 : i64, tpu.core_type = #tpu.core_type<tc>} {
    %c0 = arith.constant 0 : index
    %c0_0 = arith.constant 0 : index
    %0 = vector.load %arg5[%c0, %c0_0] : memref<1x9xf32, #tpu.memory_space<vmem>>, vector<1x9xf32>
    %c0_1 = arith.constant 0 : index
    %c0_2 = arith.constant 0 : index
    %1 = vector.load %arg6[%c0_1, %c0_2] : memref<1x9xf32, #tpu.memory_space<vmem>>, vector<1x9xf32>
    %c0_3 = arith.constant 0 : index
    %c0_4 = arith.constant 0 : index
    %2 = vector.load %arg7[%c0_3, %c0_4] : memref<9x64xf32, #tpu.memory_space<vmem>>, vector<9x64xf32>
    %c0_5 = arith.constant 0 : index
    %c0_6 = arith.constant 0 : index
    %3 = vector.load %arg8[%c0_5, %c0_6] : memref<1x9xf32, #tpu.memory_space<vmem>>, vector<1x9xf32>
    %c0_7 = arith.constant 0 : index
    %c0_8 = arith.constant 0 : index
    %4 = vector.load %arg9[%c0_7, %c0_8] : memref<1x9xf32, #tpu.memory_space<vmem>>, vector<1x9xf32>
    %c0_9 = arith.constant 0 : index
    %c0_10 = arith.constant 0 : index
    %5 = vector.load %arg10[%c0_9, %c0_10] : memref<9x64xf32, #tpu.memory_space<vmem>>, vector<9x64xf32>
    %c0_11 = arith.constant 0 : index
    %c0_12 = arith.constant 0 : index
    %6 = vector.load %arg11[%c0_11, %c0_12] : memref<1x12xf32, #tpu.memory_space<vmem>>, vector<1x12xf32>
    %c0_13 = arith.constant 0 : index
    %c0_14 = arith.constant 0 : index
    %7 = vector.load %arg12[%c0_13, %c0_14] : memref<1x12xf32, #tpu.memory_space<vmem>>, vector<1x12xf32>
    %c0_15 = arith.constant 0 : index
    %c0_16 = arith.constant 0 : index
    %8 = vector.load %arg13[%c0_15, %c0_16] : memref<12x64xf32, #tpu.memory_space<vmem>>, vector<12x64xf32>
    %c0_17 = arith.constant 0 : index
    %c0_18 = arith.constant 0 : index
    %9 = vector.load %arg14[%c0_17, %c0_18] : memref<1x64xf32, #tpu.memory_space<vmem>>, vector<1x64xf32>
    %c0_19 = arith.constant 0 : index
    %c0_20 = arith.constant 0 : index
    %10 = vector.load %arg15[%c0_19, %c0_20] : memref<1x64xf32, #tpu.memory_space<vmem>>, vector<1x64xf32>
    %c0_21 = arith.constant 0 : index
    %c0_22 = arith.constant 0 : index
    %11 = vector.load %arg16[%c0_21, %c0_22] : memref<1x64xf32, #tpu.memory_space<vmem>>, vector<1x64xf32>
    %c0_23 = arith.constant 0 : index
    %c0_24 = arith.constant 0 : index
    %12 = vector.load %arg17[%c0_23, %c0_24] : memref<64x64xf32, #tpu.memory_space<vmem>>, vector<64x64xf32>
    %c0_25 = arith.constant 0 : index
    %c0_26 = arith.constant 0 : index
    %13 = vector.load %arg18[%c0_25, %c0_26] : memref<1x64xf32, #tpu.memory_space<vmem>>, vector<1x64xf32>
    %c0_27 = arith.constant 0 : index
    %c0_28 = arith.constant 0 : index
    %14 = vector.load %arg19[%c0_27, %c0_28] : memref<1x64xf32, #tpu.memory_space<vmem>>, vector<1x64xf32>
    %c0_29 = arith.constant 0 : index
    %c0_30 = arith.constant 0 : index
    %15 = vector.load %arg20[%c0_29, %c0_30] : memref<1x64xf32, #tpu.memory_space<vmem>>, vector<1x64xf32>
    %c0_31 = arith.constant 0 : index
    %c0_32 = arith.constant 0 : index
    %16 = vector.load %arg21[%c0_31, %c0_32] : memref<64x64xf32, #tpu.memory_space<vmem>>, vector<64x64xf32>
    %c0_33 = arith.constant 0 : index
    %c0_34 = arith.constant 0 : index
    %17 = vector.load %arg22[%c0_33, %c0_34] : memref<1x64xf32, #tpu.memory_space<vmem>>, vector<1x64xf32>
    %c0_35 = arith.constant 0 : index
    %c0_36 = arith.constant 0 : index
    %18 = vector.load %arg23[%c0_35, %c0_36] : memref<1x9xf32, #tpu.memory_space<vmem>>, vector<1x9xf32>
    %c0_37 = arith.constant 0 : index
    %c0_38 = arith.constant 0 : index
    %19 = vector.load %arg24[%c0_37, %c0_38] : memref<1x9xf32, #tpu.memory_space<vmem>>, vector<1x9xf32>
    %c0_39 = arith.constant 0 : index
    %c0_40 = arith.constant 0 : index
    %20 = vector.load %arg25[%c0_39, %c0_40] : memref<9x64xf32, #tpu.memory_space<vmem>>, vector<9x64xf32>
    %c0_41 = arith.constant 0 : index
    %c0_42 = arith.constant 0 : index
    %21 = vector.load %arg26[%c0_41, %c0_42] : memref<1x64xf32, #tpu.memory_space<vmem>>, vector<1x64xf32>
    %c0_43 = arith.constant 0 : index
    %c0_44 = arith.constant 0 : index
    %22 = vector.load %arg27[%c0_43, %c0_44] : memref<1x64xf32, #tpu.memory_space<vmem>>, vector<1x64xf32>
    %c0_45 = arith.constant 0 : index
    %c0_46 = arith.constant 0 : index
    %23 = vector.load %arg28[%c0_45, %c0_46] : memref<64x64xf32, #tpu.memory_space<vmem>>, vector<64x64xf32>
    %c0_47 = arith.constant 0 : index
    %c0_48 = arith.constant 0 : index
    %24 = vector.load %arg29[%c0_47, %c0_48] : memref<1x64xf32, #tpu.memory_space<vmem>>, vector<1x64xf32>
    %c0_49 = arith.constant 0 : index
    %c0_50 = arith.constant 0 : index
    %25 = vector.load %arg30[%c0_49, %c0_50] : memref<1x64xf32, #tpu.memory_space<vmem>>, vector<1x64xf32>
    %c0_51 = arith.constant 0 : index
    %c0_52 = arith.constant 0 : index
    %26 = vector.load %arg31[%c0_51, %c0_52] : memref<1x64xf32, #tpu.memory_space<vmem>>, vector<1x64xf32>
    %c0_53 = arith.constant 0 : index
    %c0_54 = arith.constant 0 : index
    %27 = vector.load %arg32[%c0_53, %c0_54] : memref<64x64xf32, #tpu.memory_space<vmem>>, vector<64x64xf32>
    %c0_55 = arith.constant 0 : index
    %c0_56 = arith.constant 0 : index
    %28 = vector.load %arg33[%c0_55, %c0_56] : memref<1x64xf32, #tpu.memory_space<vmem>>, vector<1x64xf32>
    %c0_57 = arith.constant 0 : index
    %c0_58 = arith.constant 0 : index
    %29 = vector.load %arg34[%c0_57, %c0_58] : memref<1x64xf32, #tpu.memory_space<vmem>>, vector<1x64xf32>
    %c0_59 = arith.constant 0 : index
    %c0_60 = arith.constant 0 : index
    %30 = vector.load %arg35[%c0_59, %c0_60] : memref<1x64xf32, #tpu.memory_space<vmem>>, vector<1x64xf32>
    %c0_61 = arith.constant 0 : index
    %c0_62 = arith.constant 0 : index
    %31 = vector.load %arg36[%c0_61, %c0_62] : memref<64x64xf32, #tpu.memory_space<vmem>>, vector<64x64xf32>
    %c0_63 = arith.constant 0 : index
    %c0_64 = arith.constant 0 : index
    %32 = vector.load %arg37[%c0_63, %c0_64] : memref<1x64xf32, #tpu.memory_space<vmem>>, vector<1x64xf32>
    %c0_65 = arith.constant 0 : index
    %c0_66 = arith.constant 0 : index
    %33 = vector.load %arg38[%c0_65, %c0_66] : memref<1x9xf32, #tpu.memory_space<vmem>>, vector<1x9xf32>
    %c0_67 = arith.constant 0 : index
    %c0_68 = arith.constant 0 : index
    %34 = vector.load %arg39[%c0_67, %c0_68] : memref<1x9xf32, #tpu.memory_space<vmem>>, vector<1x9xf32>
    %c0_69 = arith.constant 0 : index
    %c0_70 = arith.constant 0 : index
    %35 = vector.load %arg40[%c0_69, %c0_70] : memref<9x64xf32, #tpu.memory_space<vmem>>, vector<9x64xf32>
    %c0_71 = arith.constant 0 : index
    %c0_72 = arith.constant 0 : index
    %36 = vector.load %arg41[%c0_71, %c0_72] : memref<1x64xf32, #tpu.memory_space<vmem>>, vector<1x64xf32>
    %c0_73 = arith.constant 0 : index
    %c0_74 = arith.constant 0 : index
    %37 = vector.load %arg42[%c0_73, %c0_74] : memref<1x64xf32, #tpu.memory_space<vmem>>, vector<1x64xf32>
    %c0_75 = arith.constant 0 : index
    %c0_76 = arith.constant 0 : index
    %38 = vector.load %arg43[%c0_75, %c0_76] : memref<64x64xf32, #tpu.memory_space<vmem>>, vector<64x64xf32>
    %c0_77 = arith.constant 0 : index
    %c0_78 = arith.constant 0 : index
    %39 = vector.load %arg44[%c0_77, %c0_78] : memref<1x64xf32, #tpu.memory_space<vmem>>, vector<1x64xf32>
    %c0_79 = arith.constant 0 : index
    %c0_80 = arith.constant 0 : index
    %40 = vector.load %arg45[%c0_79, %c0_80] : memref<1x64xf32, #tpu.memory_space<vmem>>, vector<1x64xf32>
    %c0_81 = arith.constant 0 : index
    %c0_82 = arith.constant 0 : index
    %41 = vector.load %arg46[%c0_81, %c0_82] : memref<1x64xf32, #tpu.memory_space<vmem>>, vector<1x64xf32>
    %c0_83 = arith.constant 0 : index
    %c0_84 = arith.constant 0 : index
    %42 = vector.load %arg47[%c0_83, %c0_84] : memref<64x64xf32, #tpu.memory_space<vmem>>, vector<64x64xf32>
    %c0_85 = arith.constant 0 : index
    %c0_86 = arith.constant 0 : index
    %43 = vector.load %arg48[%c0_85, %c0_86] : memref<1x64xf32, #tpu.memory_space<vmem>>, vector<1x64xf32>
    %c0_87 = arith.constant 0 : index
    %c0_88 = arith.constant 0 : index
    %44 = vector.load %arg49[%c0_87, %c0_88] : memref<1x64xf32, #tpu.memory_space<vmem>>, vector<1x64xf32>
    %c0_89 = arith.constant 0 : index
    %c0_90 = arith.constant 0 : index
    %45 = vector.load %arg50[%c0_89, %c0_90] : memref<1x64xf32, #tpu.memory_space<vmem>>, vector<1x64xf32>
    %c0_91 = arith.constant 0 : index
    %c0_92 = arith.constant 0 : index
    %46 = vector.load %arg51[%c0_91, %c0_92] : memref<64x64xf32, #tpu.memory_space<vmem>>, vector<64x64xf32>
    %c0_93 = arith.constant 0 : index
    %c0_94 = arith.constant 0 : index
    %47 = vector.load %arg52[%c0_93, %c0_94] : memref<1x64xf32, #tpu.memory_space<vmem>>, vector<1x64xf32>
    %c0_95 = arith.constant 0 : index
    %c0_96 = arith.constant 0 : index
    %48 = vector.load %arg53[%c0_95, %c0_96] : memref<1x64xf32, #tpu.memory_space<vmem>>, vector<1x64xf32>
    %c0_97 = arith.constant 0 : index
    %c0_98 = arith.constant 0 : index
    %49 = vector.load %arg54[%c0_97, %c0_98] : memref<1x64xf32, #tpu.memory_space<vmem>>, vector<1x64xf32>
    %c0_99 = arith.constant 0 : index
    %c0_100 = arith.constant 0 : index
    %50 = vector.load %arg55[%c0_99, %c0_100] : memref<64x64xf32, #tpu.memory_space<vmem>>, vector<64x64xf32>
    %c0_101 = arith.constant 0 : index
    %c0_102 = arith.constant 0 : index
    %51 = vector.load %arg56[%c0_101, %c0_102] : memref<1x64xf32, #tpu.memory_space<vmem>>, vector<1x64xf32>
    %c0_103 = arith.constant 0 : index
    %c0_104 = arith.constant 0 : index
    %52 = vector.load %arg57[%c0_103, %c0_104] : memref<1x64xf32, #tpu.memory_space<vmem>>, vector<1x64xf32>
    %c0_105 = arith.constant 0 : index
    %c0_106 = arith.constant 0 : index
    %53 = vector.load %arg58[%c0_105, %c0_106] : memref<1x64xf32, #tpu.memory_space<vmem>>, vector<1x64xf32>
    %c0_107 = arith.constant 0 : index
    %c0_108 = arith.constant 0 : index
    %54 = vector.load %arg59[%c0_107, %c0_108] : memref<64x64xf32, #tpu.memory_space<vmem>>, vector<64x64xf32>
    %c0_109 = arith.constant 0 : index
    %c0_110 = arith.constant 0 : index
    %55 = vector.load %arg60[%c0_109, %c0_110] : memref<1x64xf32, #tpu.memory_space<vmem>>, vector<1x64xf32>
    %c0_111 = arith.constant 0 : index
    %c0_112 = arith.constant 0 : index
    %56 = vector.load %arg61[%c0_111, %c0_112] : memref<1x64xf32, #tpu.memory_space<vmem>>, vector<1x64xf32>
    %c0_113 = arith.constant 0 : index
    %c0_114 = arith.constant 0 : index
    %57 = vector.load %arg62[%c0_113, %c0_114] : memref<1x64xf32, #tpu.memory_space<vmem>>, vector<1x64xf32>
    %c0_115 = arith.constant 0 : index
    %c0_116 = arith.constant 0 : index
    %58 = vector.load %arg63[%c0_115, %c0_116] : memref<64x64xf32, #tpu.memory_space<vmem>>, vector<64x64xf32>
    %c0_117 = arith.constant 0 : index
    %c0_118 = arith.constant 0 : index
    %59 = vector.load %arg64[%c0_117, %c0_118] : memref<1x64xf32, #tpu.memory_space<vmem>>, vector<1x64xf32>
    %c0_119 = arith.constant 0 : index
    %c0_120 = arith.constant 0 : index
    %60 = vector.load %arg65[%c0_119, %c0_120] : memref<64x6xf32, #tpu.memory_space<vmem>>, vector<64x6xf32>
    %c0_121 = arith.constant 0 : index
    %c0_122 = arith.constant 0 : index
    %61 = vector.load %arg66[%c0_121, %c0_122] : memref<1x6xf32, #tpu.memory_space<vmem>>, vector<1x6xf32>
    %c0_123 = arith.constant 0 : index
    %c0_124 = arith.constant 0 : index
    %62 = vector.load %arg0[%c0_123, %c0_124] : memref<16x9xf32, #tpu.memory_space<vmem>>, vector<16x9xf32>
    %c0_125 = arith.constant 0 : index
    %c0_126 = arith.constant 0 : index
    %63 = vector.load %arg1[%c0_125, %c0_126] : memref<24x12xf32, #tpu.memory_space<vmem>>, vector<24x12xf32>
    %64 = tpu.iota {dimensions = array<i32: 0>} : vector<16x24xi32>
    %c0_127 = arith.constant 0 : index
    %c0_128 = arith.constant 0 : index
    %65 = vector.load %arg2[%c0_127, %c0_128] : memref<1x24xi32, #tpu.memory_space<vmem>>, vector<1x24xi32>
    %66 = vector.broadcast %65 : vector<1x24xi32> to vector<16x24xi32>
    %67 = arith.cmpi eq, %64, %66 : vector<16x24xi32>
    %68 = arith.extui %67 : vector<16x24xi1> to vector<16x24xi32>
    %69 = arith.sitofp %68 : vector<16x24xi32> to vector<16x24xf32>
    %70 = arith.truncf %69 : vector<16x24xf32> to vector<16x24xbf16>
    %c0_129 = arith.constant 0 : index
    %c0_130 = arith.constant 0 : index
    %71 = vector.load %arg3[%c0_129, %c0_130] : memref<1x24xi32, #tpu.memory_space<vmem>>, vector<1x24xi32>
    %72 = vector.broadcast %71 : vector<1x24xi32> to vector<16x24xi32>
    %73 = arith.cmpi eq, %64, %72 : vector<16x24xi32>
    %74 = arith.extui %73 : vector<16x24xi1> to vector<16x24xi32>
    %75 = arith.sitofp %74 : vector<16x24xi32> to vector<16x24xf32>
    %76 = arith.truncf %75 : vector<16x24xf32> to vector<16x24xbf16>
    %77 = tpu.iota {dimensions = array<i32: 0>} : vector<2x16xi32>
    %c0_131 = arith.constant 0 : index
    %c0_132 = arith.constant 0 : index
    %78 = vector.load %arg4[%c0_131, %c0_132] : memref<1x16xi32, #tpu.memory_space<vmem>>, vector<1x16xi32>
    %79 = vector.broadcast %78 : vector<1x16xi32> to vector<2x16xi32>
    %80 = arith.cmpi eq, %77, %79 : vector<2x16xi32>
    %81 = arith.extui %80 : vector<2x16xi1> to vector<2x16xi32>
    %82 = arith.sitofp %81 : vector<2x16xi32> to vector<2x16xf32>
    %83 = arith.truncf %82 : vector<2x16xf32> to vector<2x16xbf16>
    %cst = arith.constant 1.000000e+00 : bf16
    %84 = vector.broadcast %cst : bf16 to vector<24x1xbf16>
    %cst_133 = arith.constant 1.000000e+00 : bf16
    %85 = vector.broadcast %cst_133 : bf16 to vector<16x1xbf16>
    %cst_134 = arith.constant dense<0.000000e+00> : vector<16x1xf32>
    %86 = tpu.matmul %70, %84, %cst_134 {dimension_numbers = #tpu.dot_dimension_numbers<[1], [0], [0], [1], [0, 0, 1, 1], [], []>} : vector<16x24xbf16>, vector<24x1xbf16>, vector<16x1xf32> -> vector<16x1xf32>
    %cst_135 = arith.constant dense<0.000000e+00> : vector<16x1xf32>
    %87 = tpu.matmul %76, %84, %cst_135 {dimension_numbers = #tpu.dot_dimension_numbers<[1], [0], [0], [1], [0, 0, 1, 1], [], []>} : vector<16x24xbf16>, vector<24x1xbf16>, vector<16x1xf32> -> vector<16x1xf32>
    %cst_136 = arith.constant dense<0.000000e+00> : vector<2x1xf32>
    %88 = tpu.matmul %83, %85, %cst_136 {dimension_numbers = #tpu.dot_dimension_numbers<[1], [0], [0], [1], [0, 0, 1, 1], [], []>} : vector<2x16xbf16>, vector<16x1xbf16>, vector<2x1xf32> -> vector<2x1xf32>
    %89 = vector.broadcast %86 : vector<16x1xf32> to vector<16x9xf32>
    %90 = arith.mulf %89, %62 : vector<16x9xf32>
    %cst_137 = arith.constant dense<0.000000e+00> : vector<9xf32>
    %91 = vector.multi_reduction <add>, %90, %cst_137 [0] : vector<16x9xf32> to vector<9xf32>
    %92 = vector.shape_cast %91 : vector<9xf32> to vector<1x9xf32>
    %cst_138 = arith.constant 0.0416666679 : f32
    %93 = vector.broadcast %cst_138 : f32 to vector<1x9xf32>
    %94 = arith.mulf %92, %93 : vector<1x9xf32>
    %95 = vector.broadcast %94 : vector<1x9xf32> to vector<16x9xf32>
    %96 = arith.subf %62, %95 : vector<16x9xf32>
    %97 = arith.mulf %96, %96 : vector<16x9xf32>
    %98 = vector.broadcast %86 : vector<16x1xf32> to vector<16x9xf32>
    %99 = arith.mulf %98, %97 : vector<16x9xf32>
    %cst_139 = arith.constant dense<0.000000e+00> : vector<9xf32>
    %100 = vector.multi_reduction <add>, %99, %cst_139 [0] : vector<16x9xf32> to vector<9xf32>
    %101 = vector.shape_cast %100 : vector<9xf32> to vector<1x9xf32>
    %cst_140 = arith.constant 0.0416666679 : f32
    %102 = vector.broadcast %cst_140 : f32 to vector<1x9xf32>
    %103 = arith.mulf %101, %102 : vector<1x9xf32>
    %cst_141 = arith.constant 9.99999974E-6 : f32
    %104 = vector.broadcast %cst_141 : f32 to vector<1x9xf32>
    %105 = arith.addf %103, %104 : vector<1x9xf32>
    %106 = math.rsqrt %105 : vector<1x9xf32>
    %107 = arith.mulf %0, %106 : vector<1x9xf32>
    %108 = vector.broadcast %107 : vector<1x9xf32> to vector<16x9xf32>
    %109 = arith.mulf %96, %108 : vector<16x9xf32>
    %110 = vector.broadcast %1 : vector<1x9xf32> to vector<16x9xf32>
    %111 = arith.addf %109, %110 : vector<16x9xf32>
    %cst_142 = arith.constant dense<0.000000e+00> : vector<16x64xf32>
    %112 = tpu.matmul %111, %2, %cst_142 {dimension_numbers = #tpu.dot_dimension_numbers<[1], [0], [0], [1], [0, 0, 1, 1], [], []>} : vector<16x9xf32>, vector<9x64xf32>, vector<16x64xf32> -> vector<16x64xf32>
    %113 = vector.broadcast %87 : vector<16x1xf32> to vector<16x9xf32>
    %114 = arith.mulf %113, %62 : vector<16x9xf32>
    %cst_143 = arith.constant dense<0.000000e+00> : vector<9xf32>
    %115 = vector.multi_reduction <add>, %114, %cst_143 [0] : vector<16x9xf32> to vector<9xf32>
    %116 = vector.shape_cast %115 : vector<9xf32> to vector<1x9xf32>
    %cst_144 = arith.constant 0.0416666679 : f32
    %117 = vector.broadcast %cst_144 : f32 to vector<1x9xf32>
    %118 = arith.mulf %116, %117 : vector<1x9xf32>
    %119 = vector.broadcast %118 : vector<1x9xf32> to vector<16x9xf32>
    %120 = arith.subf %62, %119 : vector<16x9xf32>
    %121 = arith.mulf %120, %120 : vector<16x9xf32>
    %122 = vector.broadcast %87 : vector<16x1xf32> to vector<16x9xf32>
    %123 = arith.mulf %122, %121 : vector<16x9xf32>
    %cst_145 = arith.constant dense<0.000000e+00> : vector<9xf32>
    %124 = vector.multi_reduction <add>, %123, %cst_145 [0] : vector<16x9xf32> to vector<9xf32>
    %125 = vector.shape_cast %124 : vector<9xf32> to vector<1x9xf32>
    %cst_146 = arith.constant 0.0416666679 : f32
    %126 = vector.broadcast %cst_146 : f32 to vector<1x9xf32>
    %127 = arith.mulf %125, %126 : vector<1x9xf32>
    %cst_147 = arith.constant 9.99999974E-6 : f32
    %128 = vector.broadcast %cst_147 : f32 to vector<1x9xf32>
    %129 = arith.addf %127, %128 : vector<1x9xf32>
    %130 = math.rsqrt %129 : vector<1x9xf32>
    %131 = arith.mulf %3, %130 : vector<1x9xf32>
    %132 = vector.broadcast %131 : vector<1x9xf32> to vector<16x9xf32>
    %133 = arith.mulf %120, %132 : vector<16x9xf32>
    %134 = vector.broadcast %4 : vector<1x9xf32> to vector<16x9xf32>
    %135 = arith.addf %133, %134 : vector<16x9xf32>
    %cst_148 = arith.constant dense<0.000000e+00> : vector<16x64xf32>
    %136 = tpu.matmul %135, %5, %cst_148 {dimension_numbers = #tpu.dot_dimension_numbers<[1], [0], [0], [1], [0, 0, 1, 1], [], []>} : vector<16x9xf32>, vector<9x64xf32>, vector<16x64xf32> -> vector<16x64xf32>
    %137 = vector.broadcast %86 : vector<16x1xf32> to vector<16x9xf32>
    %138 = arith.mulf %137, %62 : vector<16x9xf32>
    %cst_149 = arith.constant dense<0.000000e+00> : vector<9xf32>
    %139 = vector.multi_reduction <add>, %138, %cst_149 [0] : vector<16x9xf32> to vector<9xf32>
    %140 = vector.shape_cast %139 : vector<9xf32> to vector<1x9xf32>
    %cst_150 = arith.constant 0.0416666679 : f32
    %141 = vector.broadcast %cst_150 : f32 to vector<1x9xf32>
    %142 = arith.mulf %140, %141 : vector<1x9xf32>
    %143 = vector.broadcast %142 : vector<1x9xf32> to vector<16x9xf32>
    %144 = arith.subf %62, %143 : vector<16x9xf32>
    %145 = arith.mulf %144, %144 : vector<16x9xf32>
    %146 = vector.broadcast %86 : vector<16x1xf32> to vector<16x9xf32>
    %147 = arith.mulf %146, %145 : vector<16x9xf32>
    %cst_151 = arith.constant dense<0.000000e+00> : vector<9xf32>
    %148 = vector.multi_reduction <add>, %147, %cst_151 [0] : vector<16x9xf32> to vector<9xf32>
    %149 = vector.shape_cast %148 : vector<9xf32> to vector<1x9xf32>
    %cst_152 = arith.constant 0.0416666679 : f32
    %150 = vector.broadcast %cst_152 : f32 to vector<1x9xf32>
    %151 = arith.mulf %149, %150 : vector<1x9xf32>
    %cst_153 = arith.constant 9.99999974E-6 : f32
    %152 = vector.broadcast %cst_153 : f32 to vector<1x9xf32>
    %153 = arith.addf %151, %152 : vector<1x9xf32>
    %154 = math.rsqrt %153 : vector<1x9xf32>
    %155 = arith.mulf %18, %154 : vector<1x9xf32>
    %156 = vector.broadcast %155 : vector<1x9xf32> to vector<16x9xf32>
    %157 = arith.mulf %144, %156 : vector<16x9xf32>
    %158 = vector.broadcast %19 : vector<1x9xf32> to vector<16x9xf32>
    %159 = arith.addf %157, %158 : vector<16x9xf32>
    %cst_154 = arith.constant dense<0.000000e+00> : vector<16x64xf32>
    %160 = tpu.matmul %159, %20, %cst_154 {dimension_numbers = #tpu.dot_dimension_numbers<[1], [0], [0], [1], [0, 0, 1, 1], [], []>} : vector<16x9xf32>, vector<9x64xf32>, vector<16x64xf32> -> vector<16x64xf32>
    %161 = tpu.concatenate %112, %160 in 1 : vector<16x64xf32>, vector<16x64xf32> -> vector<16x128xf32>
    %162 = arith.truncf %161 : vector<16x128xf32> to vector<16x128xbf16>
    %cst_155 = arith.constant dense<0.000000e+00> : vector<24x128xf32>
    %163 = tpu.matmul %70, %162, %cst_155 {dimension_numbers = #tpu.dot_dimension_numbers<[0], [0], [1], [1], [0, 1, 1, 1], [], []>} : vector<16x24xbf16>, vector<16x128xbf16>, vector<24x128xf32> -> vector<24x128xf32>
    %164 = arith.truncf %136 : vector<16x64xf32> to vector<16x64xbf16>
    %cst_156 = arith.constant dense<0.000000e+00> : vector<24x64xf32>
    %165 = tpu.matmul %76, %164, %cst_156 {dimension_numbers = #tpu.dot_dimension_numbers<[0], [0], [1], [1], [0, 1, 1, 1], [], []>} : vector<16x24xbf16>, vector<16x64xbf16>, vector<24x64xf32> -> vector<24x64xf32>
    %166 = vector.extract_strided_slice %163 {offsets = [0, 0], sizes = [24, 64], strides = [1, 1]} : vector<24x128xf32> to vector<24x64xf32>
    %167 = vector.extract_strided_slice %163 {offsets = [0, 64], sizes = [24, 64], strides = [1, 1]} : vector<24x128xf32> to vector<24x64xf32>
    %168 = vector.broadcast %9 : vector<1x64xf32> to vector<24x64xf32>
    %169 = arith.addf %168, %166 : vector<24x64xf32>
    %170 = arith.addf %169, %165 : vector<24x64xf32>
    %cst_157 = arith.constant dense<0.000000e+00> : vector<12xf32>
    %171 = vector.multi_reduction <add>, %63, %cst_157 [0] : vector<24x12xf32> to vector<12xf32>
    %172 = vector.shape_cast %171 : vector<12xf32> to vector<1x12xf32>
    %cst_158 = arith.constant 2.400000e+01 : f32
    %173 = vector.broadcast %cst_158 : f32 to vector<1x12xf32>
    %174 = arith.divf %172, %173 : vector<1x12xf32>
    %175 = vector.broadcast %174 : vector<1x12xf32> to vector<24x12xf32>
    %176 = arith.subf %63, %175 : vector<24x12xf32>
    %177 = arith.mulf %176, %176 : vector<24x12xf32>
    %cst_159 = arith.constant dense<0.000000e+00> : vector<12xf32>
    %178 = vector.multi_reduction <add>, %177, %cst_159 [0] : vector<24x12xf32> to vector<12xf32>
    %179 = vector.shape_cast %178 : vector<12xf32> to vector<1x12xf32>
    %cst_160 = arith.constant 2.400000e+01 : f32
    %180 = vector.broadcast %cst_160 : f32 to vector<1x12xf32>
    %181 = arith.divf %179, %180 : vector<1x12xf32>
    %cst_161 = arith.constant 9.99999974E-6 : f32
    %182 = vector.broadcast %cst_161 : f32 to vector<1x12xf32>
    %183 = arith.addf %181, %182 : vector<1x12xf32>
    %184 = math.rsqrt %183 : vector<1x12xf32>
    %185 = arith.mulf %6, %184 : vector<1x12xf32>
    %186 = vector.broadcast %185 : vector<1x12xf32> to vector<24x12xf32>
    %187 = arith.mulf %176, %186 : vector<24x12xf32>
    %188 = vector.broadcast %7 : vector<1x12xf32> to vector<24x12xf32>
    %189 = arith.addf %187, %188 : vector<24x12xf32>
    %cst_162 = arith.constant dense<0.000000e+00> : vector<24x64xf32>
    %190 = tpu.matmul %189, %8, %cst_162 {dimension_numbers = #tpu.dot_dimension_numbers<[1], [0], [0], [1], [0, 0, 1, 1], [], []>} : vector<24x12xf32>, vector<12x64xf32>, vector<24x64xf32> -> vector<24x64xf32>
    %191 = arith.addf %170, %190 : vector<24x64xf32>
    %cst_163 = arith.constant 0.000000e+00 : f32
    %192 = vector.broadcast %cst_163 : f32 to vector<24x64xf32>
    %193 = arith.mulf %192, %191 : vector<24x64xf32>
    %194 = arith.maximumf %191, %193 : vector<24x64xf32>
    %cst_164 = arith.constant dense<0.000000e+00> : vector<64xf32>
    %195 = vector.multi_reduction <add>, %194, %cst_164 [0] : vector<24x64xf32> to vector<64xf32>
    %196 = vector.shape_cast %195 : vector<64xf32> to vector<1x64xf32>
    %cst_165 = arith.constant 2.400000e+01 : f32
    %197 = vector.broadcast %cst_165 : f32 to vector<1x64xf32>
    %198 = arith.divf %196, %197 : vector<1x64xf32>
    %199 = vector.broadcast %198 : vector<1x64xf32> to vector<24x64xf32>
    %200 = arith.subf %194, %199 : vector<24x64xf32>
    %201 = arith.mulf %200, %200 : vector<24x64xf32>
    %cst_166 = arith.constant dense<0.000000e+00> : vector<64xf32>
    %202 = vector.multi_reduction <add>, %201, %cst_166 [0] : vector<24x64xf32> to vector<64xf32>
    %203 = vector.shape_cast %202 : vector<64xf32> to vector<1x64xf32>
    %cst_167 = arith.constant 2.400000e+01 : f32
    %204 = vector.broadcast %cst_167 : f32 to vector<1x64xf32>
    %205 = arith.divf %203, %204 : vector<1x64xf32>
    %cst_168 = arith.constant 9.99999974E-6 : f32
    %206 = vector.broadcast %cst_168 : f32 to vector<1x64xf32>
    %207 = arith.addf %205, %206 : vector<1x64xf32>
    %208 = math.rsqrt %207 : vector<1x64xf32>
    %209 = arith.mulf %10, %208 : vector<1x64xf32>
    %210 = vector.broadcast %209 : vector<1x64xf32> to vector<24x64xf32>
    %211 = arith.mulf %200, %210 : vector<24x64xf32>
    %212 = vector.broadcast %11 : vector<1x64xf32> to vector<24x64xf32>
    %213 = arith.addf %211, %212 : vector<24x64xf32>
    %cst_169 = arith.constant dense<0.000000e+00> : vector<24x64xf32>
    %214 = tpu.matmul %213, %12, %cst_169 {dimension_numbers = #tpu.dot_dimension_numbers<[1], [0], [0], [1], [0, 0, 1, 1], [], []>} : vector<24x64xf32>, vector<64x64xf32>, vector<24x64xf32> -> vector<24x64xf32>
    %215 = vector.broadcast %13 : vector<1x64xf32> to vector<24x64xf32>
    %216 = arith.addf %214, %215 : vector<24x64xf32>
    %cst_170 = arith.constant 0.000000e+00 : f32
    %217 = vector.broadcast %cst_170 : f32 to vector<24x64xf32>
    %218 = arith.mulf %217, %216 : vector<24x64xf32>
    %219 = arith.maximumf %216, %218 : vector<24x64xf32>
    %cst_171 = arith.constant dense<0.000000e+00> : vector<64xf32>
    %220 = vector.multi_reduction <add>, %219, %cst_171 [0] : vector<24x64xf32> to vector<64xf32>
    %221 = vector.shape_cast %220 : vector<64xf32> to vector<1x64xf32>
    %cst_172 = arith.constant 2.400000e+01 : f32
    %222 = vector.broadcast %cst_172 : f32 to vector<1x64xf32>
    %223 = arith.divf %221, %222 : vector<1x64xf32>
    %224 = vector.broadcast %223 : vector<1x64xf32> to vector<24x64xf32>
    %225 = arith.subf %219, %224 : vector<24x64xf32>
    %226 = arith.mulf %225, %225 : vector<24x64xf32>
    %cst_173 = arith.constant dense<0.000000e+00> : vector<64xf32>
    %227 = vector.multi_reduction <add>, %226, %cst_173 [0] : vector<24x64xf32> to vector<64xf32>
    %228 = vector.shape_cast %227 : vector<64xf32> to vector<1x64xf32>
    %cst_174 = arith.constant 2.400000e+01 : f32
    %229 = vector.broadcast %cst_174 : f32 to vector<1x64xf32>
    %230 = arith.divf %228, %229 : vector<1x64xf32>
    %cst_175 = arith.constant 9.99999974E-6 : f32
    %231 = vector.broadcast %cst_175 : f32 to vector<1x64xf32>
    %232 = arith.addf %230, %231 : vector<1x64xf32>
    %233 = math.rsqrt %232 : vector<1x64xf32>
    %234 = arith.mulf %14, %233 : vector<1x64xf32>
    %235 = vector.broadcast %234 : vector<1x64xf32> to vector<24x64xf32>
    %236 = arith.mulf %225, %235 : vector<24x64xf32>
    %237 = vector.broadcast %15 : vector<1x64xf32> to vector<24x64xf32>
    %238 = arith.addf %236, %237 : vector<24x64xf32>
    %cst_176 = arith.constant dense<0.000000e+00> : vector<24x64xf32>
    %239 = tpu.matmul %238, %16, %cst_176 {dimension_numbers = #tpu.dot_dimension_numbers<[1], [0], [0], [1], [0, 0, 1, 1], [], []>} : vector<24x64xf32>, vector<64x64xf32>, vector<24x64xf32> -> vector<24x64xf32>
    %240 = vector.broadcast %17 : vector<1x64xf32> to vector<24x64xf32>
    %241 = arith.addf %239, %240 : vector<24x64xf32>
    %242 = vector.broadcast %24 : vector<1x64xf32> to vector<24x64xf32>
    %243 = arith.addf %242, %167 : vector<24x64xf32>
    %cst_177 = arith.constant dense<0.000000e+00> : vector<64xf32>
    %244 = vector.multi_reduction <add>, %241, %cst_177 [0] : vector<24x64xf32> to vector<64xf32>
    %245 = vector.shape_cast %244 : vector<64xf32> to vector<1x64xf32>
    %cst_178 = arith.constant 2.400000e+01 : f32
    %246 = vector.broadcast %cst_178 : f32 to vector<1x64xf32>
    %247 = arith.divf %245, %246 : vector<1x64xf32>
    %248 = vector.broadcast %247 : vector<1x64xf32> to vector<24x64xf32>
    %249 = arith.subf %241, %248 : vector<24x64xf32>
    %250 = arith.mulf %249, %249 : vector<24x64xf32>
    %cst_179 = arith.constant dense<0.000000e+00> : vector<64xf32>
    %251 = vector.multi_reduction <add>, %250, %cst_179 [0] : vector<24x64xf32> to vector<64xf32>
    %252 = vector.shape_cast %251 : vector<64xf32> to vector<1x64xf32>
    %cst_180 = arith.constant 2.400000e+01 : f32
    %253 = vector.broadcast %cst_180 : f32 to vector<1x64xf32>
    %254 = arith.divf %252, %253 : vector<1x64xf32>
    %cst_181 = arith.constant 9.99999974E-6 : f32
    %255 = vector.broadcast %cst_181 : f32 to vector<1x64xf32>
    %256 = arith.addf %254, %255 : vector<1x64xf32>
    %257 = math.rsqrt %256 : vector<1x64xf32>
    %258 = arith.mulf %21, %257 : vector<1x64xf32>
    %259 = vector.broadcast %258 : vector<1x64xf32> to vector<24x64xf32>
    %260 = arith.mulf %249, %259 : vector<24x64xf32>
    %261 = vector.broadcast %22 : vector<1x64xf32> to vector<24x64xf32>
    %262 = arith.addf %260, %261 : vector<24x64xf32>
    %cst_182 = arith.constant dense<0.000000e+00> : vector<24x64xf32>
    %263 = tpu.matmul %262, %23, %cst_182 {dimension_numbers = #tpu.dot_dimension_numbers<[1], [0], [0], [1], [0, 0, 1, 1], [], []>} : vector<24x64xf32>, vector<64x64xf32>, vector<24x64xf32> -> vector<24x64xf32>
    %264 = arith.addf %243, %263 : vector<24x64xf32>
    %cst_183 = arith.constant 0.000000e+00 : f32
    %265 = vector.broadcast %cst_183 : f32 to vector<24x64xf32>
    %266 = arith.mulf %265, %264 : vector<24x64xf32>
    %267 = arith.maximumf %264, %266 : vector<24x64xf32>
    %cst_184 = arith.constant dense<0.000000e+00> : vector<64xf32>
    %268 = vector.multi_reduction <add>, %267, %cst_184 [0] : vector<24x64xf32> to vector<64xf32>
    %269 = vector.shape_cast %268 : vector<64xf32> to vector<1x64xf32>
    %cst_185 = arith.constant 2.400000e+01 : f32
    %270 = vector.broadcast %cst_185 : f32 to vector<1x64xf32>
    %271 = arith.divf %269, %270 : vector<1x64xf32>
    %272 = vector.broadcast %271 : vector<1x64xf32> to vector<24x64xf32>
    %273 = arith.subf %267, %272 : vector<24x64xf32>
    %274 = arith.mulf %273, %273 : vector<24x64xf32>
    %cst_186 = arith.constant dense<0.000000e+00> : vector<64xf32>
    %275 = vector.multi_reduction <add>, %274, %cst_186 [0] : vector<24x64xf32> to vector<64xf32>
    %276 = vector.shape_cast %275 : vector<64xf32> to vector<1x64xf32>
    %cst_187 = arith.constant 2.400000e+01 : f32
    %277 = vector.broadcast %cst_187 : f32 to vector<1x64xf32>
    %278 = arith.divf %276, %277 : vector<1x64xf32>
    %cst_188 = arith.constant 9.99999974E-6 : f32
    %279 = vector.broadcast %cst_188 : f32 to vector<1x64xf32>
    %280 = arith.addf %278, %279 : vector<1x64xf32>
    %281 = math.rsqrt %280 : vector<1x64xf32>
    %282 = arith.mulf %25, %281 : vector<1x64xf32>
    %283 = vector.broadcast %282 : vector<1x64xf32> to vector<24x64xf32>
    %284 = arith.mulf %273, %283 : vector<24x64xf32>
    %285 = vector.broadcast %26 : vector<1x64xf32> to vector<24x64xf32>
    %286 = arith.addf %284, %285 : vector<24x64xf32>
    %cst_189 = arith.constant dense<0.000000e+00> : vector<24x64xf32>
    %287 = tpu.matmul %286, %27, %cst_189 {dimension_numbers = #tpu.dot_dimension_numbers<[1], [0], [0], [1], [0, 0, 1, 1], [], []>} : vector<24x64xf32>, vector<64x64xf32>, vector<24x64xf32> -> vector<24x64xf32>
    %288 = vector.broadcast %28 : vector<1x64xf32> to vector<24x64xf32>
    %289 = arith.addf %287, %288 : vector<24x64xf32>
    %cst_190 = arith.constant 0.000000e+00 : f32
    %290 = vector.broadcast %cst_190 : f32 to vector<24x64xf32>
    %291 = arith.mulf %290, %289 : vector<24x64xf32>
    %292 = arith.maximumf %289, %291 : vector<24x64xf32>
    %cst_191 = arith.constant dense<0.000000e+00> : vector<64xf32>
    %293 = vector.multi_reduction <add>, %292, %cst_191 [0] : vector<24x64xf32> to vector<64xf32>
    %294 = vector.shape_cast %293 : vector<64xf32> to vector<1x64xf32>
    %cst_192 = arith.constant 2.400000e+01 : f32
    %295 = vector.broadcast %cst_192 : f32 to vector<1x64xf32>
    %296 = arith.divf %294, %295 : vector<1x64xf32>
    %297 = vector.broadcast %296 : vector<1x64xf32> to vector<24x64xf32>
    %298 = arith.subf %292, %297 : vector<24x64xf32>
    %299 = arith.mulf %298, %298 : vector<24x64xf32>
    %cst_193 = arith.constant dense<0.000000e+00> : vector<64xf32>
    %300 = vector.multi_reduction <add>, %299, %cst_193 [0] : vector<24x64xf32> to vector<64xf32>
    %301 = vector.shape_cast %300 : vector<64xf32> to vector<1x64xf32>
    %cst_194 = arith.constant 2.400000e+01 : f32
    %302 = vector.broadcast %cst_194 : f32 to vector<1x64xf32>
    %303 = arith.divf %301, %302 : vector<1x64xf32>
    %cst_195 = arith.constant 9.99999974E-6 : f32
    %304 = vector.broadcast %cst_195 : f32 to vector<1x64xf32>
    %305 = arith.addf %303, %304 : vector<1x64xf32>
    %306 = math.rsqrt %305 : vector<1x64xf32>
    %307 = arith.mulf %29, %306 : vector<1x64xf32>
    %308 = vector.broadcast %307 : vector<1x64xf32> to vector<24x64xf32>
    %309 = arith.mulf %298, %308 : vector<24x64xf32>
    %310 = vector.broadcast %30 : vector<1x64xf32> to vector<24x64xf32>
    %311 = arith.addf %309, %310 : vector<24x64xf32>
    %cst_196 = arith.constant dense<0.000000e+00> : vector<24x64xf32>
    %312 = tpu.matmul %311, %31, %cst_196 {dimension_numbers = #tpu.dot_dimension_numbers<[1], [0], [0], [1], [0, 0, 1, 1], [], []>} : vector<24x64xf32>, vector<64x64xf32>, vector<24x64xf32> -> vector<24x64xf32>
    %313 = vector.broadcast %32 : vector<1x64xf32> to vector<24x64xf32>
    %314 = arith.addf %312, %313 : vector<24x64xf32>
    %315 = arith.truncf %314 : vector<24x64xf32> to vector<24x64xbf16>
    %cst_197 = arith.constant dense<0.000000e+00> : vector<16x64xf32>
    %316 = tpu.matmul %76, %315, %cst_197 {dimension_numbers = #tpu.dot_dimension_numbers<[1], [0], [0], [1], [0, 0, 1, 1], [], []>} : vector<16x24xbf16>, vector<24x64xbf16>, vector<16x64xf32> -> vector<16x64xf32>
    %cst_198 = arith.constant 1.000000e+00 : f32
    %317 = vector.broadcast %cst_198 : f32 to vector<16x1xf32>
    %318 = arith.maximumf %87, %317 : vector<16x1xf32>
    %319 = vector.broadcast %318 : vector<16x1xf32> to vector<16x64xf32>
    %320 = arith.divf %316, %319 : vector<16x64xf32>
    %cst_199 = arith.constant dense<0.000000e+00> : vector<9xf32>
    %321 = vector.multi_reduction <add>, %62, %cst_199 [0] : vector<16x9xf32> to vector<9xf32>
    %322 = vector.shape_cast %321 : vector<9xf32> to vector<1x9xf32>
    %cst_200 = arith.constant 1.600000e+01 : f32
    %323 = vector.broadcast %cst_200 : f32 to vector<1x9xf32>
    %324 = arith.divf %322, %323 : vector<1x9xf32>
    %325 = vector.broadcast %324 : vector<1x9xf32> to vector<16x9xf32>
    %326 = arith.subf %62, %325 : vector<16x9xf32>
    %327 = arith.mulf %326, %326 : vector<16x9xf32>
    %cst_201 = arith.constant dense<0.000000e+00> : vector<9xf32>
    %328 = vector.multi_reduction <add>, %327, %cst_201 [0] : vector<16x9xf32> to vector<9xf32>
    %329 = vector.shape_cast %328 : vector<9xf32> to vector<1x9xf32>
    %cst_202 = arith.constant 1.600000e+01 : f32
    %330 = vector.broadcast %cst_202 : f32 to vector<1x9xf32>
    %331 = arith.divf %329, %330 : vector<1x9xf32>
    %cst_203 = arith.constant 9.99999974E-6 : f32
    %332 = vector.broadcast %cst_203 : f32 to vector<1x9xf32>
    %333 = arith.addf %331, %332 : vector<1x9xf32>
    %334 = math.rsqrt %333 : vector<1x9xf32>
    %335 = arith.mulf %33, %334 : vector<1x9xf32>
    %336 = vector.broadcast %335 : vector<1x9xf32> to vector<16x9xf32>
    %337 = arith.mulf %326, %336 : vector<16x9xf32>
    %338 = vector.broadcast %34 : vector<1x9xf32> to vector<16x9xf32>
    %339 = arith.addf %337, %338 : vector<16x9xf32>
    %cst_204 = arith.constant dense<0.000000e+00> : vector<16x64xf32>
    %340 = tpu.matmul %339, %35, %cst_204 {dimension_numbers = #tpu.dot_dimension_numbers<[1], [0], [0], [1], [0, 0, 1, 1], [], []>} : vector<16x9xf32>, vector<9x64xf32>, vector<16x64xf32> -> vector<16x64xf32>
    %341 = vector.broadcast %39 : vector<1x64xf32> to vector<16x64xf32>
    %342 = arith.addf %341, %340 : vector<16x64xf32>
    %cst_205 = arith.constant dense<0.000000e+00> : vector<64xf32>
    %343 = vector.multi_reduction <add>, %320, %cst_205 [0] : vector<16x64xf32> to vector<64xf32>
    %344 = vector.shape_cast %343 : vector<64xf32> to vector<1x64xf32>
    %cst_206 = arith.constant 1.600000e+01 : f32
    %345 = vector.broadcast %cst_206 : f32 to vector<1x64xf32>
    %346 = arith.divf %344, %345 : vector<1x64xf32>
    %347 = vector.broadcast %346 : vector<1x64xf32> to vector<16x64xf32>
    %348 = arith.subf %320, %347 : vector<16x64xf32>
    %349 = arith.mulf %348, %348 : vector<16x64xf32>
    %cst_207 = arith.constant dense<0.000000e+00> : vector<64xf32>
    %350 = vector.multi_reduction <add>, %349, %cst_207 [0] : vector<16x64xf32> to vector<64xf32>
    %351 = vector.shape_cast %350 : vector<64xf32> to vector<1x64xf32>
    %cst_208 = arith.constant 1.600000e+01 : f32
    %352 = vector.broadcast %cst_208 : f32 to vector<1x64xf32>
    %353 = arith.divf %351, %352 : vector<1x64xf32>
    %cst_209 = arith.constant 9.99999974E-6 : f32
    %354 = vector.broadcast %cst_209 : f32 to vector<1x64xf32>
    %355 = arith.addf %353, %354 : vector<1x64xf32>
    %356 = math.rsqrt %355 : vector<1x64xf32>
    %357 = arith.mulf %36, %356 : vector<1x64xf32>
    %358 = vector.broadcast %357 : vector<1x64xf32> to vector<16x64xf32>
    %359 = arith.mulf %348, %358 : vector<16x64xf32>
    %360 = vector.broadcast %37 : vector<1x64xf32> to vector<16x64xf32>
    %361 = arith.addf %359, %360 : vector<16x64xf32>
    %cst_210 = arith.constant dense<0.000000e+00> : vector<16x64xf32>
    %362 = tpu.matmul %361, %38, %cst_210 {dimension_numbers = #tpu.dot_dimension_numbers<[1], [0], [0], [1], [0, 0, 1, 1], [], []>} : vector<16x64xf32>, vector<64x64xf32>, vector<16x64xf32> -> vector<16x64xf32>
    %363 = arith.addf %342, %362 : vector<16x64xf32>
    %cst_211 = arith.constant 0.000000e+00 : f32
    %364 = vector.broadcast %cst_211 : f32 to vector<16x64xf32>
    %365 = arith.mulf %364, %363 : vector<16x64xf32>
    %366 = arith.maximumf %363, %365 : vector<16x64xf32>
    %cst_212 = arith.constant dense<0.000000e+00> : vector<64xf32>
    %367 = vector.multi_reduction <add>, %366, %cst_212 [0] : vector<16x64xf32> to vector<64xf32>
    %368 = vector.shape_cast %367 : vector<64xf32> to vector<1x64xf32>
    %cst_213 = arith.constant 1.600000e+01 : f32
    %369 = vector.broadcast %cst_213 : f32 to vector<1x64xf32>
    %370 = arith.divf %368, %369 : vector<1x64xf32>
    %371 = vector.broadcast %370 : vector<1x64xf32> to vector<16x64xf32>
    %372 = arith.subf %366, %371 : vector<16x64xf32>
    %373 = arith.mulf %372, %372 : vector<16x64xf32>
    %cst_214 = arith.constant dense<0.000000e+00> : vector<64xf32>
    %374 = vector.multi_reduction <add>, %373, %cst_214 [0] : vector<16x64xf32> to vector<64xf32>
    %375 = vector.shape_cast %374 : vector<64xf32> to vector<1x64xf32>
    %cst_215 = arith.constant 1.600000e+01 : f32
    %376 = vector.broadcast %cst_215 : f32 to vector<1x64xf32>
    %377 = arith.divf %375, %376 : vector<1x64xf32>
    %cst_216 = arith.constant 9.99999974E-6 : f32
    %378 = vector.broadcast %cst_216 : f32 to vector<1x64xf32>
    %379 = arith.addf %377, %378 : vector<1x64xf32>
    %380 = math.rsqrt %379 : vector<1x64xf32>
    %381 = arith.mulf %40, %380 : vector<1x64xf32>
    %382 = vector.broadcast %381 : vector<1x64xf32> to vector<16x64xf32>
    %383 = arith.mulf %372, %382 : vector<16x64xf32>
    %384 = vector.broadcast %41 : vector<1x64xf32> to vector<16x64xf32>
    %385 = arith.addf %383, %384 : vector<16x64xf32>
    %cst_217 = arith.constant dense<0.000000e+00> : vector<16x64xf32>
    %386 = tpu.matmul %385, %42, %cst_217 {dimension_numbers = #tpu.dot_dimension_numbers<[1], [0], [0], [1], [0, 0, 1, 1], [], []>} : vector<16x64xf32>, vector<64x64xf32>, vector<16x64xf32> -> vector<16x64xf32>
    %387 = vector.broadcast %43 : vector<1x64xf32> to vector<16x64xf32>
    %388 = arith.addf %386, %387 : vector<16x64xf32>
    %cst_218 = arith.constant 0.000000e+00 : f32
    %389 = vector.broadcast %cst_218 : f32 to vector<16x64xf32>
    %390 = arith.mulf %389, %388 : vector<16x64xf32>
    %391 = arith.maximumf %388, %390 : vector<16x64xf32>
    %cst_219 = arith.constant dense<0.000000e+00> : vector<64xf32>
    %392 = vector.multi_reduction <add>, %391, %cst_219 [0] : vector<16x64xf32> to vector<64xf32>
    %393 = vector.shape_cast %392 : vector<64xf32> to vector<1x64xf32>
    %cst_220 = arith.constant 1.600000e+01 : f32
    %394 = vector.broadcast %cst_220 : f32 to vector<1x64xf32>
    %395 = arith.divf %393, %394 : vector<1x64xf32>
    %396 = vector.broadcast %395 : vector<1x64xf32> to vector<16x64xf32>
    %397 = arith.subf %391, %396 : vector<16x64xf32>
    %398 = arith.mulf %397, %397 : vector<16x64xf32>
    %cst_221 = arith.constant dense<0.000000e+00> : vector<64xf32>
    %399 = vector.multi_reduction <add>, %398, %cst_221 [0] : vector<16x64xf32> to vector<64xf32>
    %400 = vector.shape_cast %399 : vector<64xf32> to vector<1x64xf32>
    %cst_222 = arith.constant 1.600000e+01 : f32
    %401 = vector.broadcast %cst_222 : f32 to vector<1x64xf32>
    %402 = arith.divf %400, %401 : vector<1x64xf32>
    %cst_223 = arith.constant 9.99999974E-6 : f32
    %403 = vector.broadcast %cst_223 : f32 to vector<1x64xf32>
    %404 = arith.addf %402, %403 : vector<1x64xf32>
    %405 = math.rsqrt %404 : vector<1x64xf32>
    %406 = arith.mulf %44, %405 : vector<1x64xf32>
    %407 = vector.broadcast %406 : vector<1x64xf32> to vector<16x64xf32>
    %408 = arith.mulf %397, %407 : vector<16x64xf32>
    %409 = vector.broadcast %45 : vector<1x64xf32> to vector<16x64xf32>
    %410 = arith.addf %408, %409 : vector<16x64xf32>
    %cst_224 = arith.constant dense<0.000000e+00> : vector<16x64xf32>
    %411 = tpu.matmul %410, %46, %cst_224 {dimension_numbers = #tpu.dot_dimension_numbers<[1], [0], [0], [1], [0, 0, 1, 1], [], []>} : vector<16x64xf32>, vector<64x64xf32>, vector<16x64xf32> -> vector<16x64xf32>
    %412 = vector.broadcast %47 : vector<1x64xf32> to vector<16x64xf32>
    %413 = arith.addf %411, %412 : vector<16x64xf32>
    %414 = arith.truncf %413 : vector<16x64xf32> to vector<16x64xbf16>
    %cst_225 = arith.constant dense<0.000000e+00> : vector<2x64xf32>
    %415 = tpu.matmul %83, %414, %cst_225 {dimension_numbers = #tpu.dot_dimension_numbers<[1], [0], [0], [1], [0, 0, 1, 1], [], []>} : vector<2x16xbf16>, vector<16x64xbf16>, vector<2x64xf32> -> vector<2x64xf32>
    %cst_226 = arith.constant 1.000000e+00 : f32
    %416 = vector.broadcast %cst_226 : f32 to vector<2x1xf32>
    %417 = arith.maximumf %88, %416 : vector<2x1xf32>
    %418 = vector.broadcast %417 : vector<2x1xf32> to vector<2x64xf32>
    %419 = arith.divf %415, %418 : vector<2x64xf32>
    %cst_227 = arith.constant dense<0.000000e+00> : vector<64xf32>
    %420 = vector.multi_reduction <add>, %419, %cst_227 [0] : vector<2x64xf32> to vector<64xf32>
    %421 = vector.shape_cast %420 : vector<64xf32> to vector<1x64xf32>
    %cst_228 = arith.constant 2.000000e+00 : f32
    %422 = vector.broadcast %cst_228 : f32 to vector<1x64xf32>
    %423 = arith.divf %421, %422 : vector<1x64xf32>
    %424 = vector.broadcast %423 : vector<1x64xf32> to vector<2x64xf32>
    %425 = arith.subf %419, %424 : vector<2x64xf32>
    %426 = arith.mulf %425, %425 : vector<2x64xf32>
    %cst_229 = arith.constant dense<0.000000e+00> : vector<64xf32>
    %427 = vector.multi_reduction <add>, %426, %cst_229 [0] : vector<2x64xf32> to vector<64xf32>
    %428 = vector.shape_cast %427 : vector<64xf32> to vector<1x64xf32>
    %cst_230 = arith.constant 2.000000e+00 : f32
    %429 = vector.broadcast %cst_230 : f32 to vector<1x64xf32>
    %430 = arith.divf %428, %429 : vector<1x64xf32>
    %cst_231 = arith.constant 9.99999974E-6 : f32
    %431 = vector.broadcast %cst_231 : f32 to vector<1x64xf32>
    %432 = arith.addf %430, %431 : vector<1x64xf32>
    %433 = math.rsqrt %432 : vector<1x64xf32>
    %434 = arith.mulf %48, %433 : vector<1x64xf32>
    %435 = vector.broadcast %434 : vector<1x64xf32> to vector<2x64xf32>
    %436 = arith.mulf %425, %435 : vector<2x64xf32>
    %437 = vector.broadcast %49 : vector<1x64xf32> to vector<2x64xf32>
    %438 = arith.addf %436, %437 : vector<2x64xf32>
    %cst_232 = arith.constant dense<0.000000e+00> : vector<2x64xf32>
    %439 = tpu.matmul %438, %50, %cst_232 {dimension_numbers = #tpu.dot_dimension_numbers<[1], [0], [0], [1], [0, 0, 1, 1], [], []>} : vector<2x64xf32>, vector<64x64xf32>, vector<2x64xf32> -> vector<2x64xf32>
    %440 = vector.broadcast %51 : vector<1x64xf32> to vector<2x64xf32>
    %441 = arith.addf %440, %439 : vector<2x64xf32>
    %cst_233 = arith.constant 0.000000e+00 : f32
    %442 = vector.broadcast %cst_233 : f32 to vector<2x64xf32>
    %443 = arith.mulf %442, %441 : vector<2x64xf32>
    %444 = arith.maximumf %441, %443 : vector<2x64xf32>
    %cst_234 = arith.constant dense<0.000000e+00> : vector<64xf32>
    %445 = vector.multi_reduction <add>, %444, %cst_234 [0] : vector<2x64xf32> to vector<64xf32>
    %446 = vector.shape_cast %445 : vector<64xf32> to vector<1x64xf32>
    %cst_235 = arith.constant 2.000000e+00 : f32
    %447 = vector.broadcast %cst_235 : f32 to vector<1x64xf32>
    %448 = arith.divf %446, %447 : vector<1x64xf32>
    %449 = vector.broadcast %448 : vector<1x64xf32> to vector<2x64xf32>
    %450 = arith.subf %444, %449 : vector<2x64xf32>
    %451 = arith.mulf %450, %450 : vector<2x64xf32>
    %cst_236 = arith.constant dense<0.000000e+00> : vector<64xf32>
    %452 = vector.multi_reduction <add>, %451, %cst_236 [0] : vector<2x64xf32> to vector<64xf32>
    %453 = vector.shape_cast %452 : vector<64xf32> to vector<1x64xf32>
    %cst_237 = arith.constant 2.000000e+00 : f32
    %454 = vector.broadcast %cst_237 : f32 to vector<1x64xf32>
    %455 = arith.divf %453, %454 : vector<1x64xf32>
    %cst_238 = arith.constant 9.99999974E-6 : f32
    %456 = vector.broadcast %cst_238 : f32 to vector<1x64xf32>
    %457 = arith.addf %455, %456 : vector<1x64xf32>
    %458 = math.rsqrt %457 : vector<1x64xf32>
    %459 = arith.mulf %52, %458 : vector<1x64xf32>
    %460 = vector.broadcast %459 : vector<1x64xf32> to vector<2x64xf32>
    %461 = arith.mulf %450, %460 : vector<2x64xf32>
    %462 = vector.broadcast %53 : vector<1x64xf32> to vector<2x64xf32>
    %463 = arith.addf %461, %462 : vector<2x64xf32>
    %cst_239 = arith.constant dense<0.000000e+00> : vector<2x64xf32>
    %464 = tpu.matmul %463, %54, %cst_239 {dimension_numbers = #tpu.dot_dimension_numbers<[1], [0], [0], [1], [0, 0, 1, 1], [], []>} : vector<2x64xf32>, vector<64x64xf32>, vector<2x64xf32> -> vector<2x64xf32>
    %465 = vector.broadcast %55 : vector<1x64xf32> to vector<2x64xf32>
    %466 = arith.addf %464, %465 : vector<2x64xf32>
    %cst_240 = arith.constant 0.000000e+00 : f32
    %467 = vector.broadcast %cst_240 : f32 to vector<2x64xf32>
    %468 = arith.mulf %467, %466 : vector<2x64xf32>
    %469 = arith.maximumf %466, %468 : vector<2x64xf32>
    %cst_241 = arith.constant dense<0.000000e+00> : vector<64xf32>
    %470 = vector.multi_reduction <add>, %469, %cst_241 [0] : vector<2x64xf32> to vector<64xf32>
    %471 = vector.shape_cast %470 : vector<64xf32> to vector<1x64xf32>
    %cst_242 = arith.constant 2.000000e+00 : f32
    %472 = vector.broadcast %cst_242 : f32 to vector<1x64xf32>
    %473 = arith.divf %471, %472 : vector<1x64xf32>
    %474 = vector.broadcast %473 : vector<1x64xf32> to vector<2x64xf32>
    %475 = arith.subf %469, %474 : vector<2x64xf32>
    %476 = arith.mulf %475, %475 : vector<2x64xf32>
    %cst_243 = arith.constant dense<0.000000e+00> : vector<64xf32>
    %477 = vector.multi_reduction <add>, %476, %cst_243 [0] : vector<2x64xf32> to vector<64xf32>
    %478 = vector.shape_cast %477 : vector<64xf32> to vector<1x64xf32>
    %cst_244 = arith.constant 2.000000e+00 : f32
    %479 = vector.broadcast %cst_244 : f32 to vector<1x64xf32>
    %480 = arith.divf %478, %479 : vector<1x64xf32>
    %cst_245 = arith.constant 9.99999974E-6 : f32
    %481 = vector.broadcast %cst_245 : f32 to vector<1x64xf32>
    %482 = arith.addf %480, %481 : vector<1x64xf32>
    %483 = math.rsqrt %482 : vector<1x64xf32>
    %484 = arith.mulf %56, %483 : vector<1x64xf32>
    %485 = vector.broadcast %484 : vector<1x64xf32> to vector<2x64xf32>
    %486 = arith.mulf %475, %485 : vector<2x64xf32>
    %487 = vector.broadcast %57 : vector<1x64xf32> to vector<2x64xf32>
    %488 = arith.addf %486, %487 : vector<2x64xf32>
    %cst_246 = arith.constant dense<0.000000e+00> : vector<2x64xf32>
    %489 = tpu.matmul %488, %58, %cst_246 {dimension_numbers = #tpu.dot_dimension_numbers<[1], [0], [0], [1], [0, 0, 1, 1], [], []>} : vector<2x64xf32>, vector<64x64xf32>, vector<2x64xf32> -> vector<2x64xf32>
    %490 = vector.broadcast %59 : vector<1x64xf32> to vector<2x64xf32>
    %491 = arith.addf %489, %490 : vector<2x64xf32>
    %cst_247 = arith.constant dense<0.000000e+00> : vector<2x6xf32>
    %492 = tpu.matmul %491, %60, %cst_247 {dimension_numbers = #tpu.dot_dimension_numbers<[1], [0], [0], [1], [0, 0, 1, 1], [], []>} : vector<2x64xf32>, vector<64x6xf32>, vector<2x6xf32> -> vector<2x6xf32>
    %493 = vector.broadcast %61 : vector<1x6xf32> to vector<2x6xf32>
    %494 = arith.addf %492, %493 : vector<2x6xf32>
    %cst_248 = arith.constant dense<0xFF800000> : vector<2xf32>
    %495 = vector.multi_reduction <maximumf>, %494, %cst_248 [1] : vector<2x6xf32> to vector<2xf32>
    %496 = vector.shape_cast %495 : vector<2xf32> to vector<2x1xf32>
    %497 = vector.broadcast %496 : vector<2x1xf32> to vector<2x6xf32>
    %498 = arith.subf %494, %497 : vector<2x6xf32>
    %499 = math.exp %498 : vector<2x6xf32>
    %cst_249 = arith.constant dense<0.000000e+00> : vector<2xf32>
    %500 = vector.multi_reduction <add>, %499, %cst_249 [1] : vector<2x6xf32> to vector<2xf32>
    %501 = vector.shape_cast %500 : vector<2xf32> to vector<2x1xf32>
    %502 = vector.broadcast %501 : vector<2x1xf32> to vector<2x6xf32>
    %503 = arith.divf %499, %502 : vector<2x6xf32>
    %c0_250 = arith.constant 0 : index
    %c0_251 = arith.constant 0 : index
    %504 = vector.load %arg67[%c0_250, %c0_251] : memref<2x6xf32, #tpu.memory_space<vmem>>, vector<2x6xf32>
    tpu.vector_store %arg67[%c0_250, %c0_251], %503 {strides = array<i32>} : memref<2x6xf32, #tpu.memory_space<vmem>>, vector<2x6xf32>,
    return
  }
}

</mosaic_0001>

<bundles_post_ra>
// kernel: gnn_forward.1
= control target key start
LH: loop header
LB: loop body
LE: loop exit
PB: predicated region body
PF: predicated region fallthrough
CT: control target
= control target key end

     0   :  { %s5982_s6 = smov 1   ;;  %s5983_s10 = smov 2   ;;  %s6921_s0 = inlined_call_operand.smem [shape: u32[68], index: -1, kind: input, shape index: {}] }
   0x1   :  { %s6123_s5 = sld [smem:[%s6921_s0]]   ;;  %s5984_s14 = smov 3  }
   0x2   :  { %s6128_s9 = sld [smem:[%s6921_s0 + %s5982_s6]]   ;;  %s5985_s18 = smov 4  }
   0x3   :  { %s6133_s13 = sld [smem:[%s6921_s0 + %s5983_s10]]   ;;  %s5986_s22 = smov 5  }
   0x4   :  { %s6138_s17 = sld [smem:[%s6921_s0 + %s5984_s14]]   ;;  %s5987_s26 = smov 6  }
   0x5   :  { %s6143_s21 = sld [smem:[%s6921_s0 + %s5985_s18]]   ;;  %s5988_s30 = smov 7  }
   0x6   :  { %s6148_s25 = sld [smem:[%s6921_s0 + %s5986_s22]]   ;;  %s5989_s4 = smov 8  }
   0x7   :  { %6927 = sst [smem:[#allocation123_spill]] %s6123_s5  ;;  %s5990_s10 = smov 9  }
   0x8   :  { %6928 = sst [smem:[#allocation124_spill]] %s6128_s9  ;;  %s5991_s15 = smov 10  }
   0x9   :  { %6929 = sst [smem:[#allocation125_spill]] %s6133_s13  ;;  %s5992_s20 = smov 11  }
   0xa   :  { %6930 = sst [smem:[#allocation126_spill]] %s6138_s17  ;;  %s5994_s1 = smov 13  }
   0xb   :  { %6931 = sst [smem:[#allocation127_spill]] %s6143_s21  ;;  %s5995_s7 = smov 14  }
   0xc   :  { %6932 = sst [smem:[#allocation128_spill]] %s6148_s25  ;;  %s5997_s22 = smov 16  }
   0xd   :  { %s6153_s29 = sld [smem:[%s6921_s0 + %s5987_s26]]   ;;  %s5993_s26 = smov 12  }
   0xe   :  { %s6158_s3 = sld [smem:[%s6921_s0 + %s5988_s30]]   ;;  %s5998_s28 = smov 17  }
   0xf   :  { %s6163_s8 = sld [smem:[%s6921_s0 + %s5989_s4]]  }
  0x10   :  { %s6168_s14 = sld [smem:[%s6921_s0 + %s5990_s10]]  }
  0x11   :  { %s6173_s19 = sld [smem:[%s6921_s0 + %s5991_s15]]   ;;  %s5996_s15 = smov 15  }
  0x12   :  { %s6178_s24 = sld [smem:[%s6921_s0 + %s5992_s20]]  }
  0x13   :  { %s6183_s30 = sld [smem:[%s6921_s0 + %s5993_s26]]  }
  0x14   :  { %6933 = sst [smem:[#allocation129_spill]] %s6158_s3 }
  0x15   :  { %s6188_s6 = sld [smem:[%s6921_s0 + %s5994_s1]]  }
  0x16   :  { %6934 = sst [smem:[#allocation130_spill]] %s6168_s14 }
  0x17   :  { %s6193_s12 = sld [smem:[%s6921_s0 + %s5995_s7]]   ;;  %s5999_s7 = smov 18  }
  0x18   :  { %6935 = sst [smem:[#allocation131_spill]] %s6178_s24 }
  0x19   :  { %s6198_s20 = sld [smem:[%s6921_s0 + %s5996_s15]]   ;;  %s6000_s15 = smov 19  }
  0x1a   :  { %s6203_s27 = sld [smem:[%s6921_s0 + %s5997_s22]]   ;;  %s6001_s22 = smov 20  }
  0x1b   :  { %6936 = sst [smem:[#allocation132_spill]] %s6188_s6 }
  0x1c   :  { %s6208_s4 = sld [smem:[%s6921_s0 + %s5998_s28]]   ;;  %s6002_s28 = smov 21  }
  0x1d   :  { %s6213_s9 = sld [smem:[%s6921_s0 + %s5999_s7]]   ;;  %s6003_s7 = smov 22  }
  0x1e   :  { %s6218_s5 = sld [smem:[%s6921_s0 + %s6000_s15]]   ;;  %s6004_s15 = smov 23  }
  0x1f   :  { %6937 = sst [smem:[#allocation133_spill]] %s6198_s20 }
  0x20   :  { %s6223_s21 = sld [smem:[%s6921_s0 + %s6001_s22]]   ;;  %s6005_s22 = smov 24  }
  0x21   :  { %s6233_s17 = sld [smem:[%s6921_s0 + %s6003_s7]]   ;;  %s6007_s7 = smov 26  }
  0x22   :  { %6938 = sst [smem:[#allocation134_spill]] %s6208_s4 }
  0x23   :  { %6939 = sst [smem:[#allocation135_spill]] %s6213_s9 }
  0x24   :  { %s6228_s4 = sld [smem:[%s6921_s0 + %s6002_s28]]   ;;  %s6006_s28 = smov 25  }
  0x25   :  { %s6238_s13 = sld [smem:[%s6921_s0 + %s6004_s15]]   ;;  %s6008_s15 = smov 27  }
  0x26   :  { %6940 = sst [smem:[#allocation136_spill]] %s6223_s21 }
  0x27   :  { %s6243_s21 = sld [smem:[%s6921_s0 + %s6005_s22]]   ;;  %s6009_s22 = smov 28  }
  0x28   :  { %s6253_s9 = sld [smem:[%s6921_s0 + %s6007_s7]]   ;;  %s6011_s7 = smov 30  }
  0x29   :  { %s6263_s20 = sld [smem:[%s6921_s0 + %s6009_s22]]   ;;  %s6013_s22 = smov 32  }
  0x2a   :  { %6941 = sst [smem:[#allocation137_spill]] %s6228_s4 }
  0x2b   :  { %6942 = sst [smem:[#allocation138_spill]] %s6238_s13 }
  0x2c   :  { %s6248_s4 = sld [smem:[%s6921_s0 + %s6006_s28]]   ;;  %s6010_s28 = smov 29  }
  0x2d   :  { %s6258_s13 = sld [smem:[%s6921_s0 + %s6008_s15]]   ;;  %s6012_s15 = smov 31  }
  0x2e   :  { %s6273_s6 = sld [smem:[%s6921_s0 + %s6011_s7]]   ;;  %s6015_s7 = smov 34  }
  0x2f   :  { %s6283_s24 = sld [smem:[%s6921_s0 + %s6013_s22]]   ;;  %s6017_s22 = smov 36  }
  0x30   :  { %s6293_s14 = sld [smem:[%s6921_s0 + %s6015_s7]]   ;;  %s6019_s7 = smov 38  }
  0x32   :  { %6943 = sst [smem:[#allocation139_spill]] %s6248_s4 }
  0x33   :  { %6944 = sst [smem:[#allocation140_spill]] %s6258_s13 }
  0x34   :  { %s6268_s4 = sld [smem:[%s6921_s0 + %s6010_s28]]   ;;  %s6014_s28 = smov 33  }
  0x35   :  { %s6278_s13 = sld [smem:[%s6921_s0 + %s6012_s15]]   ;;  %s6016_s15 = smov 35  }
  0x36   :  { %6947 = sst [smem:[#allocation143_spill]] %s6283_s24 }
  0x37   :  { %6948 = sst [smem:[#allocation144_spill]] %s6293_s14 }
  0x38   :  { %s6303_s24 = sld [smem:[%s6921_s0 + %s6017_s22]]   ;;  %s6021_s22 = smov 40  }
  0x39   :  { %s6313_s14 = sld [smem:[%s6921_s0 + %s6019_s7]]   ;;  %s6023_s7 = smov 42  }
  0x3a   :  { %6945 = sst [smem:[#allocation141_spill]] %s6268_s4 }
  0x3b   :  { %6946 = sst [smem:[#allocation142_spill]] %s6278_s13 }
  0x3c   :  { %s6288_s4 = sld [smem:[%s6921_s0 + %s6014_s28]]   ;;  %s6018_s28 = smov 37  }
  0x3d   :  { %s6298_s13 = sld [smem:[%s6921_s0 + %s6016_s15]]   ;;  %s6020_s15 = smov 39  }
  0x3e   :  { %6949 = sst [smem:[#allocation145_spill]] %s6303_s24 }
  0x3f   :  { %s6308_s3 = sld [smem:[%s6921_s0 + %s6018_s28]]   ;;  %s6022_s28 = smov 41  }
  0x40   :  { %6951 = sst [smem:[#allocation147_spill]] %s6313_s14 }
  0x41   :  { %s6318_s25 = sld [smem:[%s6921_s0 + %s6020_s15]]   ;;  %s6024_s15 = smov 43  }
  0x42   :  { %s6323_s24 = sld [smem:[%s6921_s0 + %s6021_s22]]   ;;  %s6025_s22 = smov 44  }
  0x43   :  { %s6333_s14 = sld [smem:[%s6921_s0 + %s6023_s7]]   ;;  %s6027_s7 = smov 46  }
  0x45   :  { %6950 = sst [smem:[#allocation146_spill]] %s6308_s3 }
  0x46   :  { %s6328_s3 = sld [smem:[%s6921_s0 + %s6022_s28]]   ;;  %s6026_s28 = smov 45  }
  0x47   :  { %6952 = sst [smem:[#allocation148_spill]] %s6318_s25 }
  0x48   :  { %6953 = sst [smem:[#allocation149_spill]] %s6323_s24 }
  0x49   :  { %6955 = sst [smem:[#allocation151_spill]] %s6333_s14 }
  0x4a   :  { %s6338_s25 = sld [smem:[%s6921_s0 + %s6024_s15]]   ;;  %s6028_s15 = smov 47  }
  0x4b   :  { %s6343_s24 = sld [smem:[%s6921_s0 + %s6025_s22]]   ;;  %s6029_s22 = smov 48  }
  0x4c   :  { %6954 = sst [smem:[#allocation150_spill]] %s6328_s3 }
  0x4d   :  { %s6348_s3 = sld [smem:[%s6921_s0 + %s6026_s28]]   ;;  %s6030_s28 = smov 49  }
  0x4e   :  { %s6353_s14 = sld [smem:[%s6921_s0 + %s6027_s7]]   ;;  %s6031_s7 = smov 50  }
  0x50   :  { %6956 = sst [smem:[#allocation152_spill]] %s6338_s25 }
  0x51   :  { %6957 = sst [smem:[#allocation153_spill]] %s6343_s24 }
  0x52   :  { %s6358_s25 = sld [smem:[%s6921_s0 + %s6028_s15]]   ;;  %s6032_s15 = smov 51  }
  0x53   :  { %6958 = sst [smem:[#allocation154_spill]] %s6348_s3 }
  0x54   :  { %6959 = sst [smem:[#allocation155_spill]] %s6353_s14 }
  0x55   :  { %s6363_s24 = sld [smem:[%s6921_s0 + %s6029_s22]]   ;;  %s6033_s22 = smov 52  }
  0x56   :  { %s6368_s3 = sld [smem:[%s6921_s0 + %s6030_s28]]   ;;  %s6034_s28 = smov 53  }
  0x57   :  { %s6373_s14 = sld [smem:[%s6921_s0 + %s6031_s7]]   ;;  %s6035_s7 = smov 54  }
  0x58   :  { %6960 = sst [smem:[#allocation156_spill]] %s6358_s25 }
  0x59   :  { %s6378_s25 = sld [smem:[%s6921_s0 + %s6032_s15]]   ;;  %s6036_s15 = smov 55  }
  0x5b   :  { %6961 = sst [smem:[#allocation157_spill]] %s6363_s24 }
  0x5c   :  { %6962 = sst [smem:[#allocation158_spill]] %s6368_s3 }
  0x5d   :  { %6963 = sst [smem:[#allocation159_spill]] %s6373_s14 }
  0x5e   :  { %s6383_s24 = sld [smem:[%s6921_s0 + %s6033_s22]]   ;;  %s6037_s22 = smov 56  }
  0x5f   :  { %6964 = sst [smem:[#allocation160_spill]] %s6378_s25 }
  0x60   :  { %s6388_s3 = sld [smem:[%s6921_s0 + %s6034_s28]]   ;;  %s6038_s28 = smov 57  }
  0x61   :  { %s6393_s14 = sld [smem:[%s6921_s0 + %s6035_s7]]   ;;  %s6039_s7 = smov 58  }
  0x62   :  { %s6398_s25 = sld [smem:[%s6921_s0 + %s6036_s15]]   ;;  %s6040_s15 = smov 59  }
  0x64   :  { %6965 = sst [smem:[#allocation161_spill]] %s6383_s24 }
  0x65   :  { %s6403_s24 = sld [smem:[%s6921_s0 + %s6037_s22]]   ;;  %s6041_s22 = smov 60  }
  0x66   :  { %6966 = sst [smem:[#allocation162_spill]] %s6388_s3 }
  0x67   :  { %6967 = sst [smem:[#allocation163_spill]] %s6393_s14 }
  0x68   :  { %6968 = sst [smem:[#allocation164_spill]] %s6398_s25 }
  0x69   :  { %s6408_s3 = sld [smem:[%s6921_s0 + %s6038_s28]]   ;;  %s6042_s28 = smov 61  }
  0x6a   :  { %s6413_s14 = sld [smem:[%s6921_s0 + %s6039_s7]]   ;;  %s6043_s7 = smov 62  }
  0x6b   :  { %6969 = sst [smem:[#allocation165_spill]] %s6403_s24 }
  0x6c   :  { %s6418_s25 = sld [smem:[%s6921_s0 + %s6040_s15]]   ;;  %s6044_s15 = smov 63  }
  0x6d   :  { %s6423_s24 = sld [smem:[%s6921_s0 + %s6041_s22]]   ;;  %s6045_s22 = smov 64  }
  0x6f   :  { %6970 = sst [smem:[#allocation166_spill]] %s6408_s3 }
  0x70   :  { %6971 = sst [smem:[#allocation167_spill]] %s6413_s14 }
  0x71   :  { %s6428_s3 = sld [smem:[%s6921_s0 + %s6042_s28]]   ;;  %s6046_s28 = smov 65  }
  0x72   :  { %6972 = sst [smem:[#allocation168_spill]] %s6418_s25 }
  0x73   :  { %6973 = sst [smem:[#allocation169_spill]] %s6423_s24 }
  0x74   :  { %s6433_s14 = sld [smem:[%s6921_s0 + %s6043_s7]]   ;;  %s6047_s7 = smov 66  }
  0x75   :  { %s6438_s25 = sld [smem:[%s6921_s0 + %s6044_s15]]   ;;  %s6048_s15 = smov 67  }
  0x76   :  { %s6443_s24 = sld [smem:[%s6921_s0 + %s6045_s22]]  }
  0x77   :  { %6974 = sst [smem:[#allocation170_spill]] %s6428_s3 }
  0x78   :  { %s6448_s3 = sld [smem:[%s6921_s0 + %s6046_s28]]  }
  0x7a   :  { %6975 = sst [smem:[#allocation171_spill]] %s6433_s14 }
  0x7b   :  { %6976 = sst [smem:[#allocation172_spill]] %s6438_s25 }
  0x7c   :  { %s6453_s14 = sld [smem:[%s6921_s0 + %s6047_s7]]  }
  0x7d   :  { %s6458_s25 = sld [smem:[%s6921_s0 + %s6048_s15]]  }
  0x7e   :  { %140 = vsyncpa [#allocation3], 0 }
  0x7f   :  { %141 = vsyncpa [#allocation6], 0 }
  0x80   :  { %142 = vsyncpa [#allocation9], 0 }
  0x81   :  { %143 = vsyncpa [#allocation12], 0 }
  0x82   :  { %144 = vsyncpa [#allocation15], 0 }
  0x83   :  { %145 = vsyncpa [#allocation18], 0 }
  0x84   :  { %146 = vsyncpa [#allocation21], 0 }
  0x85   :  { %147 = vsyncpa [#allocation24], 0 }
  0x86   :  { %148 = vsyncpa [#allocation27], 0 }
  0x87   :  { %149 = vsyncpa [#allocation30], 0 }
  0x88   :  { %150 = vsyncpa [#allocation33], 0 }
  0x89   :  { %151 = vsyncpa [#allocation36], 0 }
  0x8a   :  { %152 = vsyncpa [#allocation39], 0 }
  0x8b   :  { %153 = vsyncpa [#allocation42], 0 }
  0x8c   :  { %154 = vsyncpa [#allocation45], 0 }
  0x8d   :  { %155 = vsyncpa [#allocation48], 0 }
  0x8e   :  { %156 = vsyncpa [#allocation51], 0 }
  0x8f   :  { %157 = vsyncpa [#allocation54], 0 }
  0x90   :  { %158 = vsyncpa [#allocation57], 0 }
  0x91   :  { %159 = vsyncpa [#allocation60], 0 }
  0x92   :  { %160 = vsyncpa [#allocation63], 0 }
  0x93   :  { %161 = vsyncpa [#allocation66], 0 }
  0x94   :  { %162 = vsyncpa [#allocation69], 0 }
  0x95   :  { %163 = vsyncpa [#allocation72], 0 }
  0x96   :  { %164 = vsyncpa [#allocation75], 0 }
  0x97   :  { %165 = vsyncpa [#allocation78], 0 }
  0x98   :  { %166 = vsyncpa [#allocation81], 0 }
  0x99   :  { %167 = vsyncpa [#allocation84], 0 }
  0x9a   :  { %168 = vsyncpa [#allocation87], 0 }
  0x9b   :  { %169 = vsyncpa [#allocation90], 0 }
  0x9c   :  { %170 = vsyncpa [#allocation4], 0  ;;  %s6049_s0 = smov [#allocation5]   ;;  %s6050_s23 = smov [#allocation8]  }
  0x9d   :  { %s197_s22 = sshll.u32 %s6049_s0, 4  ;;  %s219_s26 = sshll.u32 %s6050_s23, 4  ;;  %s198_s22 = int_to_ptr.vmem [resolvable:$true] %s197_s22  ;;  %s220_s26 = int_to_ptr.vmem [resolvable:$true] %s219_s26 }
  0x9e   :  { %s4748_s28 = scalar_lea.vmem %s198_s22, 16  ;;  %s4752_s1 = scalar_lea.vmem %s198_s22, 32 }
  0x9f   :  { %p4749_p0 = scmp.ne.s32.totalorder %s198_s22, %s4748_s28  ;;  %p4753_p1 = scmp.lt.s32.totalorder %s198_s22, %s198_s22 }
  0xa0   :  { %p4754_p2 = scmp.lt.s32.totalorder %s4752_s1, %s4748_s28 }
  0xa2   :  { %p4755_p3 = por %p4754_p2, %p4753_p1 }
  0xa4   :  { %p4756_p4 = pnand %p4755_p3, %p4749_p0 }
  0xa6   :  { %4759 = shalt.err (!%p4756_p4)
}
  0xa7   :  { %200 = dma.hbm_to_vmem [thread:$0]  %s6153_s29, 16, %s198_s22, [#allocation6]  }
  0xa8   :  { %s4768_s2 = scalar_lea.vmem %s220_s26, 16  ;;  %s4772_s7 = scalar_lea.vmem %s220_s26, 32 }
  0xa9   :  { %p4769_p5 = scmp.ne.s32.totalorder %s220_s26, %s4768_s2  ;;  %p4773_p6 = scmp.lt.s32.totalorder %s220_s26, %s220_s26 }
  0xaa   :  { %p4774_p7 = scmp.lt.s32.totalorder %s4772_s7, %s4768_s2 }
  0xac   :  { %p4775_p8 = por %p4774_p7, %p4773_p6 }
  0xae   :  { %p4776_p9 = pnand %p4775_p8, %p4769_p5 }
  0xb0   :  { %4779 = shalt.err (!%p4776_p9)
}
  0xb1   :  { %222 = dma.hbm_to_vmem [thread:$0]  %s6163_s8, 16, %s220_s26, [#allocation9]  }
  0xb2   :  { %s6051_s10 = smov [#allocation11]   ;;  %s6052_s15 = smov [#allocation14]  }
  0xb3   :  { %s238_s11 = sshll.u32 %s6051_s10, 4  ;;  %s261_s16 = sshll.u32 %s6052_s15, 4  ;;  %s239_s11 = int_to_ptr.vmem [resolvable:$true] %s238_s11  ;;  %s262_s16 = int_to_ptr.vmem [resolvable:$true] %s261_s16 }
  0xb4   :  { %s4788_s18 = scalar_lea.vmem %s239_s11, 256  ;;  %p4793_p11 = scmp.lt.s32.totalorder %s239_s11, %s239_s11 }
  0xb5   :  { %p4789_p10 = scmp.ne.s32.totalorder %s239_s11, %s4788_s18  ;;  %p4794_p12 = scmp.lt.s32.totalorder %s4788_s18, %s4788_s18 }
  0xb7   :  { %p4795_p13 = por %p4794_p12, %p4793_p11 }
  0xb9   :  { %p4796_p0 = pnand %p4795_p13, %p4789_p10 }
  0xbb   :  { %4799 = shalt.err (!%p4796_p0)
}
  0xbc   :  { %s6053_s29 = smov 128   ;;  %s6054_s0 = smov 8  }
  0xbd   :  { %244 = dma.hbm_to_vmem [thread:$0]  %s6173_s19, 256, %s239_s11, [#allocation12], %s6053_s29, %s6053_s29, %s6054_s0  }
  0xbe   :  { %s4808_s8 = scalar_lea.vmem %s262_s16, 16  ;;  %s4812_s22 = scalar_lea.vmem %s262_s16, 32 }
  0xbf   :  { %p4809_p1 = scmp.ne.s32.totalorder %s262_s16, %s4808_s8  ;;  %p4813_p2 = scmp.lt.s32.totalorder %s262_s16, %s262_s16 }
  0xc0   :  { %p4814_p3 = scmp.lt.s32.totalorder %s4812_s22, %s4808_s8 }
  0xc2   :  { %p4815_p4 = por %p4814_p3, %p4813_p2 }
  0xc4   :  { %p4816_p5 = pnand %p4815_p4, %p4809_p1 }
  0xc6   :  { %4819 = shalt.err (!%p4816_p5)
}
  0xc7   :  { %264 = dma.hbm_to_vmem [thread:$0]  %s6183_s30, 16, %s262_s16, [#allocation15]  }
  0xc8   :  { %s6055_s23 = smov [#allocation17]   ;;  %s6056_s28 = smov [#allocation20]  }
  0xc9   :  { %s283_s26 = sshll.u32 %s6055_s23, 4  ;;  %s303_s1 = sshll.u32 %s6056_s28, 4  ;;  %s284_s26 = int_to_ptr.vmem [resolvable:$true] %s283_s26  ;;  %s304_s1 = int_to_ptr.vmem [resolvable:$true] %s303_s1 }
  0xca   :  { %s4828_s2 = scalar_lea.vmem %s284_s26, 16  ;;  %s4832_s7 = scalar_lea.vmem %s284_s26, 32 }
  0xcb   :  { %p4829_p6 = scmp.ne.s32.totalorder %s284_s26, %s4828_s2  ;;  %p4833_p7 = scmp.lt.s32.totalorder %s284_s26, %s284_s26 }
  0xcc   :  { %p4834_p8 = scmp.lt.s32.totalorder %s4832_s7, %s4828_s2 }
  0xce   :  { %p4835_p9 = por %p4834_p8, %p4833_p7 }
  0xd0   :  { %p4836_p10 = pnand %p4835_p9, %p4829_p6 }
  0xd2   :  { %4839 = shalt.err (!%p4836_p10)
}
  0xd3   :  { %286 = dma.hbm_to_vmem [thread:$0]  %s6193_s12, 16, %s284_s26, [#allocation18]  }
  0xd4   :  { %s4848_s19 = scalar_lea.vmem %s304_s1, 16  ;;  %s4852_s10 = scalar_lea.vmem %s304_s1, 32 }
  0xd5   :  { %p4849_p11 = scmp.ne.s32.totalorder %s304_s1, %s4848_s19  ;;  %p4853_p12 = scmp.lt.s32.totalorder %s304_s1, %s304_s1 }
  0xd6   :  { %p4854_p13 = scmp.lt.s32.totalorder %s4852_s10, %s4848_s19 }
  0xd8   :  { %p4855_p0 = por %p4854_p13, %p4853_p12 }
  0xda   :  { %p4856_p1 = pnand %p4855_p0, %p4849_p11 }
  0xdc   :  { %4859 = shalt.err (!%p4856_p1)
}
  0xdd   :  { %306 = dma.hbm_to_vmem [thread:$0]  %s6203_s27, 16, %s304_s1, [#allocation21]  }
  0xde   :  { %s6057_s30 = smov [#allocation23]   ;;  %s6058_s15 = smov [#allocation26]  }
  0xdf   :  { %s325_s11 = sshll.u32 %s6057_s30, 4  ;;  %s347_s16 = sshll.u32 %s6058_s15, 4  ;;  %s326_s11 = int_to_ptr.vmem [resolvable:$true] %s325_s11  ;;  %s348_s16 = int_to_ptr.vmem [resolvable:$true] %s347_s16 }
  0xe0   :  { %s4868_s18 = scalar_lea.vmem %s326_s11, 16  ;;  %s4872_s8 = scalar_lea.vmem %s326_s11, 32 }
  0xe1   :  { %p4869_p2 = scmp.ne.s32.totalorder %s326_s11, %s4868_s18  ;;  %p4873_p3 = scmp.lt.s32.totalorder %s326_s11, %s326_s11 }
  0xe2   :  { %p4874_p4 = scmp.lt.s32.totalorder %s4872_s8, %s4868_s18 }
  0xe4   :  { %p4875_p5 = por %p4874_p4, %p4873_p3 }
  0xe6   :  { %p4876_p6 = pnand %p4875_p5, %p4869_p2 }
  0xe8   :  { %4879 = shalt.err (!%p4876_p6)
}
  0xe9   :  { %328 = dma.hbm_to_vmem [thread:$0]  %s6218_s5, 16, %s326_s11, [#allocation24]  }
  0xea   :  { %s4888_s12 = scalar_lea.vmem %s348_s16, 16  ;;  %s4892_s22 = scalar_lea.vmem %s348_s16, 32 }
  0xeb   :  { %p4889_p7 = scmp.ne.s32.totalorder %s348_s16, %s4888_s12  ;;  %p4893_p8 = scmp.lt.s32.totalorder %s348_s16, %s348_s16 }
  0xec   :  { %p4894_p9 = scmp.lt.s32.totalorder %s4892_s22, %s4888_s12 }
  0xee   :  { %p4895_p10 = por %p4894_p9, %p4893_p8 }
  0xf0   :  { %p4896_p11 = pnand %p4895_p10, %p4889_p7 }
  0xf2   :  { %4899 = shalt.err (!%p4896_p11)
}
  0xf3   :  { %350 = dma.hbm_to_vmem [thread:$0]  %s6233_s17, 16, %s348_s16, [#allocation27]  }
  0xf4   :  { %s6059_s27 = smov [#allocation29]   ;;  %s6060_s26 = smov [#allocation32]  }
  0xf5   :  { %s367_s23 = sshll.u32 %s6059_s27, 4  ;;  %s389_s28 = sshll.u32 %s6060_s26, 4  ;;  %s368_s23 = int_to_ptr.vmem [resolvable:$true] %s367_s23  ;;  %s390_s28 = int_to_ptr.vmem [resolvable:$true] %s389_s28 }
  0xf6   :  { %s4908_s1 = scalar_lea.vmem %s368_s23, 16  ;;  %s4912_s2 = scalar_lea.vmem %s368_s23, 32 }
  0xf7   :  { %p4909_p12 = scmp.ne.s32.totalorder %s368_s23, %s4908_s1  ;;  %p4913_p13 = scmp.lt.s32.totalorder %s368_s23, %s368_s23 }
  0xf8   :  { %p4914_p0 = scmp.lt.s32.totalorder %s4912_s2, %s4908_s1 }
  0xfa   :  { %p4915_p1 = por %p4914_p0, %p4913_p13 }
  0xfc   :  { %p4916_p2 = pnand %p4915_p1, %p4909_p12 }
  0xfe   :  { %4919 = shalt.err (!%p4916_p2)
}
  0xff   :  { %370 = dma.hbm_to_vmem [thread:$0]  %s6243_s21, 16, %s368_s23, [#allocation30]  }
 0x100   :  { %s4928_s5 = scalar_lea.vmem %s390_s28, 16  ;;  %s4932_s7 = scalar_lea.vmem %s390_s28, 32 }
 0x101   :  { %p4929_p3 = scmp.ne.s32.totalorder %s390_s28, %s4928_s5  ;;  %p4933_p4 = scmp.lt.s32.totalorder %s390_s28, %s390_s28 }
 0x102   :  { %p4934_p5 = scmp.lt.s32.totalorder %s4932_s7, %s4928_s5 }
 0x104   :  { %p4935_p6 = por %p4934_p5, %p4933_p4 }
 0x106   :  { %p4936_p7 = pnand %p4935_p6, %p4929_p3 }
 0x108   :  { %4939 = shalt.err (!%p4936_p7)
}
 0x109   :  { %392 = dma.hbm_to_vmem [thread:$0]  %s6253_s9, 16, %s390_s28, [#allocation33]  }
 0x10a   :  { %s6061_s17 = smov [#allocation35]   ;;  %s6062_s10 = smov [#allocation38]  }
 0x10b   :  { %s408_s19 = sshll.u32 %s6061_s17, 4  ;;  %s431_s30 = sshll.u32 %s6062_s10, 4  ;;  %s409_s19 = int_to_ptr.vmem [resolvable:$true] %s408_s19  ;;  %s432_s30 = int_to_ptr.vmem [resolvable:$true] %s431_s30 }
 0x10c   :  { %s4948_s11 = scalar_lea.vmem %s409_s19, 1024  ;;  %p4953_p9 = scmp.lt.s32.totalorder %s409_s19, %s409_s19 }
 0x10d   :  { %p4949_p8 = scmp.ne.s32.totalorder %s409_s19, %s4948_s11  ;;  %p4954_p10 = scmp.lt.s32.totalorder %s4948_s11, %s4948_s11 }
 0x10f   :  { %p4955_p11 = por %p4954_p10, %p4953_p9 }
 0x111   :  { %p4956_p12 = pnand %p4955_p11, %p4949_p8 }
 0x113   :  { %4959 = shalt.err (!%p4956_p12)
}
 0x114   :  { %414 = dma.hbm_to_vmem [thread:$0]  %s6263_s20, 1024, %s409_s19, [#allocation36], %s6053_s29, %s6053_s29, %s6054_s0  }
 0x115   :  { %s4968_s21 = scalar_lea.vmem %s432_s30, 16  ;;  %s4972_s9 = scalar_lea.vmem %s432_s30, 32 }
 0x116   :  { %p4969_p13 = scmp.ne.s32.totalorder %s432_s30, %s4968_s21  ;;  %p4973_p0 = scmp.lt.s32.totalorder %s432_s30, %s432_s30 }
 0x117   :  { %p4974_p1 = scmp.lt.s32.totalorder %s4972_s9, %s4968_s21 }
 0x119   :  { %p4975_p2 = por %p4974_p1, %p4973_p0 }
 0x11b   :  { %p4976_p3 = pnand %p4975_p2, %p4969_p13 }
 0x11d   :  { %4979 = shalt.err (!%p4976_p3)
}
 0x11e   :  { %434 = dma.hbm_to_vmem [thread:$0]  %s6273_s6, 16, %s432_s30, [#allocation39]  }
 0x11f   :  { %s6063_s15 = smov [#allocation41]   ;;  %s6064_s18 = smov [#allocation44]  }
 0x120   :  { %s453_s16 = sshll.u32 %s6063_s15, 4  ;;  %s473_s8 = sshll.u32 %s6064_s18, 4  ;;  %s454_s16 = int_to_ptr.vmem [resolvable:$true] %s453_s16  ;;  %s474_s8 = int_to_ptr.vmem [resolvable:$true] %s473_s8 }
 0x121   :  { %s4988_s12 = scalar_lea.vmem %s454_s16, 16  ;;  %s4992_s22 = scalar_lea.vmem %s454_s16, 32 }
 0x122   :  { %p4989_p4 = scmp.ne.s32.totalorder %s454_s16, %s4988_s12  ;;  %p4993_p5 = scmp.lt.s32.totalorder %s454_s16, %s454_s16 }
 0x123   :  { %p4994_p6 = scmp.lt.s32.totalorder %s4992_s22, %s4988_s12 }
 0x125   :  { %p4995_p7 = por %p4994_p6, %p4993_p5 }
 0x127   :  { %p4996_p8 = pnand %p4995_p7, %p4989_p4 }
 0x129   :  { %4999 = shalt.err (!%p4996_p8)
}
 0x12a   :  { %456 = dma.hbm_to_vmem [thread:$0]  %s6288_s4, 16, %s454_s16, [#allocation42]  }
 0x12b   :  { %s5008_s20 = scalar_lea.vmem %s474_s8, 16  ;;  %s5012_s27 = scalar_lea.vmem %s474_s8, 32 }
 0x12c   :  { %p5009_p9 = scmp.ne.s32.totalorder %s474_s8, %s5008_s20  ;;  %p5013_p10 = scmp.lt.s32.totalorder %s474_s8, %s474_s8 }
 0x12d   :  { %p5014_p11 = scmp.lt.s32.totalorder %s5012_s27, %s5008_s20 }
 0x12f   :  { %p5015_p12 = por %p5014_p11, %p5013_p10 }
 0x131   :  { %p5016_p13 = pnand %p5015_p12, %p5009_p9 }
 0x133   :  { %5019 = shalt.err (!%p5016_p13)
}
 0x134   :  { %476 = dma.hbm_to_vmem [thread:$0]  %s6298_s13, 16, %s474_s8, [#allocation45]  }
 0x135   :  { %s6065_s6 = smov [#allocation47]   ;;  %s6066_s26 = smov [#allocation50]  }
 0x136   :  { %s495_s23 = sshll.u32 %s6065_s6, 4  ;;  %s515_s28 = sshll.u32 %s6066_s26, 4  ;;  %s496_s23 = int_to_ptr.vmem [resolvable:$true] %s495_s23  ;;  %s516_s28 = int_to_ptr.vmem [resolvable:$true] %s515_s28 }
 0x137   :  { %s5028_s1 = scalar_lea.vmem %s496_s23, 16  ;;  %s5032_s2 = scalar_lea.vmem %s496_s23, 32 }
 0x138   :  { %p5029_p0 = scmp.ne.s32.totalorder %s496_s23, %s5028_s1  ;;  %p5033_p1 = scmp.lt.s32.totalorder %s496_s23, %s496_s23 }
 0x139   :  { %p5034_p2 = scmp.lt.s32.totalorder %s5032_s2, %s5028_s1 }
 0x13b   :  { %p5035_p3 = por %p5034_p2, %p5033_p1 }
 0x13d   :  { %p5036_p4 = pnand %p5035_p3, %p5029_p0 }
 0x13f   :  { %5039 = shalt.err (!%p5036_p4)
}
 0x140   :  { %s6977_s4 = sld [smem:[#allocation146_spill]]  ;;  %s5048_s5 = scalar_lea.vmem %s516_s28, 16 }
 0x141   :  { %p5049_p5 = scmp.ne.s32.totalorder %s516_s28, %s5048_s5  ;;  %s5052_s7 = scalar_lea.vmem %s516_s28, 32 }
 0x142   :  { %p5053_p6 = scmp.lt.s32.totalorder %s516_s28, %s516_s28  ;;  %p5054_p7 = scmp.lt.s32.totalorder %s5052_s7, %s5048_s5 }
 0x144   :  { %p5055_p8 = por %p5054_p7, %p5053_p6 }
 0x146   :  { %498 = dma.hbm_to_vmem [thread:$0]  %s6977_s4, 16, %s496_s23, [#allocation48]  }
 0x147   :  { %p5056_p9 = pnand %p5055_p8, %p5049_p5 }
 0x149   :  { %5059 = shalt.err (!%p5056_p9)
}
 0x14a   :  { %s6978_s13 = sld [smem:[#allocation148_spill]]  ;;  %s6067_s17 = smov [#allocation53]  }
 0x14b   :  { %s537_s19 = sshll.u32 %s6067_s17, 4  ;;  %s6068_s10 = smov [#allocation56]   ;;  %s538_s19 = int_to_ptr.vmem [resolvable:$true] %s537_s19 }
 0x14c   :  { %s556_s30 = sshll.u32 %s6068_s10, 4  ;;  %s5068_s11 = scalar_lea.vmem %s538_s19, 16  ;;  %s557_s30 = int_to_ptr.vmem [resolvable:$true] %s556_s30 }
 0x14d   :  { %p5069_p10 = scmp.ne.s32.totalorder %s538_s19, %s5068_s11  ;;  %s5072_s21 = scalar_lea.vmem %s538_s19, 32 }
 0x14e   :  { %p5073_p11 = scmp.lt.s32.totalorder %s538_s19, %s538_s19  ;;  %p5074_p12 = scmp.lt.s32.totalorder %s5072_s21, %s5068_s11 }
 0x150   :  { %518 = dma.hbm_to_vmem [thread:$0]  %s6978_s13, 16, %s516_s28, [#allocation51]  }
 0x151   :  { %p5075_p13 = por %p5074_p12, %p5073_p11 }
 0x153   :  { %p5076_p0 = pnand %p5075_p13, %p5069_p10 }
 0x155   :  { %5079 = shalt.err (!%p5076_p0)
}
 0x156   :  { %s6979_s9 = sld [smem:[#allocation150_spill]]  ;;  %s5088_s15 = scalar_lea.vmem %s557_s30, 1024 }
 0x157   :  { %p5089_p1 = scmp.ne.s32.totalorder %s557_s30, %s5088_s15  ;;  %p5093_p2 = scmp.lt.s32.totalorder %s557_s30, %s557_s30 }
 0x158   :  { %p5094_p3 = scmp.lt.s32.totalorder %s5088_s15, %s5088_s15 }
 0x15a   :  { %p5095_p4 = por %p5094_p3, %p5093_p2 }
 0x15c   :  { %540 = dma.hbm_to_vmem [thread:$0]  %s6979_s9, 16, %s538_s19, [#allocation54]  }
 0x15d   :  { %p5096_p5 = pnand %p5095_p4, %p5089_p1 }
 0x15f   :  { %5099 = shalt.err (!%p5096_p5)
}
 0x160   :  { %s6980_s16 = sld [smem:[#allocation152_spill]]  ;;  %s6069_s18 = smov [#allocation59]  }
 0x161   :  { %s579_s8 = sshll.u32 %s6069_s18, 4  ;;  %s6070_s12 = smov [#allocation62]   ;;  %s580_s8 = int_to_ptr.vmem [resolvable:$true] %s579_s8 }
 0x162   :  { %s598_s22 = sshll.u32 %s6070_s12, 4  ;;  %s5108_s20 = scalar_lea.vmem %s580_s8, 16  ;;  %s599_s22 = int_to_ptr.vmem [resolvable:$true] %s598_s22 }
 0x163   :  { %p5109_p6 = scmp.ne.s32.totalorder %s580_s8, %s5108_s20  ;;  %s5112_s27 = scalar_lea.vmem %s580_s8, 32 }
 0x164   :  { %p5113_p7 = scmp.lt.s32.totalorder %s580_s8, %s580_s8  ;;  %p5114_p8 = scmp.lt.s32.totalorder %s5112_s27, %s5108_s20 }
 0x166   :  { %562 = dma.hbm_to_vmem [thread:$0]  %s6980_s16, 1024, %s557_s30, [#allocation57], %s6053_s29, %s6053_s29, %s6054_s0  }
 0x167   :  { %p5115_p9 = por %p5114_p8, %p5113_p7 }
 0x169   :  { %p5116_p10 = pnand %p5115_p9, %p5109_p6 }
 0x16b   :  { %5119 = shalt.err (!%p5116_p10)
}
 0x16c   :  { %s6981_s6 = sld [smem:[#allocation154_spill]]  ;;  %s5128_s23 = scalar_lea.vmem %s599_s22, 1024 }
 0x16d   :  { %p5129_p11 = scmp.ne.s32.totalorder %s599_s22, %s5128_s23  ;;  %p5133_p12 = scmp.lt.s32.totalorder %s599_s22, %s599_s22 }
 0x16e   :  { %p5134_p13 = scmp.lt.s32.totalorder %s5128_s23, %s5128_s23 }
 0x170   :  { %p5135_p0 = por %p5134_p13, %p5133_p12 }
 0x172   :  { %582 = dma.hbm_to_vmem [thread:$0]  %s6981_s6, 16, %s580_s8, [#allocation60]  }
 0x173   :  { %p5136_p1 = pnand %p5135_p0, %p5129_p11 }
 0x175   :  { %5139 = shalt.err (!%p5136_p1)
}
 0x176   :  { %s6982_s26 = sld [smem:[#allocation156_spill]]  ;;  %s6071_s28 = smov [#allocation65]  }
 0x177   :  { %s621_s1 = sshll.u32 %s6071_s28, 4  ;;  %s6072_s2 = smov [#allocation68]   ;;  %s622_s1 = int_to_ptr.vmem [resolvable:$true] %s621_s1 }
 0x178   :  { %s640_s4 = sshll.u32 %s6072_s2, 4  ;;  %s5148_s5 = scalar_lea.vmem %s622_s1, 16  ;;  %s641_s4 = int_to_ptr.vmem [resolvable:$true] %s640_s4 }
 0x179   :  { %p5149_p2 = scmp.ne.s32.totalorder %s622_s1, %s5148_s5  ;;  %s5152_s7 = scalar_lea.vmem %s622_s1, 32 }
 0x17a   :  { %p5153_p3 = scmp.lt.s32.totalorder %s622_s1, %s622_s1  ;;  %p5154_p4 = scmp.lt.s32.totalorder %s5152_s7, %s5148_s5 }
 0x17c   :  { %604 = dma.hbm_to_vmem [thread:$0]  %s6982_s26, 1024, %s599_s22, [#allocation63], %s6053_s29, %s6053_s29, %s6054_s0  }
 0x17d   :  { %p5155_p5 = por %p5154_p4, %p5153_p3 }
 0x17f   :  { %p5156_p6 = pnand %p5155_p5, %p5149_p2 }
 0x181   :  { %5159 = shalt.err (!%p5156_p6)
}
 0x182   :  { %s6983_s13 = sld [smem:[#allocation158_spill]]  ;;  %s5168_s17 = scalar_lea.vmem %s641_s4, 1024 }
 0x183   :  { %p5169_p7 = scmp.ne.s32.totalorder %s641_s4, %s5168_s17  ;;  %p5173_p8 = scmp.lt.s32.totalorder %s641_s4, %s641_s4 }
 0x184   :  { %p5174_p9 = scmp.lt.s32.totalorder %s5168_s17, %s5168_s17 }
 0x186   :  { %p5175_p10 = por %p5174_p9, %p5173_p8 }
 0x188   :  { %624 = dma.hbm_to_vmem [thread:$0]  %s6983_s13, 16, %s622_s1, [#allocation66]  }
 0x189   :  { %p5176_p11 = pnand %p5175_p10, %p5169_p7 }
 0x18b   :  { %5179 = shalt.err (!%p5176_p11)
}
 0x18c   :  { %s6984_s19 = sld [smem:[#allocation160_spill]]  ;;  %s6073_s10 = smov [#allocation71]  }
 0x18d   :  { %s663_s30 = sshll.u32 %s6073_s10, 4  ;;  %s6074_s11 = smov [#allocation74]   ;;  %s664_s30 = int_to_ptr.vmem [resolvable:$true] %s663_s30 }
 0x18e   :  { %s682_s21 = sshll.u32 %s6074_s11, 4  ;;  %s5188_s9 = scalar_lea.vmem %s664_s30, 16  ;;  %s683_s21 = int_to_ptr.vmem [resolvable:$true] %s682_s21 }
 0x18f   :  { %p5189_p12 = scmp.ne.s32.totalorder %s664_s30, %s5188_s9  ;;  %s5192_s15 = scalar_lea.vmem %s664_s30, 32 }
 0x190   :  { %p5193_p13 = scmp.lt.s32.totalorder %s664_s30, %s664_s30  ;;  %p5194_p0 = scmp.lt.s32.totalorder %s5192_s15, %s5188_s9 }
 0x192   :  { %646 = dma.hbm_to_vmem [thread:$0]  %s6984_s19, 1024, %s641_s4, [#allocation69], %s6053_s29, %s6053_s29, %s6054_s0  }
 0x193   :  { %p5195_p1 = por %p5194_p0, %p5193_p13 }
 0x195   :  { %p5196_p2 = pnand %p5195_p1, %p5189_p12 }
 0x197   :  { %5199 = shalt.err (!%p5196_p2)
}
 0x198   :  { %s6985_s16 = sld [smem:[#allocation162_spill]]  ;;  %s5208_s18 = scalar_lea.vmem %s683_s21, 1024 }
 0x199   :  { %p5209_p3 = scmp.ne.s32.totalorder %s683_s21, %s5208_s18  ;;  %p5213_p4 = scmp.lt.s32.totalorder %s683_s21, %s683_s21 }
 0x19a   :  { %p5214_p5 = scmp.lt.s32.totalorder %s5208_s18, %s5208_s18 }
 0x19c   :  { %p5215_p6 = por %p5214_p5, %p5213_p4 }
 0x19e   :  { %666 = dma.hbm_to_vmem [thread:$0]  %s6985_s16, 16, %s664_s30, [#allocation72]  }
 0x19f   :  { %p5216_p7 = pnand %p5215_p6, %p5209_p3 }
 0x1a1   :  { %5219 = shalt.err (!%p5216_p7)
}
 0x1a2   :  { %s6986_s8 = sld [smem:[#allocation164_spill]]  ;;  %s6075_s12 = smov [#allocation77]  }
 0x1a3   :  { %s705_s22 = sshll.u32 %s6075_s12, 4  ;;  %s6076_s20 = smov [#allocation80]   ;;  %s706_s22 = int_to_ptr.vmem [resolvable:$true] %s705_s22 }
 0x1a4   :  { %s724_s27 = sshll.u32 %s6076_s20, 4  ;;  %s5228_s6 = scalar_lea.vmem %s706_s22, 16  ;;  %s725_s27 = int_to_ptr.vmem [resolvable:$true] %s724_s27 }
 0x1a5   :  { %p5229_p8 = scmp.ne.s32.totalorder %s706_s22, %s5228_s6  ;;  %s5232_s23 = scalar_lea.vmem %s706_s22, 32 }
 0x1a6   :  { %p5233_p9 = scmp.lt.s32.totalorder %s706_s22, %s706_s22  ;;  %p5234_p10 = scmp.lt.s32.totalorder %s5232_s23, %s5228_s6 }
 0x1a8   :  { %688 = dma.hbm_to_vmem [thread:$0]  %s6986_s8, 1024, %s683_s21, [#allocation75], %s6053_s29, %s6053_s29, %s6054_s0  }
 0x1a9   :  { %p5235_p11 = por %p5234_p10, %p5233_p9 }
 0x1ab   :  { %p5236_p12 = pnand %p5235_p11, %p5229_p8 }
 0x1ad   :  { %5239 = shalt.err (!%p5236_p12)
}
 0x1ae   :  { %s6987_s26 = sld [smem:[#allocation166_spill]]  ;;  %s5248_s28 = scalar_lea.vmem %s725_s27, 1024 }
 0x1af   :  { %p5249_p13 = scmp.ne.s32.totalorder %s725_s27, %s5248_s28  ;;  %p5253_p0 = scmp.lt.s32.totalorder %s725_s27, %s725_s27 }
 0x1b0   :  { %p5254_p1 = scmp.lt.s32.totalorder %s5248_s28, %s5248_s28 }
 0x1b2   :  { %p5255_p2 = por %p5254_p1, %p5253_p0 }
 0x1b4   :  { %708 = dma.hbm_to_vmem [thread:$0]  %s6987_s26, 16, %s706_s22, [#allocation78]  }
 0x1b5   :  { %p5256_p3 = pnand %p5255_p2, %p5249_p13 }
 0x1b7   :  { %5259 = shalt.err (!%p5256_p3)
}
 0x1b8   :  { %s6988_s1 = sld [smem:[#allocation168_spill]]  ;;  %s6077_s2 = smov [#allocation83]  }
 0x1b9   :  { %s747_s4 = sshll.u32 %s6077_s2, 4  ;;  %s6078_s5 = smov [#allocation86]   ;;  %s748_s4 = int_to_ptr.vmem [resolvable:$true] %s747_s4 }
 0x1ba   :  { %s766_s7 = sshll.u32 %s6078_s5, 4  ;;  %s5268_s13 = scalar_lea.vmem %s748_s4, 16  ;;  %s767_s7 = int_to_ptr.vmem [resolvable:$true] %s766_s7 }
 0x1bb   :  { %p5269_p4 = scmp.ne.s32.totalorder %s748_s4, %s5268_s13  ;;  %s5272_s17 = scalar_lea.vmem %s748_s4, 32 }
 0x1bc   :  { %p5273_p5 = scmp.lt.s32.totalorder %s748_s4, %s748_s4  ;;  %p5274_p6 = scmp.lt.s32.totalorder %s5272_s17, %s5268_s13 }
 0x1be   :  { %730 = dma.hbm_to_vmem [thread:$0]  %s6988_s1, 1024, %s725_s27, [#allocation81], %s6053_s29, %s6053_s29, %s6054_s0  }
 0x1bf   :  { %p5275_p7 = por %p5274_p6, %p5273_p5 }
 0x1c1   :  { %p5276_p8 = pnand %p5275_p7, %p5269_p4 }
 0x1c3   :  { %5279 = shalt.err (!%p5276_p8)
}
 0x1c4   :  { %s6989_s19 = sld [smem:[#allocation170_spill]]  ;;  %s5288_s10 = scalar_lea.vmem %s767_s7, 1024 }
 0x1c5   :  { %p5289_p9 = scmp.ne.s32.totalorder %s767_s7, %s5288_s10  ;;  %p5293_p10 = scmp.lt.s32.totalorder %s767_s7, %s767_s7 }
 0x1c6   :  { %p5294_p11 = scmp.lt.s32.totalorder %s5288_s10, %s5288_s10 }
 0x1c8   :  { %p5295_p12 = por %p5294_p11, %p5293_p10 }
 0x1ca   :  { %750 = dma.hbm_to_vmem [thread:$0]  %s6989_s19, 16, %s748_s4, [#allocation84]  }
 0x1cb   :  { %p5296_p13 = pnand %p5295_p12, %p5289_p9 }
 0x1cd   :  { %5299 = shalt.err (!%p5296_p13)
}
 0x1ce   :  { %s6990_s30 = sld [smem:[#allocation172_spill]]  ;;  %s6079_s11 = smov [#allocation2]  }
 0x1cf   :  { %s187_s21 = sshll.u32 %s6079_s11, 4  ;;  %s6080_s9 = smov [#allocation7]   ;;  %s188_s21 = int_to_ptr.vmem [resolvable:$true] %s187_s21 }
 0x1d0   :  { %s206_s15 = sshll.u32 %s6080_s9, 4  ;;  %s5308_s16 = scalar_lea.vmem %s188_s21, 16  ;;  %s207_s15 = int_to_ptr.vmem [resolvable:$true] %s206_s15 }
 0x1d1   :  { %p5309_p0 = scmp.ne.s32.totalorder %s188_s21, %s5308_s16  ;;  %s5312_s18 = scalar_lea.vmem %s188_s21, 32 }
 0x1d2   :  { %p5313_p1 = scmp.lt.s32.totalorder %s188_s21, %s188_s21  ;;  %p5314_p2 = scmp.lt.s32.totalorder %s5312_s18, %s5308_s16 }
 0x1d4   :  { %772 = dma.hbm_to_vmem [thread:$0]  %s6990_s30, 1024, %s767_s7, [#allocation87], %s6053_s29, %s6053_s29, %s6054_s0  }
 0x1d5   :  { %p5315_p3 = por %p5314_p2, %p5313_p1 }
 0x1d7   :  { %p5316_p4 = pnand %p5315_p3, %p5309_p0 }
 0x1d9   :  { %5319 = shalt.err (!%p5316_p4)
}
 0x1da   :  { %s6991_s8 = sld [smem:[#allocation128_spill]]  ;;  %s5328_s12 = scalar_lea.vmem %s207_s15, 256 }
 0x1db   :  { %p5329_p5 = scmp.ne.s32.totalorder %s207_s15, %s5328_s12  ;;  %p5333_p6 = scmp.lt.s32.totalorder %s207_s15, %s207_s15 }
 0x1dc   :  { %p5334_p7 = scmp.lt.s32.totalorder %s5328_s12, %s5328_s12 }
 0x1de   :  { %p5335_p8 = por %p5334_p7, %p5333_p6 }
 0x1e0   :  { %190 = dma.hbm_to_vmem [thread:$0]  %s6991_s8, 16, %s188_s21, [#allocation3]  }
 0x1e1   :  { %p5336_p9 = pnand %p5335_p8, %p5329_p5 }
 0x1e3   :  { %5339 = shalt.err (!%p5336_p9)
}
 0x1e4   :  { %s6992_s22 = sld [smem:[#allocation129_spill]]  ;;  %s6081_s20 = smov [#allocation10]  }
 0x1e5   :  { %s229_s27 = sshll.u32 %s6081_s20, 4  ;;  %s6082_s6 = smov [#allocation13]   ;;  %s230_s27 = int_to_ptr.vmem [resolvable:$true] %s229_s27 }
 0x1e6   :  { %s251_s23 = sshll.u32 %s6082_s6, 4  ;;  %s5348_s26 = scalar_lea.vmem %s230_s27, 16  ;;  %s252_s23 = int_to_ptr.vmem [resolvable:$true] %s251_s23 }
 0x1e7   :  { %p5349_p10 = scmp.ne.s32.totalorder %s230_s27, %s5348_s26  ;;  %s5352_s28 = scalar_lea.vmem %s230_s27, 32 }
 0x1e8   :  { %p5353_p11 = scmp.lt.s32.totalorder %s230_s27, %s230_s27  ;;  %p5354_p12 = scmp.lt.s32.totalorder %s5352_s28, %s5348_s26 }
 0x1ea   :  { %212 = dma.hbm_to_vmem [thread:$0]  %s6992_s22, 256, %s207_s15, [#allocation6], %s6053_s29, %s6053_s29, %s6054_s0  }
 0x1eb   :  { %p5355_p13 = por %p5354_p12, %p5353_p11 }
 0x1ed   :  { %p5356_p0 = pnand %p5355_p13, %p5349_p10 }
 0x1ef   :  { %5359 = shalt.err (!%p5356_p0)
}
 0x1f0   :  { %s6993_s1 = sld [smem:[#allocation130_spill]]  ;;  %s5368_s2 = scalar_lea.vmem %s252_s23, 16 }
 0x1f1   :  { %p5369_p1 = scmp.ne.s32.totalorder %s252_s23, %s5368_s2  ;;  %s5372_s4 = scalar_lea.vmem %s252_s23, 32 }
 0x1f2   :  { %p5373_p2 = scmp.lt.s32.totalorder %s252_s23, %s252_s23  ;;  %p5374_p3 = scmp.lt.s32.totalorder %s5372_s4, %s5368_s2 }
 0x1f4   :  { %p5375_p4 = por %p5374_p3, %p5373_p2 }
 0x1f6   :  { %232 = dma.hbm_to_vmem [thread:$0]  %s6993_s1, 16, %s230_s27, [#allocation9]  }
 0x1f7   :  { %p5376_p5 = pnand %p5375_p4, %p5369_p1 }
 0x1f9   :  { %5379 = shalt.err (!%p5376_p5)
}
 0x1fa   :  { %s6994_s5 = sld [smem:[#allocation131_spill]]  ;;  %s6083_s7 = smov [#allocation16]  }
 0x1fb   :  { %s270_s13 = sshll.u32 %s6083_s7, 4  ;;  %s6084_s17 = smov [#allocation19]   ;;  %s271_s13 = int_to_ptr.vmem [resolvable:$true] %s270_s13 }
 0x1fc   :  { %s293_s19 = sshll.u32 %s6084_s17, 4  ;;  %s5388_s10 = scalar_lea.vmem %s271_s13, 256  ;;  %s294_s19 = int_to_ptr.vmem [resolvable:$true] %s293_s19 }
 0x1fd   :  { %p5389_p6 = scmp.ne.s32.totalorder %s271_s13, %s5388_s10  ;;  %p5393_p7 = scmp.lt.s32.totalorder %s271_s13, %s271_s13 }
 0x1fe   :  { %p5394_p8 = scmp.lt.s32.totalorder %s5388_s10, %s5388_s10 }
 0x200   :  { %254 = dma.hbm_to_vmem [thread:$0]  %s6994_s5, 16, %s252_s23, [#allocation12]  }
 0x201   :  { %p5395_p9 = por %p5394_p8, %p5393_p7 }
 0x203   :  { %p5396_p10 = pnand %p5395_p9, %p5389_p6 }
 0x205   :  { %5399 = shalt.err (!%p5396_p10)
}
 0x206   :  { %s6995_s30 = sld [smem:[#allocation132_spill]]  ;;  %s5408_s11 = scalar_lea.vmem %s294_s19, 16 }
 0x207   :  { %p5409_p11 = scmp.ne.s32.totalorder %s294_s19, %s5408_s11  ;;  %s5412_s21 = scalar_lea.vmem %s294_s19, 32 }
 0x208   :  { %p5413_p12 = scmp.lt.s32.totalorder %s294_s19, %s294_s19  ;;  %p5414_p13 = scmp.lt.s32.totalorder %s5412_s21, %s5408_s11 }
 0x20a   :  { %p5415_p0 = por %p5414_p13, %p5413_p12 }
 0x20c   :  { %276 = dma.hbm_to_vmem [thread:$0]  %s6995_s30, 256, %s271_s13, [#allocation15], %s6053_s29, %s6053_s29, %s6054_s0  }
 0x20d   :  { %p5416_p1 = pnand %p5415_p0, %p5409_p11 }
 0x20f   :  { %5419 = shalt.err (!%p5416_p1)
}
 0x210   :  { %s6996_s9 = sld [smem:[#allocation133_spill]]  ;;  %s6085_s15 = smov [#allocation22]  }
 0x211   :  { %s315_s16 = sshll.u32 %s6085_s15, 4  ;;  %s6086_s18 = smov [#allocation25]   ;;  %s316_s16 = int_to_ptr.vmem [resolvable:$true] %s315_s16 }
 0x212   :  { %s335_s8 = sshll.u32 %s6086_s18, 4  ;;  %s5428_s12 = scalar_lea.vmem %s316_s16, 16  ;;  %s336_s8 = int_to_ptr.vmem [resolvable:$true] %s335_s8 }
 0x213   :  { %p5429_p2 = scmp.ne.s32.totalorder %s316_s16, %s5428_s12  ;;  %s5432_s22 = scalar_lea.vmem %s316_s16, 32 }
 0x214   :  { %p5433_p3 = scmp.lt.s32.totalorder %s316_s16, %s316_s16  ;;  %p5434_p4 = scmp.lt.s32.totalorder %s5432_s22, %s5428_s12 }
 0x216   :  { %296 = dma.hbm_to_vmem [thread:$0]  %s6996_s9, 16, %s294_s19, [#allocation18]  }
 0x217   :  { %p5435_p5 = por %p5434_p4, %p5433_p3 }
 0x219   :  { %p5436_p6 = pnand %p5435_p5, %p5429_p2 }
 0x21b   :  { %5439 = shalt.err (!%p5436_p6)
}
 0x21c   :  { %s6997_s20 = sld [smem:[#allocation135_spill]]  ;;  %s5448_s27 = scalar_lea.vmem %s336_s8, 16 }
 0x21d   :  { %p5449_p7 = scmp.ne.s32.totalorder %s336_s8, %s5448_s27  ;;  %s5452_s6 = scalar_lea.vmem %s336_s8, 32 }
 0x21e   :  { %p5453_p8 = scmp.lt.s32.totalorder %s336_s8, %s336_s8  ;;  %p5454_p9 = scmp.lt.s32.totalorder %s5452_s6, %s5448_s27 }
 0x220   :  { %p5455_p10 = por %p5454_p9, %p5453_p8 }
 0x222   :  { %318 = dma.hbm_to_vmem [thread:$0]  %s6997_s20, 16, %s316_s16, [#allocation21]  }
 0x223   :  { %p5456_p11 = pnand %p5455_p10, %p5449_p7 }
 0x225   :  { %5459 = shalt.err (!%p5456_p11)
}
 0x226   :  { %s6998_s23 = sld [smem:[#allocation136_spill]]  ;;  %s6087_s26 = smov [#allocation28]  }
 0x227   :  { %s357_s28 = sshll.u32 %s6087_s26, 4  ;;  %s6088_s1 = smov [#allocation31]   ;;  %s358_s28 = int_to_ptr.vmem [resolvable:$true] %s357_s28 }
 0x228   :  { %s376_s2 = sshll.u32 %s6088_s1, 4  ;;  %s5468_s4 = scalar_lea.vmem %s358_s28, 16  ;;  %s377_s2 = int_to_ptr.vmem [resolvable:$true] %s376_s2 }
 0x229   :  { %p5469_p12 = scmp.ne.s32.totalorder %s358_s28, %s5468_s4  ;;  %s5472_s5 = scalar_lea.vmem %s358_s28, 32 }
 0x22a   :  { %p5473_p13 = scmp.lt.s32.totalorder %s358_s28, %s358_s28  ;;  %p5474_p0 = scmp.lt.s32.totalorder %s5472_s5, %s5468_s4 }
 0x22c   :  { %338 = dma.hbm_to_vmem [thread:$0]  %s6998_s23, 16, %s336_s8, [#allocation24]  }
 0x22d   :  { %p5475_p1 = por %p5474_p0, %p5473_p13 }
 0x22f   :  { %p5476_p2 = pnand %p5475_p1, %p5469_p12 }
 0x231   :  { %5479 = shalt.err (!%p5476_p2)
}
 0x232   :  { %s6999_s7 = sld [smem:[#allocation138_spill]]  ;;  %s5488_s13 = scalar_lea.vmem %s377_s2, 256 }
 0x233   :  { %p5489_p3 = scmp.ne.s32.totalorder %s377_s2, %s5488_s13  ;;  %p5493_p4 = scmp.lt.s32.totalorder %s377_s2, %s377_s2 }
 0x234   :  { %p5494_p5 = scmp.lt.s32.totalorder %s5488_s13, %s5488_s13 }
 0x236   :  { %p5495_p6 = por %p5494_p5, %p5493_p4 }
 0x238   :  { %360 = dma.hbm_to_vmem [thread:$0]  %s6999_s7, 16, %s358_s28, [#allocation27]  }
 0x239   :  { %p5496_p7 = pnand %p5495_p6, %p5489_p3 }
 0x23b   :  { %5499 = shalt.err (!%p5496_p7)
}
 0x23c   :  { %s7000_s17 = sld [smem:[#allocation139_spill]]  ;;  %s6089_s19 = smov [#allocation34]  }
 0x23d   :  { %s399_s10 = sshll.u32 %s6089_s19, 4  ;;  %s6090_s30 = smov [#allocation37]   ;;  %s400_s10 = int_to_ptr.vmem [resolvable:$true] %s399_s10 }
 0x23e   :  { %s421_s11 = sshll.u32 %s6090_s30, 4  ;;  %s5508_s21 = scalar_lea.vmem %s400_s10, 16  ;;  %s422_s11 = int_to_ptr.vmem [resolvable:$true] %s421_s11 }
 0x23f   :  { %p5509_p8 = scmp.ne.s32.totalorder %s400_s10, %s5508_s21  ;;  %s5512_s9 = scalar_lea.vmem %s400_s10, 32 }
 0x240   :  { %p5513_p9 = scmp.lt.s32.totalorder %s400_s10, %s400_s10  ;;  %p5514_p10 = scmp.lt.s32.totalorder %s5512_s9, %s5508_s21 }
 0x242   :  { %382 = dma.hbm_to_vmem [thread:$0]  %s7000_s17, 256, %s377_s2, [#allocation30], %s6053_s29, %s6053_s29, %s6054_s0  }
 0x243   :  { %p5515_p11 = por %p5514_p10, %p5513_p9 }
 0x245   :  { %p5516_p12 = pnand %p5515_p11, %p5509_p8 }
 0x247   :  { %5519 = shalt.err (!%p5516_p12)
}
 0x248   :  { %s7001_s15 = sld [smem:[#allocation140_spill]]  ;;  %s5528_s16 = scalar_lea.vmem %s422_s11, 16 }
 0x249   :  { %p5529_p13 = scmp.ne.s32.totalorder %s422_s11, %s5528_s16  ;;  %s5532_s18 = scalar_lea.vmem %s422_s11, 32 }
 0x24a   :  { %p5533_p0 = scmp.lt.s32.totalorder %s422_s11, %s422_s11  ;;  %p5534_p1 = scmp.lt.s32.totalorder %s5532_s18, %s5528_s16 }
 0x24c   :  { %p5535_p2 = por %p5534_p1, %p5533_p0 }
 0x24e   :  { %402 = dma.hbm_to_vmem [thread:$0]  %s7001_s15, 16, %s400_s10, [#allocation33]  }
 0x24f   :  { %p5536_p3 = pnand %p5535_p2, %p5529_p13 }
 0x251   :  { %5539 = shalt.err (!%p5536_p3)
}
 0x252   :  { %s7002_s8 = sld [smem:[#allocation141_spill]]  ;;  %s6091_s12 = smov [#allocation40]  }
 0x253   :  { %s441_s22 = sshll.u32 %s6091_s12, 4  ;;  %s6092_s20 = smov [#allocation43]   ;;  %s442_s22 = int_to_ptr.vmem [resolvable:$true] %s441_s22 }
 0x254   :  { %s463_s27 = sshll.u32 %s6092_s20, 4  ;;  %s5548_s6 = scalar_lea.vmem %s442_s22, 16  ;;  %s464_s27 = int_to_ptr.vmem [resolvable:$true] %s463_s27 }
 0x255   :  { %p5549_p4 = scmp.ne.s32.totalorder %s442_s22, %s5548_s6  ;;  %s5552_s23 = scalar_lea.vmem %s442_s22, 32 }
 0x256   :  { %p5553_p5 = scmp.lt.s32.totalorder %s442_s22, %s442_s22  ;;  %p5554_p6 = scmp.lt.s32.totalorder %s5552_s23, %s5548_s6 }
 0x258   :  { %424 = dma.hbm_to_vmem [thread:$0]  %s7002_s8, 16, %s422_s11, [#allocation36]  }
 0x259   :  { %p5555_p7 = por %p5554_p6, %p5553_p5 }
 0x25b   :  { %p5556_p8 = pnand %p5555_p7, %p5549_p4 }
 0x25d   :  { %5559 = shalt.err (!%p5556_p8)
}
 0x25e   :  { %s7003_s26 = sld [smem:[#allocation142_spill]]  ;;  %s5568_s28 = scalar_lea.vmem %s464_s27, 16 }
 0x25f   :  { %p5569_p9 = scmp.ne.s32.totalorder %s464_s27, %s5568_s28  ;;  %s5572_s1 = scalar_lea.vmem %s464_s27, 32 }
 0x260   :  { %p5573_p10 = scmp.lt.s32.totalorder %s464_s27, %s464_s27  ;;  %p5574_p11 = scmp.lt.s32.totalorder %s5572_s1, %s5568_s28 }
 0x262   :  { %p5575_p12 = por %p5574_p11, %p5573_p10 }
 0x264   :  { %444 = dma.hbm_to_vmem [thread:$0]  %s7003_s26, 16, %s442_s22, [#allocation39]  }
 0x265   :  { %p5576_p13 = pnand %p5575_p12, %p5569_p9 }
 0x267   :  { %5579 = shalt.err (!%p5576_p13)
}
 0x268   :  { %s7004_s2 = sld [smem:[#allocation144_spill]]  ;;  %s6093_s4 = smov [#allocation46]  }
 0x269   :  { %s482_s5 = sshll.u32 %s6093_s4, 4  ;;  %s6094_s7 = smov [#allocation49]   ;;  %s483_s5 = int_to_ptr.vmem [resolvable:$true] %s482_s5 }
 0x26a   :  { %s505_s13 = sshll.u32 %s6094_s7, 4  ;;  %s5588_s17 = scalar_lea.vmem %s483_s5, 1024  ;;  %s506_s13 = int_to_ptr.vmem [resolvable:$true] %s505_s13 }
 0x26b   :  { %p5589_p0 = scmp.ne.s32.totalorder %s483_s5, %s5588_s17  ;;  %p5593_p1 = scmp.lt.s32.totalorder %s483_s5, %s483_s5 }
 0x26c   :  { %p5594_p2 = scmp.lt.s32.totalorder %s5588_s17, %s5588_s17 }
 0x26e   :  { %466 = dma.hbm_to_vmem [thread:$0]  %s7004_s2, 16, %s464_s27, [#allocation42]  }
 0x26f   :  { %p5595_p3 = por %p5594_p2, %p5593_p1 }
 0x271   :  { %p5596_p4 = pnand %p5595_p3, %p5589_p0 }
 0x273   :  { %5599 = shalt.err (!%p5596_p4)
}
 0x274   :  { %s7005_s19 = sld [smem:[#allocation145_spill]]  ;;  %s5608_s10 = scalar_lea.vmem %s506_s13, 16 }
 0x275   :  { %p5609_p5 = scmp.ne.s32.totalorder %s506_s13, %s5608_s10  ;;  %s5612_s30 = scalar_lea.vmem %s506_s13, 32 }
 0x276   :  { %p5613_p6 = scmp.lt.s32.totalorder %s506_s13, %s506_s13  ;;  %p5614_p7 = scmp.lt.s32.totalorder %s5612_s30, %s5608_s10 }
 0x278   :  { %p5615_p8 = por %p5614_p7, %p5613_p6 }
 0x27a   :  { %488 = dma.hbm_to_vmem [thread:$0]  %s7005_s19, 1024, %s483_s5, [#allocation45], %s6053_s29, %s6053_s29, %s6054_s0  }
 0x27b   :  { %p5616_p9 = pnand %p5615_p8, %p5609_p5 }
 0x27d   :  { %5619 = shalt.err (!%p5616_p9)
}
 0x27e   :  { %s7006_s11 = sld [smem:[#allocation147_spill]]  ;;  %s6095_s21 = smov [#allocation52]  }
 0x27f   :  { %s524_s9 = sshll.u32 %s6095_s21, 4  ;;  %s6096_s15 = smov [#allocation55]   ;;  %s525_s9 = int_to_ptr.vmem [resolvable:$true] %s524_s9 }
 0x280   :  { %s547_s16 = sshll.u32 %s6096_s15, 4  ;;  %s5628_s18 = scalar_lea.vmem %s525_s9, 256  ;;  %s548_s16 = int_to_ptr.vmem [resolvable:$true] %s547_s16 }
 0x281   :  { %p5629_p10 = scmp.ne.s32.totalorder %s525_s9, %s5628_s18  ;;  %p5633_p11 = scmp.lt.s32.totalorder %s525_s9, %s525_s9 }
 0x282   :  { %p5634_p12 = scmp.lt.s32.totalorder %s5628_s18, %s5628_s18 }
 0x284   :  { %508 = dma.hbm_to_vmem [thread:$0]  %s7006_s11, 16, %s506_s13, [#allocation48]  }
 0x285   :  { %p5635_p13 = por %p5634_p12, %p5633_p11 }
 0x287   :  { %p5636_p0 = pnand %p5635_p13, %p5629_p10 }
 0x289   :  { %5639 = shalt.err (!%p5636_p0)
}
 0x28a   :  { %s7007_s8 = sld [smem:[#allocation149_spill]]  ;;  %s5648_s12 = scalar_lea.vmem %s548_s16, 16 }
 0x28b   :  { %p5649_p1 = scmp.ne.s32.totalorder %s548_s16, %s5648_s12  ;;  %s5652_s22 = scalar_lea.vmem %s548_s16, 32 }
 0x28c   :  { %p5653_p2 = scmp.lt.s32.totalorder %s548_s16, %s548_s16  ;;  %p5654_p3 = scmp.lt.s32.totalorder %s5652_s22, %s5648_s12 }
 0x28e   :  { %p5655_p4 = por %p5654_p3, %p5653_p2 }
 0x290   :  { %530 = dma.hbm_to_vmem [thread:$0]  %s7007_s8, 256, %s525_s9, [#allocation51], %s6053_s29, %s6053_s29, %s6054_s0  }
 0x291   :  { %p5656_p5 = pnand %p5655_p4, %p5649_p1 }
 0x293   :  { %5659 = shalt.err (!%p5656_p5)
}
 0x294   :  { %s7008_s20 = sld [smem:[#allocation151_spill]]  ;;  %s6097_s27 = smov [#allocation58]  }
 0x295   :  { %s569_s6 = sshll.u32 %s6097_s27, 4  ;;  %s6098_s23 = smov [#allocation61]   ;;  %s570_s6 = int_to_ptr.vmem [resolvable:$true] %s569_s6 }
 0x296   :  { %s589_s26 = sshll.u32 %s6098_s23, 4  ;;  %s5668_s28 = scalar_lea.vmem %s570_s6, 16  ;;  %s590_s26 = int_to_ptr.vmem [resolvable:$true] %s589_s26 }
 0x297   :  { %p5669_p6 = scmp.ne.s32.totalorder %s570_s6, %s5668_s28  ;;  %s5672_s1 = scalar_lea.vmem %s570_s6, 32 }
 0x298   :  { %p5673_p7 = scmp.lt.s32.totalorder %s570_s6, %s570_s6  ;;  %p5674_p8 = scmp.lt.s32.totalorder %s5672_s1, %s5668_s28 }
 0x29a   :  { %550 = dma.hbm_to_vmem [thread:$0]  %s7008_s20, 16, %s548_s16, [#allocation54]  }
 0x29b   :  { %p5675_p9 = por %p5674_p8, %p5673_p7 }
 0x29d   :  { %p5676_p10 = pnand %p5675_p9, %p5669_p6 }
 0x29f   :  { %5679 = shalt.err (!%p5676_p10)
}
 0x2a0   :  { %s7009_s29 = sld [smem:[#allocation153_spill]]  ;;  %s5688_s0 = scalar_lea.vmem %s590_s26, 16 }
 0x2a1   :  { %p5689_p11 = scmp.ne.s32.totalorder %s590_s26, %s5688_s0  ;;  %s5692_s2 = scalar_lea.vmem %s590_s26, 32 }
 0x2a2   :  { %p5693_p12 = scmp.lt.s32.totalorder %s590_s26, %s590_s26  ;;  %p5694_p13 = scmp.lt.s32.totalorder %s5692_s2, %s5688_s0 }
 0x2a4   :  { %p5695_p0 = por %p5694_p13, %p5693_p12 }
 0x2a6   :  { %572 = dma.hbm_to_vmem [thread:$0]  %s7009_s29, 16, %s570_s6, [#allocation57]  }
 0x2a7   :  { %p5696_p1 = pnand %p5695_p0, %p5689_p11 }
 0x2a9   :  { %5699 = shalt.err (!%p5696_p1)
}
 0x2aa   :  { %s7010_s4 = sld [smem:[#allocation155_spill]]  ;;  %s6099_s5 = smov [#allocation64]  }
 0x2ab   :  { %s611_s7 = sshll.u32 %s6099_s5, 4  ;;  %s6100_s13 = smov [#allocation67]   ;;  %s612_s7 = int_to_ptr.vmem [resolvable:$true] %s611_s7 }
 0x2ac   :  { %s631_s17 = sshll.u32 %s6100_s13, 4  ;;  %s5708_s19 = scalar_lea.vmem %s612_s7, 16  ;;  %s632_s17 = int_to_ptr.vmem [resolvable:$true] %s631_s17 }
 0x2ad   :  { %p5709_p2 = scmp.ne.s32.totalorder %s612_s7, %s5708_s19  ;;  %s5712_s10 = scalar_lea.vmem %s612_s7, 32 }
 0x2ae   :  { %p5713_p3 = scmp.lt.s32.totalorder %s612_s7, %s612_s7  ;;  %p5714_p4 = scmp.lt.s32.totalorder %s5712_s10, %s5708_s19 }
 0x2b0   :  { %592 = dma.hbm_to_vmem [thread:$0]  %s7010_s4, 16, %s590_s26, [#allocation60]  }
 0x2b1   :  { %p5715_p5 = por %p5714_p4, %p5713_p3 }
 0x2b3   :  { %p5716_p6 = pnand %p5715_p5, %p5709_p2 }
 0x2b5   :  { %5719 = shalt.err (!%p5716_p6)
}
 0x2b6   :  { %s7011_s30 = sld [smem:[#allocation157_spill]]  ;;  %s5728_s11 = scalar_lea.vmem %s632_s17, 16 }
 0x2b7   :  { %p5729_p7 = scmp.ne.s32.totalorder %s632_s17, %s5728_s11  ;;  %s5732_s21 = scalar_lea.vmem %s632_s17, 32 }
 0x2b8   :  { %p5733_p8 = scmp.lt.s32.totalorder %s632_s17, %s632_s17  ;;  %p5734_p9 = scmp.lt.s32.totalorder %s5732_s21, %s5728_s11 }
 0x2ba   :  { %p5735_p10 = por %p5734_p9, %p5733_p8 }
 0x2bc   :  { %614 = dma.hbm_to_vmem [thread:$0]  %s7011_s30, 16, %s612_s7, [#allocation63]  }
 0x2bd   :  { %p5736_p11 = pnand %p5735_p10, %p5729_p7 }
 0x2bf   :  { %5739 = shalt.err (!%p5736_p11)
}
 0x2c0   :  { %s7012_s9 = sld [smem:[#allocation159_spill]]  ;;  %s6101_s15 = smov [#allocation70]  }
 0x2c1   :  { %s653_s16 = sshll.u32 %s6101_s15, 4  ;;  %s6102_s18 = smov [#allocation73]   ;;  %s654_s16 = int_to_ptr.vmem [resolvable:$true] %s653_s16 }
 0x2c2   :  { %s673_s8 = sshll.u32 %s6102_s18, 4  ;;  %s5748_s12 = scalar_lea.vmem %s654_s16, 16  ;;  %s674_s8 = int_to_ptr.vmem [resolvable:$true] %s673_s8 }
 0x2c3   :  { %p5749_p12 = scmp.ne.s32.totalorder %s654_s16, %s5748_s12  ;;  %s5752_s22 = scalar_lea.vmem %s654_s16, 32 }
 0x2c4   :  { %p5753_p13 = scmp.lt.s32.totalorder %s654_s16, %s654_s16  ;;  %p5754_p0 = scmp.lt.s32.totalorder %s5752_s22, %s5748_s12 }
 0x2c6   :  { %634 = dma.hbm_to_vmem [thread:$0]  %s7012_s9, 16, %s632_s17, [#allocation66]  }
 0x2c7   :  { %p5755_p1 = por %p5754_p0, %p5753_p13 }
 0x2c9   :  { %p5756_p2 = pnand %p5755_p1, %p5749_p12 }
 0x2cb   :  { %5759 = shalt.err (!%p5756_p2)
}
 0x2cc   :  { %s7013_s20 = sld [smem:[#allocation161_spill]]  ;;  %s5768_s27 = scalar_lea.vmem %s674_s8, 16 }
 0x2cd   :  { %p5769_p3 = scmp.ne.s32.totalorder %s674_s8, %s5768_s27  ;;  %s5772_s6 = scalar_lea.vmem %s674_s8, 32 }
 0x2ce   :  { %p5773_p4 = scmp.lt.s32.totalorder %s674_s8, %s674_s8  ;;  %p5774_p5 = scmp.lt.s32.totalorder %s5772_s6, %s5768_s27 }
 0x2d0   :  { %p5775_p6 = por %p5774_p5, %p5773_p4 }
 0x2d2   :  { %656 = dma.hbm_to_vmem [thread:$0]  %s7013_s20, 16, %s654_s16, [#allocation69]  }
 0x2d3   :  { %p5776_p7 = pnand %p5775_p6, %p5769_p3 }
 0x2d5   :  { %5779 = shalt.err (!%p5776_p7)
}
 0x2d6   :  { %s7014_s23 = sld [smem:[#allocation163_spill]]  ;;  %s6103_s26 = smov [#allocation76]  }
 0x2d7   :  { %s695_s28 = sshll.u32 %s6103_s26, 4  ;;  %s6104_s1 = smov [#allocation79]   ;;  %s696_s28 = int_to_ptr.vmem [resolvable:$true] %s695_s28 }
 0x2d8   :  { %s715_s29 = sshll.u32 %s6104_s1, 4  ;;  %s5788_s0 = scalar_lea.vmem %s696_s28, 16  ;;  %s716_s29 = int_to_ptr.vmem [resolvable:$true] %s715_s29 }
 0x2d9   :  { %p5789_p8 = scmp.ne.s32.totalorder %s696_s28, %s5788_s0  ;;  %s5792_s2 = scalar_lea.vmem %s696_s28, 32 }
 0x2da   :  { %p5793_p9 = scmp.lt.s32.totalorder %s696_s28, %s696_s28  ;;  %p5794_p10 = scmp.lt.s32.totalorder %s5792_s2, %s5788_s0 }
 0x2dc   :  { %676 = dma.hbm_to_vmem [thread:$0]  %s7014_s23, 16, %s674_s8, [#allocation72]  }
 0x2dd   :  { %p5795_p11 = por %p5794_p10, %p5793_p9 }
 0x2df   :  { %p5796_p12 = pnand %p5795_p11, %p5789_p8 }
 0x2e1   :  { %5799 = shalt.err (!%p5796_p12)
}
 0x2e2   :  { %s7015_s4 = sld [smem:[#allocation165_spill]]  ;;  %s5808_s5 = scalar_lea.vmem %s716_s29, 16 }
 0x2e3   :  { %p5809_p13 = scmp.ne.s32.totalorder %s716_s29, %s5808_s5  ;;  %s5812_s7 = scalar_lea.vmem %s716_s29, 32 }
 0x2e4   :  { %p5813_p0 = scmp.lt.s32.totalorder %s716_s29, %s716_s29  ;;  %p5814_p1 = scmp.lt.s32.totalorder %s5812_s7, %s5808_s5 }
 0x2e6   :  { %p5815_p2 = por %p5814_p1, %p5813_p0 }
 0x2e8   :  { %698 = dma.hbm_to_vmem [thread:$0]  %s7015_s4, 16, %s696_s28, [#allocation75]  }
 0x2e9   :  { %p5816_p3 = pnand %p5815_p2, %p5809_p13 }
 0x2eb   :  { %5819 = shalt.err (!%p5816_p3)
}
 0x2ec   :  { %s7016_s13 = sld [smem:[#allocation167_spill]]  ;;  %s6105_s17 = smov [#allocation82]  }
 0x2ed   :  { %s737_s19 = sshll.u32 %s6105_s17, 4  ;;  %s6106_s10 = smov [#allocation85]   ;;  %s738_s19 = int_to_ptr.vmem [resolvable:$true] %s737_s19 }
 0x2ee   :  { %s757_s30 = sshll.u32 %s6106_s10, 4  ;;  %s5828_s11 = scalar_lea.vmem %s738_s19, 16  ;;  %s758_s30 = int_to_ptr.vmem [resolvable:$true] %s757_s30 }
 0x2ef   :  { %p5829_p4 = scmp.ne.s32.totalorder %s738_s19, %s5828_s11  ;;  %s5832_s21 = scalar_lea.vmem %s738_s19, 32 }
 0x2f0   :  { %p5833_p5 = scmp.lt.s32.totalorder %s738_s19, %s738_s19  ;;  %p5834_p6 = scmp.lt.s32.totalorder %s5832_s21, %s5828_s11 }
 0x2f2   :  { %718 = dma.hbm_to_vmem [thread:$0]  %s7016_s13, 16, %s716_s29, [#allocation78]  }
 0x2f3   :  { %p5835_p7 = por %p5834_p6, %p5833_p5 }
 0x2f5   :  { %p5836_p8 = pnand %p5835_p7, %p5829_p4 }
 0x2f7   :  { %5839 = shalt.err (!%p5836_p8)
}
 0x2f8   :  { %s7017_s9 = sld [smem:[#allocation169_spill]]  ;;  %s5848_s15 = scalar_lea.vmem %s758_s30, 16 }
 0x2f9   :  { %p5849_p9 = scmp.ne.s32.totalorder %s758_s30, %s5848_s15  ;;  %s5852_s16 = scalar_lea.vmem %s758_s30, 32 }
 0x2fa   :  { %p5853_p10 = scmp.lt.s32.totalorder %s758_s30, %s758_s30  ;;  %p5854_p11 = scmp.lt.s32.totalorder %s5852_s16, %s5848_s15 }
 0x2fc   :  { %p5855_p12 = por %p5854_p11, %p5853_p10 }
 0x2fe   :  { %740 = dma.hbm_to_vmem [thread:$0]  %s7017_s9, 16, %s738_s19, [#allocation81]  }
 0x2ff   :  { %p5856_p13 = pnand %p5855_p12, %p5849_p9 }
 0x301   :  { %5859 = shalt.err (!%p5856_p13)
}
 0x302   :  { %s7018_s18 = sld [smem:[#allocation171_spill]]  ;;  %s6107_s8 = smov [#allocation88]  }
 0x303   :  { %s779_s12 = sshll.u32 %s6107_s8, 4  ;;  %s6108_s22 = smov [#allocation89]   ;;  %s780_s12 = int_to_ptr.vmem [resolvable:$true] %s779_s12 }
 0x304   :  { %s791_s20 = sshll.u32 %s6108_s22, 4  ;;  %s5868_s27 = scalar_lea.vmem %s780_s12, 16  ;;  %s792_s20 = int_to_ptr.vmem [resolvable:$true] %s791_s20 }
 0x305   :  { %p5869_p0 = scmp.ne.s32.totalorder %s780_s12, %s5868_s27  ;;  %s5872_s6 = scalar_lea.vmem %s780_s12, 32 }
 0x306   :  { %p5873_p1 = scmp.lt.s32.totalorder %s780_s12, %s780_s12  ;;  %p5874_p2 = scmp.lt.s32.totalorder %s5872_s6, %s5868_s27 }
 0x308   :  { %760 = dma.hbm_to_vmem [thread:$0]  %s7018_s18, 16, %s758_s30, [#allocation84]  }
 0x309   :  { %p5875_p3 = por %p5874_p2, %p5873_p1 }
 0x30b   :  { %p5876_p4 = pnand %p5875_p3, %p5869_p0 }
 0x30d   :  { %5879 = shalt.err (!%p5876_p4)
}
 0x30e   :  { %782 = dma.hbm_to_vmem [thread:$0]  %s6443_s24, 16, %s780_s12, [#allocation87]  }
 0x30f   :  { %s5888_s23 = scalar_lea.vmem %s792_s20, 16  ;;  %s5892_s26 = scalar_lea.vmem %s792_s20, 32 }
 0x310   :  { %p5889_p5 = scmp.ne.s32.totalorder %s792_s20, %s5888_s23  ;;  %p5893_p6 = scmp.lt.s32.totalorder %s792_s20, %s792_s20 }
 0x311   :  { %p5894_p7 = scmp.lt.s32.totalorder %s5892_s26, %s5888_s23 }
 0x313   :  { %p5895_p8 = por %p5894_p7, %p5893_p6 }
 0x315   :  { %p5896_p9 = pnand %p5895_p8, %p5889_p5 }
 0x317   :  { %5899 = shalt.err (!%p5896_p9)
}
 0x318   :  { %794 = dma.hbm_to_vmem [thread:$0]  %s6453_s14, 16, %s792_s20, [#allocation90]  }
 0x319   :  { %5920 = dma.done.wait [#allocation3], 16  }
 0x31a   :  { %5921 = vsyncadd [#allocation3], 4294967280 }
 0x31b   :  { %5922 = dma.done.wait [#allocation6], 272  }
 0x31c   :  { %5923 = vsyncadd [#allocation6], 4294967024 }
 0x31d   :  { %5924 = dma.done.wait [#allocation9], 32  }
 0x31e   :  { %5925 = vsyncadd [#allocation9], 4294967264 }
 0x31f   :  { %5926 = dma.done.wait [#allocation12], 272  }
 0x320   :  { %5927 = vsyncadd [#allocation12], 4294967024 }
 0x321   :  { %5928 = dma.done.wait [#allocation15], 272  }
 0x322   :  { %5929 = vsyncadd [#allocation15], 4294967024 }
 0x323   :  { %5930 = dma.done.wait [#allocation18], 32  }
 0x324   :  { %5931 = vsyncadd [#allocation18], 4294967264 }
 0x325   :  { %5932 = dma.done.wait [#allocation21], 32  }
 0x326   :  { %5933 = vsyncadd [#allocation21], 4294967264 }
 0x327   :  { %5934 = dma.done.wait [#allocation24], 32  }
 0x328   :  { %5935 = vsyncadd [#allocation24], 4294967264 }
 0x329   :  { %5936 = dma.done.wait [#allocation27], 32  }
 0x32a   :  { %5937 = vsyncadd [#allocation27], 4294967264 }
 0x32b   :  { %5938 = dma.done.wait [#allocation30], 272  }
 0x32c   :  { %5939 = vsyncadd [#allocation30], 4294967024 }
 0x32d   :  { %5940 = dma.done.wait [#allocation33], 32  }
 0x32e   :  { %5941 = vsyncadd [#allocation33], 4294967264 }
 0x32f   :  { %5942 = dma.done.wait [#allocation36], 1040  }
 0x330   :  { %5943 = vsyncadd [#allocation36], 4294966256 }
 0x331   :  { %5944 = dma.done.wait [#allocation39], 32  }
 0x332   :  { %5945 = vsyncadd [#allocation39], 4294967264 }
 0x333   :  { %5946 = dma.done.wait [#allocation42], 32  }
 0x334   :  { %5947 = vsyncadd [#allocation42], 4294967264 }
 0x335   :  { %5948 = dma.done.wait [#allocation45], 1040  }
 0x336   :  { %5949 = vsyncadd [#allocation45], 4294966256 }
 0x337   :  { %5950 = dma.done.wait [#allocation48], 32  }
 0x338   :  { %5951 = vsyncadd [#allocation48], 4294967264 }
 0x339   :  { %5952 = dma.done.wait [#allocation51], 272  }
 0x33a   :  { %5953 = vsyncadd [#allocation51], 4294967024 }
 0x33b   :  { %5954 = dma.done.wait [#allocation54], 32  }
 0x33c   :  { %5955 = vsyncadd [#allocation54], 4294967264 }
 0x33d   :  { %5956 = dma.done.wait [#allocation57], 1040  }
 0x33e   :  { %5957 = vsyncadd [#allocation57], 4294966256 }
 0x33f   :  { %5958 = dma.done.wait [#allocation60], 32  }
 0x340   :  { %5959 = vsyncadd [#allocation60], 4294967264 }
 0x341   :  { %5960 = dma.done.wait [#allocation63], 1040  }
 0x342   :  { %5961 = vsyncadd [#allocation63], 4294966256 }
 0x343   :  { %5962 = dma.done.wait [#allocation66], 32  }
 0x344   :  { %5963 = vsyncadd [#allocation66], 4294967264 }
 0x345   :  { %5964 = dma.done.wait [#allocation69], 1040  }
 0x346   :  { %5965 = vsyncadd [#allocation69], 4294966256 }
 0x347   :  { %5966 = dma.done.wait [#allocation72], 32  }
 0x348   :  { %5967 = vsyncadd [#allocation72], 4294967264 }
 0x349   :  { %5968 = dma.done.wait [#allocation75], 1040  }
 0x34a   :  { %5969 = vsyncadd [#allocation75], 4294966256 }
 0x34b   :  { %5970 = dma.done.wait [#allocation78], 32  }
 0x34c   :  { %5971 = vsyncadd [#allocation78], 4294967264 }
 0x34d   :  { %5972 = dma.done.wait [#allocation81], 1040  }
 0x34e   :  { %5973 = vsyncadd [#allocation81], 4294966256 }
 0x34f   :  { %5974 = dma.done.wait [#allocation84], 32  }
 0x350   :  { %5975 = vsyncadd [#allocation84], 4294967264 }
 0x351   :  { %5976 = dma.done.wait [#allocation87], 1040  }
 0x352   :  { %5977 = vsyncadd [#allocation87], 4294966256 }
 0x353   :  { %5978 = dma.done.wait [#allocation90], 16  }
 0x354   :  { %5979 = vsyncadd [#allocation90], 4294967280  ;;  %vm1167_vm0 = vcmask 1043456   ;;  %v6109_v0 = vmov 0.0   ;;  %v6110_v1 = vmov 0   ;;  %s7019_s14 = sld [smem:[#allocation125_spill]]  ;;  %v1127_v3 = vlaneseq }
 0x355   :  { %4211 = vmatprep.subr.bf16.mxu0 %v6109_v0  ;;  %v1169_v2 = vsel %vm1167_vm0, 1065369472, %v6110_v1  ;;  %vm6111_vm1 = vmmov 0   ;;  %s7020_s24 = sld [smem:[#allocation126_spill]]  ;;  %4219 = vmatprep.subr.bf16.mxu1 %v6109_v0  ;;  %v6112_v6 = vmov 1065369472  }
 0x356   :  { %4215 = vmatprep.mubr.msk.bf16.mxu0 %vm6111_vm1, %v6109_v0  ;;  %4212 = vmatpush3.bf16.msra.mxu0 %v1169_v2  ;;  %v6563_v4 = vshrl.u32 %v1127_v3, 7  ;;  %vm1163_vm2 = vcmask 195584   ;;  %s7021_s28 = sld [smem:[#allocation127_spill]]  ;;  %v974_v24 = vld [vmem:[#allocation7 + $0x8] sm:$0x1]  ;;  %vm1364_vm8 = vcmask 1040384  }
 0x357   :  { %4213 = vmatprep.subr.bf16.mxu0 %v6109_v0  ;;  %4220 = vmatpush3.bf16.msra.mxu1 %v1169_v2  ;;  %v1009_v25 = vld [vmem:[#allocation31 + $0x8] sm:$0x1]  ;;  %v973_v26 = vld [vmem:[#allocation7] sm:$0xff]  ;;  %s7022_s1 = sld [smem:[#allocation123_spill]]  ;;  %vm1256_vm9 = vcmask 130048   ;;  %v1008_v29 = vld [vmem:[#allocation31] sm:$0xff] }
 0x358   :  { %4221 = vmatprep.subr.bf16.mxu1 %v6109_v0  ;;  %4223 = vmatprep.mubr.msk.bf16.mxu1 %vm6111_vm1, %v6109_v0  ;;  %v1129_v5 = vadd.s32 8, %v6563_v4  ;;  %v6602_v30 = vld [vmem:[#allocation11 + $0x8] sm:$0x1]  ;;  %vm1312_vm10 = vcmask 72704   ;;  %s7023_s29 = sld [smem:[#allocation124_spill]]  ;;  %s6113_s0 = smov 64  }
 0x359   :  { %4691 = vset.pattern.permute.xlu0 %v6110_v1  ;;  %4692 = vset.pattern.permute.xlu1 %v6110_v1  ;;  %vm1850_vm11 = vcmask 97280   ;;  %vm1693_vm12 = vcmask 523264   ;;  %s7024_s2 = sld [smem:[#allocation134_spill]]  ;;  %vm3411_vm13 = vcmask 517120   ;;  %vm3839_vm14 = vcmask 41984  }
 0x35a   :  { %4214 = vmatpush3.bf16.msra.mxu0 %v6112_v6  ;;  %v3963_v7 = vld [vmem:[%s7019_s14] ss:$0 sm:$0xff]  ;;  %s7025_s4 = sld [smem:[#allocation137_spill]] }
 0x35b   :  { %4222 = vmatpush3.bf16.msra.mxu1 %v6112_v6  ;;  %v3966_v8 = vld [vmem:[%s7020_s24] ss:$0 sm:$0xff]  ;;  %4227 = vmatprep.subr.bf16.mxu0 %v6109_v0  ;;  %vm1135_vm3 = vcmp.eq.s32.totalorder %v6563_v4, %v3963_v7  ;;  %vm1136_vm4 = vcmp.eq.s32.totalorder %v1129_v5, %v3963_v7  ;;  %s7026_s5 = sld [smem:[#allocation143_spill]] }
 0x35c   :  { %vm1147_vm5 = vcmp.eq.s32.totalorder %v6563_v4, %v3966_v8  ;;  %vm1148_vm6 = vcmp.eq.s32.totalorder %v1129_v5, %v3966_v8  ;;  %v3964_v9 = vsel %vm1135_vm3, 1.0, %v6109_v0  ;;  %v3965_v10 = vsel %vm1136_vm4, 1.0, %v6109_v0  ;;  %v3969_v23 = vld [vmem:[%s7021_s28] ss:$0 sm:$0xff]  ;;  %4233 = vmatprep.subr.msk.mxu1 %vm1364_vm8, %v974_v24 }
 0x35d   :  { %v3967_v11 = vsel %vm1147_vm5, 1.0, %v6109_v0  ;;  %v3968_v12 = vsel %vm1148_vm6, 1.0, %v6109_v0  ;;  %v1141_v13 = vpack.c.bf16 %v3965_v10, %v3964_v9  ;;  %vm1159_vm7 = vcmp.eq.s32.totalorder %v6563_v4, %v3969_v23  ;;  %v1122_v32 = vld [vmem:[%s7022_s1] sm:$0xff]  ;;  %v1123_v35 = vld [vmem:[%s7022_s1 + $0x8] sm:$0xff] }
 0x35e   :  { %v6578_v14 = vpack.c.bf16 %v3968_v12, %v3967_v11  ;;  %v3970_v27 = vsel %vm1159_vm7, 1.0, %v6109_v0 }
 0x35f   :  { %4216 = vmatmul.mubr.msk.bf16.vlgmr.msra.gmra.mxu0 %vm1163_vm2, %v1141_v13  ;;  %v6596_v28 = vpack.c.bf16 %v3970_v27, %v3970_v27 }
 0x360   :  { %4224 = vmatmul.mubr.msk.bf16.vlgmr.msra.gmra.mxu1 %vm1163_vm2, %v6578_v14  ;;  %4228 = vmatpush3.bf16.msra.mxu0 %v6112_v6 }
 0x361   :  { %4229 = vmatprep.mubr.msk.bf16.mxu0 %vm6111_vm1, %v6109_v0  ;;  %4247 = vmatprep.subr.msk.mxu0 %vm1364_vm8, %v1009_v25 }
 0x362   :  { %4234 = vmatpush3.msk.msra.mxu1 %vm1364_vm8, %v974_v24 }
 0x363   :  { %4235 = vmatprep.subr.mxu1 %v973_v26 }
 0x364   :  { %4236 = vmatpush3.msra.mxu1 %v973_v26 }
 0x365   :  { %4240 = vmatprep.subr.msk.mxu1 %vm1364_vm8, %v6602_v30 }
 0x367   :  { %4230 = vmatmul.mubr.msk.bf16.vlgmr.msra.gmra.mxu0 %vm1256_vm9, %v6596_v28 }
 0x368   :  { %4248 = vmatpush3.msk.msra.mxu0 %vm1364_vm8, %v1009_v25 }
 0x369   :  { %4249 = vmatprep.subr.mxu0 %v1008_v29 }
 0x36a   :  { %4250 = vmatpush3.msra.mxu0 %v1008_v29 }
 0x41f   :  { %v1205_v15 = vpop.f32.mrf.mxu0 }
 0x420   :  { %v6585_v16 = vpop.f32.mrf.mxu1  ;;  %1302 = vperm.xlu0 %4691, %v1205_v15  }
 0x421   :  { %1445 = vperm.xlu1 %4692, %v6585_v16   ;;  %v4217_v17 = vpop.f32.mrf.mxu0 }
 0x422   :  { %v4225_v18 = vpop.f32.mrf.mxu1 }
 0x423   :  { %v1208_v19 = vpop.f32.mrf.mxu0 }
 0x424   :  { %v6588_v20 = vpop.f32.mrf.mxu1  ;;  %1307 = vperm.xlu0 %4691, %v1208_v19  }
 0x425   :  { %1450 = vperm.xlu1 %4692, %v6588_v20   ;;  %v4218_v21 = vpop.f32.mrf.mxu0 }
 0x426   :  { %v4226_v22 = vpop.f32.mrf.mxu1 }
 0x448   :  { %1697 = vxpose.xlu1.c.b16.start.end [1/1] (short) (narrow) %v1141_v13, 32 }
 0x49b   :  { %v1303_v31 = vpop.permute.xlu0 %1302 }
 0x49c   :  { %v1446_v33 = vpop.permute.xlu1 %1445  ;;  %v1310_v36 = vmul.f32 %v1303_v31, %v1122_v32 }
 0x49d   :  { %v1453_v34 = vmul.f32 %v1446_v33, %v1122_v32 }
 0x49e   :  { %v1313_v42 = vsel %vm1312_vm10, %v1310_v36, 0.0 }
 0x49f   :  { %v1308_v37 = vpop.permute.xlu0 %1307  ;;  %v1455_v40 = vsel %vm1312_vm10, %v1453_v34, 0.0 }
 0x4a0   :  { %v1451_v38 = vpop.permute.xlu1 %1450  ;;  %v1311_v39 = vmul.f32 %v1308_v37, %v1123_v35 }
 0x4a1   :  { %v1454_v41 = vmul.f32 %v1451_v38, %v1123_v35 }
 0x4a2   :  { %v1314_v43 = vsel %vm1312_vm10, %v1311_v39, 0.0  ;;  %v1006_v39 = vld [vmem:[#allocation28] sm:$0x1] }
 0x4a3   :  { %v1456_v44 = vsel %vm1312_vm10, %v1454_v41, 0.0  ;;  %v1315_v45 = vadd.f32 %v1314_v43, %v1313_v42  ;;  %v975_v41 = vld [vmem:[#allocation8] sm:$0x1] }
 0x4a4   :  { %v1457_v46 = vadd.f32 %v1456_v44, %v1455_v40  ;;  %v6617_v40 = vsub.s32 0, %v6563_v4  ;;  %v3978_v4 = vld [vmem:[#allocation10] ss:$0 sm:$0xff] }
 0x4a5   :  { %v1316_v47 = vrot.slane %v1315_v45, 4 }
 0x4a6   :  { %v1458_v48 = vrot.slane %v1457_v46, 4 }
 0x4a7   :  { %v1317_v49 = vadd.f32 %v1316_v47, %v1315_v45 }
 0x4a8   :  { %v1459_v50 = vadd.f32 %v1458_v48, %v1457_v46 }
 0x4a9   :  { %v1318_v51 = vrot.slane %v1317_v49, 2 }
 0x4aa   :  { %v1460_v52 = vrot.slane %v1459_v50, 2 }
 0x4ab   :  { %v1319_v53 = vadd.f32 %v1318_v51, %v1317_v49  ;;  %v3974_v49 = vld [vmem:[#allocation5] ss:$0 sm:$0xff] }
 0x4ac   :  { %v1461_v54 = vadd.f32 %v1460_v52, %v1459_v50  ;;  %v3982_v50 = vld [vmem:[#allocation29] ss:$0 sm:$0xff] }
 0x4ad   :  { %v1320_v55 = vrot.slane %v1319_v53, 1 }
 0x4ae   :  { %v1462_v56 = vrot.slane %v1461_v54, 1 }
 0x4af   :  { %v1321_v57 = vadd.f32 %v1320_v55, %v1319_v53 }
 0x4b0   :  { %v1463_v58 = vadd.f32 %v1462_v56, %v1461_v54 }
 0x4b1   :  { %v1322_v59 = vmul.f32 0.041666668, %v1321_v57 }
 0x4b2   :  { %v1464_v60 = vmul.f32 0.041666668, %v1463_v58 }
 0x4b3   :  { %v1323_v61 = vsub.f32 %v1122_v32, %v1322_v59  ;;  %v1324_v62 = vsub.f32 %v1123_v35, %v1322_v59 }
 0x4b4   :  { %v1465_v63 = vsub.f32 %v1122_v32, %v1464_v60  ;;  %v1466_v1 = vsub.f32 %v1123_v35, %v1464_v60 }
 0x4b5   :  { %v1325_v2 = vmul.f32 %v1323_v61, %v1323_v61  ;;  %v1326_v3 = vmul.f32 %v1324_v62, %v1324_v62 }
 0x4b6   :  { %v1467_v5 = vmul.f32 %v1465_v63, %v1465_v63  ;;  %v1468_v6 = vmul.f32 %v1466_v1, %v1466_v1 }
 0x4b7   :  { %v1327_v7 = vmul.f32 %v1325_v2, %v1303_v31  ;;  %v1328_v8 = vmul.f32 %v1326_v3, %v1308_v37 }
 0x4b8   :  { %v1469_v9 = vmul.f32 %v1467_v5, %v1446_v33  ;;  %v1470_v10 = vmul.f32 %v1468_v6, %v1451_v38  ;;  %v971_v38 = vld [vmem:[#allocation2] sm:$0x1]  ;;  %v977_v5 = vld [vmem:[#allocation11] sm:$0xff] }
 0x4b9   :  { %v1329_v11 = vsel %vm1312_vm10, %v1327_v7, 0.0  ;;  %v1330_v12 = vsel %vm1312_vm10, %v1328_v8, 0.0  ;;  %v1705_v7 = vpop.trf.xlu1 }
 0x4ba   :  { %v1471_v13 = vsel %vm1312_vm10, %v1469_v9, 0.0  ;;  %v1472_v15 = vsel %vm1312_vm10, %v1470_v10, 0.0  ;;  %v1331_v17 = vadd.f32 %v1330_v12, %v1329_v11 }
 0x4bb   :  { %v1473_v18 = vadd.f32 %v1472_v15, %v1471_v13 }
 0x4bc   :  { %v1332_v19 = vrot.slane %v1331_v17, 4 }
 0x4bd   :  { %v1474_v21 = vrot.slane %v1473_v18, 4 }
 0x4be   :  { %v1333_v22 = vadd.f32 %v1332_v19, %v1331_v17  ;;  %v1124_v17 = vld [vmem:[%s7023_s29] sm:$0xff] }
 0x4bf   :  { %v1475_v23 = vadd.f32 %v1474_v21, %v1473_v18  ;;  %v1125_v18 = vld [vmem:[%s7023_s29 + $0x8] sm:$0xff]  ;;  %v1851_v19 = vsel %vm1850_vm11, %v1124_v17, 0.0 }
 0x4c0   :  { %v1334_v24 = vrot.slane %v1333_v22, 2  ;;  %v1852_v21 = vsel %vm1850_vm11, %v1125_v18, 0.0 }
 0x4c1   :  { %v1476_v25 = vrot.slane %v1475_v23, 2 }
 0x4c2   :  { %v1335_v26 = vadd.f32 %v1334_v24, %v1333_v22  ;;  %v1126_v22 = vld [vmem:[%s7023_s29 + $0x10] sm:$0xff] }
 0x4c3   :  { %v1477_v27 = vadd.f32 %v1476_v25, %v1475_v23  ;;  %v1853_v23 = vadd.f32 %v1852_v21, %v1851_v19  ;;  %v1854_v24 = vsel %vm1850_vm11, %v1126_v22, 0.0  ;;  %v990_v19 = vld [vmem:[%s7024_s2 + $0x20] sm:$0xff]  ;;  %v989_v21 = vld [vmem:[%s7024_s2 + $0x18] sm:$0xff] }
 0x4c4   :  { %v1336_v29 = vrot.slane %v1335_v26, 1 }
 0x4c5   :  { %v1478_v31 = vrot.slane %v1477_v27, 1  ;;  %v1855_v25 = vadd.f32 %v1854_v24, %v1853_v23  ;;  %v987_v23 = vld [vmem:[%s7024_s2 + $0x8] sm:$0xff]  ;;  %v986_v24 = vld [vmem:[%s7024_s2] sm:$0xff] }
 0x4c6   :  { %v1337_v32 = vadd.f32 %v1336_v29, %v1335_v26 }
 0x4c7   :  { %v1479_v33 = vadd.f32 %v1478_v31, %v1477_v27  ;;  %v1856_v26 = vrot.slane %v1855_v25, 4 }
 0x4c8   :  { %v1338_v34 = vmul.f32 0.041666668, %v1337_v32 }
 0x4c9   :  { %v1480_v35 = vmul.f32 0.041666668, %v1479_v33  ;;  %v1857_v27 = vadd.f32 %v1856_v26, %v1855_v25 }
 0x4ca   :  { %v1339_v36 = vadd.f32 1e-05, %v1338_v34 }
 0x4cb   :  { %v1481_v37 = vadd.f32 1e-05, %v1480_v35  ;;  %v1858_v29 = vrot.slane %v1857_v27, 2 }
 0x4cc   :  { %4698 = vrsqrt.f32 %v1339_v36 }
 0x4cd   :  { %4700 = vrsqrt.f32 %v1481_v37  ;;  %v1859_v31 = vadd.f32 %v1858_v29, %v1857_v27  ;;  %v2816_v29 = vmax.f32 %v6585_v16, 1.0 }
 0x4cf   :  { %v1860_v32 = vrot.slane %v1859_v31, 1 }
 0x4d1   :  { %v1861_v33 = vadd.f32 %v1860_v32, %v1859_v31  ;;  %v3990_v32 = vld [vmem:[#allocation17] ss:$0 sm:$0xff] }
 0x4d3   :  { %v1863_v34 = vmul.f32 0.041666668, %v1861_v33 }
 0x4d5   :  { %v1864_v35 = vsub.f32 %v1124_v17, %v1863_v34  ;;  %v1865_v36 = vsub.f32 %v1125_v18, %v1863_v34  ;;  %v1866_v37 = vsub.f32 %v1126_v22, %v1863_v34  ;;  %v992_v17 = vld [vmem:[%s7024_s2 + $0x30] sm:$0xff]  ;;  %v991_v18 = vld [vmem:[%s7024_s2 + $0x28] sm:$0xff] }
 0x4d6   :  { %v988_v22 = vld [vmem:[%s7024_s2 + $0x10] sm:$0xff] }
 0x4d9   :  { %v4699_v42 = vpop.eup %4698 }
 0x4da   :  { %v4701_v43 = vpop.eup %4700  ;;  %v1341_v44 = vmul.f32 %v4699_v42, %v971_v38  ;;  %v1584_v45 = vmul.f32 %v4699_v42, %v1006_v39  ;;  %v1867_v38 = vmul.f32 %v1864_v35, %v1864_v35  ;;  %v1868_v39 = vmul.f32 %v1865_v36, %v1865_v36 }
 0x4db   :  { %v1483_v46 = vmul.f32 %v4701_v43, %v975_v41  ;;  %v1869_v41 = vmul.f32 %v1866_v37, %v1866_v37 }
 0x4dc   :  { %v1346_v47 = vrot.slane %v1341_v44, %v6617_v40  ;;  %v1589_v48 = vrot.slane %v1584_v45, %v6617_v40  ;;  %v1870_v42 = vsel %vm1850_vm11, %v1867_v38, 0.0  ;;  %v1871_v43 = vsel %vm1850_vm11, %v1868_v39, 0.0 }
 0x4dd   :  { %v1488_v51 = vrot.slane %v1483_v46, %v6617_v40  ;;  %v1872_v44 = vadd.f32 %v1871_v43, %v1870_v42  ;;  %v1873_v45 = vsel %vm1850_vm11, %v1869_v41, 0.0  ;;  %v2817_v42 = vmax.f32 %v6588_v20, 1.0 }
 0x4de   :  { %v1348_v52 = vmul.f32 %v1346_v47, %v1323_v61  ;;  %v1349_v53 = vmul.f32 %v1346_v47, %v1324_v62  ;;  %v1591_v54 = vmul.f32 %v1589_v48, %v1323_v61  ;;  %v1592_v55 = vmul.f32 %v1589_v48, %v1324_v62  ;;  %v6630_v61 = vpop.f32.mrf.mxu0 }
 0x4df   :  { %v1491_v56 = vmul.f32 %v1488_v51, %v1466_v1  ;;  %v1490_v57 = vmul.f32 %v1488_v51, %v1465_v63  ;;  %v1874_v46 = vadd.f32 %v1873_v45, %v1872_v44  ;;  %v3403_v34 = vmax.f32 %v6630_v61, 1.0 }
 0x4e0   :  { %v1356_v58 = vadd.f32 %v3974_v49, %v1348_v52  ;;  %v1357_v59 = vadd.f32 %v3974_v49, %v1349_v53  ;;  %v1599_v60 = vadd.f32 %v3982_v50, %v1591_v54  ;;  %v1600_v2 = vadd.f32 %v3982_v50, %v1592_v55  ;;  %v4231_v62 = vpop.f32.mrf.mxu0 }
 0x4e1   :  { %v1498_v3 = vadd.f32 %v3978_v4, %v1490_v57  ;;  %v1499_v6 = vadd.f32 %v3978_v4, %v1491_v56  ;;  %v1875_v47 = vrot.slane %v1874_v46, 4  ;;  %v979_v4 = vld [vmem:[#allocation13] sm:$0x1]  ;;  %v982_v62 = vld [vmem:[#allocation16 + $0x8] sm:$0xf] }
 0x4e2   :  { %4237 = vmatprep.mubr.msk.f32.mxu1 %vm1312_vm10, %v1356_v58  ;;  %4251 = vmatprep.mubr.msk.f32.mxu0 %vm1312_vm10, %v1599_v60  ;;  %v1297_v63 = vpop.f32.mrf.mxu0 }
 0x4e3   :  { %4238 = vmatmul.mubr.msk.f32.vlgmr.msra.gmra.mxu1 %vm1312_vm10, %v1357_v59  ;;  %4252 = vmatmul.mubr.msk.f32.vlgmr.msra.gmra.mxu0 %vm1312_vm10, %v1600_v2  ;;  %v1876_v48 = vadd.f32 %v1875_v47, %v1874_v46  ;;  %v981_v63 = vld [vmem:[#allocation16] sm:$0xff] }
 0x4e4   :  { %4241 = vmatpush3.msk.msra.mxu1 %vm1364_vm8, %v6602_v30  ;;  %4244 = vmatprep.mubr.msk.f32.mxu1 %vm1312_vm10, %v1498_v3  ;;  %v4232_v1 = vpop.f32.mrf.mxu0 }
 0x4e5   :  { %4242 = vmatprep.subr.mxu1 %v977_v5  ;;  %v1877_v49 = vrot.slane %v1876_v48, 2 }
 0x4e6   :  { %4243 = vmatpush3.msra.mxu1 %v977_v5 }
 0x4e7   :  { %4245 = vmatmul.mubr.msk.f32.vlgmr.msra.gmra.mxu1 %vm1312_vm10, %v1499_v6  ;;  %v1878_v50 = vadd.f32 %v1877_v49, %v1876_v48  ;;  %v1706_v6 = vpop.trf.xlu1 }
 0x4e8   :  { %4256 = vmatprep.mubr.msk.bf16.mxu1 %vm1256_vm9, %v1705_v7  ;;  %v3991_v7 = vld [vmem:[#allocation14] ss:$0 sm:$0xff] }
 0x4e9   :  { %v1879_v51 = vrot.slane %v1878_v50, 1 }
 0x4eb   :  { %v1880_v52 = vadd.f32 %v1879_v51, %v1878_v50 }
 0x4ed   :  { %v1881_v53 = vmul.f32 0.041666668, %v1880_v52 }
 0x4ef   :  { %v1882_v54 = vadd.f32 1e-05, %v1881_v53 }
 0x4f1   :  { %4702 = vrsqrt.f32 %v1882_v54 }
 0x4fe   :  { %v4703_v55 = vpop.eup %4702 }
 0x4ff   :  { %v1884_v59 = vmul.f32 %v4703_v55, %v979_v4 }
 0x501   :  { %v1889_v5 = vrot.slane %v1884_v59, %v6617_v40 }
 0x503   :  { %v1891_v1 = vmul.f32 %v1889_v5, %v1864_v35 }
 0x5a3   :  { %v4239_v8 = vpop.f32.mrf.mxu1  ;;  %v4253_v9 = vpop.f32.mrf.mxu0 }
 0x5a5   :  { %v1434_v10 = vpop.f32.mrf.mxu1  ;;  %v1676_v30 = vpop.f32.mrf.mxu0 }
 0x5a6   :  { %v4693_v11 = vpack.i.bf16 %v4253_v9, %v1676_v30  ;;  %v1900_v9 = vadd.f32 %v3991_v7, %v1891_v1 }
 0x5a7   :  { %v4246_v12 = vpop.f32.mrf.mxu1 }
 0x5a8   :  { %4694 = vrot.lane.b32.xlu0 %v4693_v11, %s6113_s0 }
 0x5a9   :  { %v1575_v13 = vpop.f32.mrf.mxu1 }
 0x5aa   :  { %v1767_v15 = vpack.c.bf16 %v4246_v12, %v1575_v13  ;;  %v1893_v12 = vmul.f32 %v1889_v5, %v1866_v37 }
 0x5ac   :  { %4260 = vmatprep.subr.bf16.mxu0 %v1767_v15  ;;  %v1902_v13 = vadd.f32 %v3991_v7, %v1893_v12 }
 0x5ad   :  { %4261 = vmatpush3.bf16.msra.mxu0 %v1767_v15  ;;  %v993_v15 = vld [vmem:[%s7024_s2 + $0x38] sm:$0xff] }
 0x5ae   :  { %4279 = vmatprep.subr.mxu0 %v6109_v0 }
 0x5c6   :  { %1768 = vxpose.xlu0.c.b16.start.end [1/1] (short) (narrow) %v6578_v14, 32 }
 0x61a   :  { %v4695_v56 = vpop.permute.xlu0 %4694 }
 0x61b   :  { %v4697_v57 = vunpack.i.h.bf16 %v4695_v56  ;;  %v4696_v58 = vunpack.i.l.bf16 %v4695_v56 }
 0x61d   :  { %v1694_v60 = vsel %vm1693_vm12, %v1434_v10, %v4696_v58  ;;  %v1695_v2 = vsel %vm1693_vm12, %v4239_v8, %v4697_v57  ;;  %v1892_v10 = vmul.f32 %v1889_v5, %v1865_v36 }
 0x61e   :  { %v1696_v3 = vpack.c.bf16 %v1695_v2, %v1694_v60 }
 0x61f   :  { %v1901_v11 = vadd.f32 %v3991_v7, %v1892_v10 }
 0x620   :  { %4254 = vmatprep.subr.bf16.mxu1 %v1696_v3 }
 0x621   :  { %4255 = vmatpush3.bf16.msra.mxu1 %v1696_v3 }
 0x622   :  { %4266 = vmatprep.subr.mxu1 %v6109_v0 }
 0x624   :  { %4257 = vmatmul.mubr.msk.bf16.vlgmr.msra.gmra.mxu1 %vm1256_vm9, %v1706_v6 }
 0x625   :  { %4267 = vmatpush3.msk.msra.mxu1 %vm1167_vm0, %v982_v62  ;;  %4270 = vmatprep.mubr.msk.f32.mxu1 %vm6111_vm1, %v6109_v0 }
 0x626   :  { %4268 = vmatprep.subr.mxu1 %v6109_v0 }
 0x627   :  { %4269 = vmatpush3.msra.mxu1 %v981_v63 }
 0x628   :  { %v1776_v8 = vpop.trf.xlu0  ;;  %4304 = vmatprep.subr.mxu1 %v6109_v0 }
 0x629   :  { %4262 = vmatprep.mubr.msk.bf16.mxu0 %vm1256_vm9, %v1776_v8 }
 0x62c   :  { %v1777_v30 = vpop.trf.xlu0  ;;  %4271 = vmatmul.mubr.msk.f32.vlgmr.msra.gmra.mxu1 %vm1850_vm11, %v1900_v9 }
 0x62d   :  { %4263 = vmatmul.mubr.msk.bf16.vlgmr.msra.gmra.mxu0 %vm1256_vm9, %v1777_v30  ;;  %4273 = vmatprep.mubr.msk.f32.mxu1 %vm6111_vm1, %v6109_v0 }
 0x62e   :  { %4295 = vmatprep.mubr.msk.f32.mxu0 %vm6111_vm1, %v6109_v0  ;;  %4280 = vmatpush3.msra.mxu0 %v993_v15 }
 0x62f   :  { %4281 = vmatprep.subr.mxu0 %v6109_v0 }
 0x630   :  { %4274 = vmatmul.mubr.msk.f32.gmra.mxu1 %vm1850_vm11, %v1901_v11  ;;  %4282 = vmatpush3.msra.mxu0 %v992_v17 }
 0x631   :  { %4276 = vmatprep.mubr.msk.f32.mxu1 %vm6111_vm1, %v6109_v0  ;;  %4283 = vmatprep.subr.mxu0 %v6109_v0 }
 0x632   :  { %4284 = vmatpush3.msra.mxu0 %v991_v18 }
 0x633   :  { %4285 = vmatprep.subr.mxu0 %v6109_v0 }
 0x634   :  { %4277 = vmatmul.mubr.msk.f32.gmra.mxu1 %vm1850_vm11, %v1902_v13  ;;  %4286 = vmatpush3.msra.mxu0 %v990_v19 }
 0x635   :  { %4320 = vmatprep.mubr.msk.f32.mxu1 %vm6111_vm1, %v6109_v0  ;;  %4287 = vmatprep.subr.mxu0 %v6109_v0 }
 0x636   :  { %4288 = vmatpush3.msra.mxu0 %v989_v21 }
 0x637   :  { %4289 = vmatprep.subr.mxu0 %v6109_v0 }
 0x638   :  { %4290 = vmatpush3.msra.mxu0 %v988_v22 }
 0x639   :  { %4291 = vmatprep.subr.mxu0 %v6109_v0 }
 0x63a   :  { %4292 = vmatpush3.msra.mxu0 %v987_v23 }
 0x63b   :  { %4293 = vmatprep.subr.mxu0 %v6109_v0 }
 0x63c   :  { %4294 = vmatpush3.msra.mxu0 %v986_v24 }
 0x63d   :  { %4329 = vmatprep.subr.mxu0 %v6109_v0 }
 0x6e4   :  { %v4258_v25 = vpop.f32.mrf.mxu1 }
 0x6e5   :  { %v1846_v16 = vadd.f32 %v4258_v25, %v3990_v32 }
 0x6e6   :  { %v1753_v26 = vpop.f32.mrf.mxu1 }
 0x6e7   :  { %2311 = vrot.lane.b32.xlu0 %v1753_v26, %s6113_s0  ;;  %v1844_v36 = vadd.f32 %v3990_v32, %v1753_v26 }
 0x6e8   :  { %v4259_v27 = vpop.f32.mrf.mxu1 }
 0x6ea   :  { %v1756_v31 = vpop.f32.mrf.mxu1 }
 0x6eb   :  { %2820 = vperm.xlu0 %4691, %v2816_v29   ;;  %2313 = vrot.lane.b32.xlu1 %v1756_v31, %s6113_s0  ;;  %v1845_v44 = vadd.f32 %v3990_v32, %v1756_v31  ;;  %v984_v31 = vld [vmem:[#allocation19] sm:$0x1] }
 0x6ec   :  { %v1981_v33 = vpop.f32.mrf.mxu1 }
 0x6ed   :  { %v4264_v35 = vpop.f32.mrf.mxu0 }
 0x6ee   :  { %v4272_v37 = vpop.f32.mrf.mxu1  ;;  %v1849_v47 = vadd.f32 %v4264_v35, %v1846_v16  ;;  %v3996_v35 = vld [vmem:[#allocation20] ss:$0 sm:$0xff]  ;;  %v1004_v16 = vld [vmem:[%s7025_s4 + $0x38] sm:$0xff] }
 0x6ef   :  { %v1824_v38 = vpop.f32.mrf.mxu0  ;;  %3406 = vperm.xlu0 %4691, %v3403_v34   ;;  %2315 = vrot.lane.b32.xlu1 %v4258_v25, %s6113_s0 }
 0x6f0   :  { %v1847_v39 = vadd.f32 %v1844_v36, %v1824_v38  ;;  %v1986_v41 = vpop.f32.mrf.mxu1  ;;  %4305 = vmatpush3.msra.mxu1 %v1004_v16 }
 0x6f1   :  { %v4265_v43 = vpop.f32.mrf.mxu0  ;;  %4306 = vmatprep.subr.mxu1 %v6109_v0 }
 0x6f2   :  { %v1995_v45 = vadd.f32 %v1981_v33, %v1847_v39  ;;  %v4275_v46 = vpop.f32.mrf.mxu1  ;;  %v1003_v43 = vld [vmem:[%s7025_s4 + $0x30] sm:$0xff] }
 0x6f3   :  { %v1827_v48 = vpop.f32.mrf.mxu0  ;;  %2825 = vperm.xlu1 %4692, %v2817_v42   ;;  %4307 = vmatpush3.msra.mxu1 %v1003_v43  ;;  %v1000_v46 = vld [vmem:[%s7025_s4 + $0x18] sm:$0xff] }
 0x6f4   :  { %v1998_v61 = vmul.f32 0.0, %v1995_v45  ;;  %v1848_v49 = vadd.f32 %v1845_v44, %v1827_v48  ;;  %v1991_v50 = vpop.f32.mrf.mxu1  ;;  %4308 = vmatprep.subr.mxu1 %v6109_v0  ;;  %v1002_v44 = vld [vmem:[%s7025_s4 + $0x28] sm:$0xff] }
 0x6f5   :  { %v1997_v51 = vadd.f32 %v1991_v50, %v1849_v47  ;;  %4309 = vmatpush3.msra.mxu1 %v1002_v44  ;;  %v999_v47 = vld [vmem:[%s7025_s4 + $0x10] sm:$0xff]  ;;  %v998_v48 = vld [vmem:[%s7025_s4 + $0x8] sm:$0xff] }
 0x6f6   :  { %v1996_v52 = vadd.f32 %v1986_v41, %v1848_v49  ;;  %v4278_v53 = vpop.f32.mrf.mxu1  ;;  %v2001_v55 = vmax.f32 %v1995_v45, %v1998_v61  ;;  %4310 = vmatprep.subr.mxu1 %v6109_v0  ;;  %v1001_v45 = vld [vmem:[%s7025_s4 + $0x20] sm:$0xff] }
 0x6f7   :  { %v2000_v54 = vmul.f32 0.0, %v1997_v51  ;;  %4311 = vmatpush3.msra.mxu1 %v1001_v45  ;;  %v997_v61 = vld [vmem:[%s7025_s4] sm:$0xff] }
 0x6f8   :  { %v1999_v4 = vmul.f32 0.0, %v1996_v52  ;;  %v2004_v20 = vsel %vm1693_vm12, %v2001_v55, 0.0  ;;  %4312 = vmatprep.subr.mxu1 %v6109_v0  ;;  %v3997_v49 = vld [vmem:[#allocation22] ss:$0 sm:$0xff] }
 0x6f9   :  { %v2003_v57 = vmax.f32 %v1997_v51, %v2000_v54  ;;  %4313 = vmatpush3.msra.mxu1 %v1000_v46 }
 0x6fa   :  { %v2002_v56 = vmax.f32 %v1996_v52, %v1999_v4  ;;  %4314 = vmatprep.subr.mxu1 %v6109_v0 }
 0x6fb   :  { %v2007_v60 = vsel %vm1693_vm12, %v2003_v57, 0.0  ;;  %4315 = vmatpush3.msra.mxu1 %v999_v47 }
 0x6fc   :  { %v2005_v58 = vsel %vm1693_vm12, %v2002_v56, 0.0  ;;  %4316 = vmatprep.subr.mxu1 %v6109_v0 }
 0x6fd   :  { %v2006_v59 = vadd.f32 %v2005_v58, %v2004_v20  ;;  %4317 = vmatpush3.msra.mxu1 %v998_v48  ;;  %v1019_v48 = vld [vmem:[#allocation35 + $0x38] sm:$0xff] }
 0x6fe   :  { %4318 = vmatprep.subr.mxu1 %v6109_v0 }
 0x6ff   :  { %v2008_v2 = vadd.f32 %v2007_v60, %v2006_v59  ;;  %4319 = vmatpush3.msra.mxu1 %v997_v61  ;;  %v1018_v61 = vld [vmem:[#allocation35 + $0x30] sm:$0xff] }
 0x700   :  { %4354 = vmatprep.subr.mxu1 %v6109_v0 }
 0x701   :  { %v2009_v3 = vrot.slane %v2008_v2, 4 }
 0x703   :  { %v2010_v5 = vadd.f32 %v2009_v3, %v2008_v2 }
 0x705   :  { %v2011_v6 = vrot.slane %v2010_v5, 2 }
 0x707   :  { %v2012_v62 = vadd.f32 %v2011_v6, %v2010_v5 }
 0x709   :  { %v2013_v63 = vrot.slane %v2012_v62, 1 }
 0x70b   :  { %v2014_v1 = vadd.f32 %v2013_v63, %v2012_v62 }
 0x70d   :  { %v2015_v7 = vmul.f32 0.041666668, %v2014_v1 }
 0x70f   :  { %v2016_v8 = vsub.f32 %v2001_v55, %v2015_v7  ;;  %v2017_v9 = vsub.f32 %v2002_v56, %v2015_v7  ;;  %v2018_v10 = vsub.f32 %v2003_v57, %v2015_v7 }
 0x711   :  { %v2019_v30 = vmul.f32 %v2016_v8, %v2016_v8  ;;  %v2020_v11 = vmul.f32 %v2017_v9, %v2017_v9  ;;  %v2021_v12 = vmul.f32 %v2018_v10, %v2018_v10 }
 0x713   :  { %v2022_v13 = vsel %vm1693_vm12, %v2019_v30, 0.0  ;;  %v2023_v15 = vsel %vm1693_vm12, %v2020_v11, 0.0  ;;  %v2025_v18 = vsel %vm1693_vm12, %v2021_v12, 0.0 }
 0x714   :  { %v2024_v17 = vadd.f32 %v2023_v15, %v2022_v13 }
 0x716   :  { %v2026_v19 = vadd.f32 %v2025_v18, %v2024_v17 }
 0x718   :  { %v2027_v21 = vrot.slane %v2026_v19, 4 }
 0x71a   :  { %v2028_v22 = vadd.f32 %v2027_v21, %v2026_v19 }
 0x71c   :  { %v2029_v23 = vrot.slane %v2028_v22, 2 }
 0x71e   :  { %v2030_v24 = vadd.f32 %v2029_v23, %v2028_v22 }
 0x720   :  { %v2031_v25 = vrot.slane %v2030_v24, 1 }
 0x722   :  { %v2032_v26 = vadd.f32 %v2031_v25, %v2030_v24 }
 0x724   :  { %v2033_v27 = vmul.f32 0.041666668, %v2032_v26 }
 0x726   :  { %v2034_v29 = vadd.f32 1e-05, %v2033_v27 }
 0x728   :  { %4704 = vrsqrt.f32 %v2034_v29 }
 0x735   :  { %v4705_v32 = vpop.eup %4704 }
 0x736   :  { %v2036_v33 = vmul.f32 %v4705_v32, %v984_v31 }
 0x738   :  { %v2041_v34 = vrot.slane %v2036_v33, %v6617_v40 }
 0x73a   :  { %v2043_v36 = vmul.f32 %v2041_v34, %v2016_v8  ;;  %v2044_v38 = vmul.f32 %v2041_v34, %v2017_v9  ;;  %v2045_v39 = vmul.f32 %v2041_v34, %v2018_v10 }
 0x73c   :  { %v2052_v37 = vadd.f32 %v3996_v35, %v2043_v36  ;;  %v2053_v41 = vadd.f32 %v3996_v35, %v2044_v38  ;;  %v2054_v42 = vadd.f32 %v3996_v35, %v2045_v39 }
 0x73e   :  { %4296 = vmatmul.mubr.msk.f32.vlgmr.msra.gmra.mxu0 %vm1693_vm12, %v2052_v37  ;;  %v995_v37 = vld [vmem:[#allocation23] sm:$0x1] }
 0x73f   :  { %4298 = vmatprep.mubr.msk.f32.mxu0 %vm6111_vm1, %v6109_v0  ;;  %4330 = vmatpush3.msra.mxu0 %v1019_v48  ;;  %v1030_v48 = vld [vmem:[%s7026_s5 + $0x38] sm:$0xff] }
 0x740   :  { %4331 = vmatprep.subr.mxu0 %v6109_v0 }
 0x741   :  { %4332 = vmatpush3.msra.mxu0 %v1018_v61  ;;  %v1029_v61 = vld [vmem:[%s7026_s5 + $0x30] sm:$0xff] }
 0x742   :  { %4299 = vmatmul.mubr.msk.f32.gmra.mxu0 %vm1693_vm12, %v2053_v41  ;;  %4333 = vmatprep.subr.mxu0 %v6109_v0 }
 0x743   :  { %4301 = vmatprep.mubr.msk.f32.mxu0 %vm6111_vm1, %v6109_v0 }
 0x746   :  { %4302 = vmatmul.mubr.msk.f32.gmra.mxu0 %vm1693_vm12, %v2054_v42  ;;  %v4001_v42 = vld [vmem:[#allocation25] ss:$0 sm:$0xff] }
 0x747   :  { %4345 = vmatprep.mubr.msk.f32.mxu0 %vm6111_vm1, %v6109_v0 }
 0x7fe   :  { %v2136_v50 = vpop.f32.mrf.mxu0 }
 0x7ff   :  { %v2137_v51 = vadd.f32 %v3997_v49, %v2136_v50  ;;  %v1016_v50 = vld [vmem:[#allocation35 + $0x20] sm:$0xff] }
 0x800   :  { %v4297_v52 = vpop.f32.mrf.mxu0 }
 0x801   :  { %v2150_v54 = vmul.f32 0.0, %v2137_v51  ;;  %v1014_v52 = vld [vmem:[#allocation35 + $0x10] sm:$0xff] }
 0x802   :  { %v2141_v53 = vpop.f32.mrf.mxu0 }
 0x803   :  { %v2142_v55 = vadd.f32 %v3997_v49, %v2141_v53  ;;  %v2153_v20 = vmax.f32 %v2137_v51, %v2150_v54  ;;  %v1015_v51 = vld [vmem:[#allocation35 + $0x18] sm:$0xff]  ;;  %v1013_v53 = vld [vmem:[#allocation35 + $0x8] sm:$0xff]  ;;  %v1012_v54 = vld [vmem:[#allocation35] sm:$0xff] }
 0x804   :  { %v4300_v4 = vpop.f32.mrf.mxu0 }
 0x805   :  { %v2151_v56 = vmul.f32 0.0, %v2142_v55  ;;  %v2156_v5 = vsel %vm1693_vm12, %v2153_v20, 0.0  ;;  %v4002_v4 = vld [vmem:[#allocation26] ss:$0 sm:$0xff] }
 0x806   :  { %v2146_v57 = vpop.f32.mrf.mxu0 }
 0x807   :  { %v2154_v58 = vmax.f32 %v2142_v55, %v2151_v56  ;;  %v2147_v59 = vadd.f32 %v3997_v49, %v2146_v57  ;;  %v1017_v49 = vld [vmem:[#allocation35 + $0x28] sm:$0xff] }
 0x808   :  { %v4303_v60 = vpop.f32.mrf.mxu0  ;;  %4334 = vmatpush3.msra.mxu0 %v1017_v49  ;;  %v1028_v49 = vld [vmem:[%s7026_s5 + $0x28] sm:$0xff] }
 0x809   :  { %v2157_v2 = vsel %vm1693_vm12, %v2154_v58, 0.0  ;;  %v2152_v3 = vmul.f32 0.0, %v2147_v59  ;;  %4335 = vmatprep.subr.mxu0 %v6109_v0 }
 0x80a   :  { %v2158_v62 = vadd.f32 %v2157_v2, %v2156_v5  ;;  %4336 = vmatpush3.msra.mxu0 %v1016_v50  ;;  %v1027_v50 = vld [vmem:[%s7026_s5 + $0x20] sm:$0xff] }
 0x80b   :  { %v2155_v6 = vmax.f32 %v2147_v59, %v2152_v3  ;;  %4337 = vmatprep.subr.mxu0 %v6109_v0 }
 0x80c   :  { %4338 = vmatpush3.msra.mxu0 %v1015_v51  ;;  %v1026_v51 = vld [vmem:[%s7026_s5 + $0x18] sm:$0xff] }
 0x80d   :  { %v2159_v63 = vsel %vm1693_vm12, %v2155_v6, 0.0  ;;  %4339 = vmatprep.subr.mxu0 %v6109_v0 }
 0x80e   :  { %v2160_v1 = vadd.f32 %v2159_v63, %v2158_v62  ;;  %4340 = vmatpush3.msra.mxu0 %v1014_v52  ;;  %v1025_v52 = vld [vmem:[%s7026_s5 + $0x10] sm:$0xff] }
 0x80f   :  { %4341 = vmatprep.subr.mxu0 %v6109_v0 }
 0x810   :  { %v2161_v7 = vrot.slane %v2160_v1, 4  ;;  %4342 = vmatpush3.msra.mxu0 %v1013_v53  ;;  %v1024_v53 = vld [vmem:[%s7026_s5 + $0x8] sm:$0xff] }
 0x811   :  { %4343 = vmatprep.subr.mxu0 %v6109_v0 }
 0x812   :  { %v2162_v8 = vadd.f32 %v2161_v7, %v2160_v1  ;;  %4344 = vmatpush3.msra.mxu0 %v1012_v54  ;;  %v1023_v54 = vld [vmem:[%s7026_s5] sm:$0xff] }
 0x813   :  { %4379 = vmatprep.subr.mxu0 %v6109_v0 }
 0x814   :  { %v2163_v9 = vrot.slane %v2162_v8, 2 }
 0x816   :  { %v2164_v10 = vadd.f32 %v2163_v9, %v2162_v8 }
 0x818   :  { %v2165_v30 = vrot.slane %v2164_v10, 1 }
 0x81a   :  { %v2166_v11 = vadd.f32 %v2165_v30, %v2164_v10 }
 0x81c   :  { %v2167_v12 = vmul.f32 0.041666668, %v2166_v11 }
 0x81e   :  { %v2168_v13 = vsub.f32 %v2153_v20, %v2167_v12  ;;  %v2169_v15 = vsub.f32 %v2154_v58, %v2167_v12  ;;  %v2170_v17 = vsub.f32 %v2155_v6, %v2167_v12 }
 0x820   :  { %v2171_v18 = vmul.f32 %v2168_v13, %v2168_v13  ;;  %v2172_v19 = vmul.f32 %v2169_v15, %v2169_v15  ;;  %v2173_v21 = vmul.f32 %v2170_v17, %v2170_v17 }
 0x822   :  { %v2174_v22 = vsel %vm1693_vm12, %v2171_v18, 0.0  ;;  %v2175_v23 = vsel %vm1693_vm12, %v2172_v19, 0.0  ;;  %v2177_v25 = vsel %vm1693_vm12, %v2173_v21, 0.0 }
 0x823   :  { %v2176_v24 = vadd.f32 %v2175_v23, %v2174_v22 }
 0x825   :  { %v2178_v26 = vadd.f32 %v2177_v25, %v2176_v24 }
 0x827   :  { %v2179_v27 = vrot.slane %v2178_v26, 4 }
 0x829   :  { %v2180_v29 = vadd.f32 %v2179_v27, %v2178_v26 }
 0x82b   :  { %v2181_v31 = vrot.slane %v2180_v29, 2 }
 0x82d   :  { %v2182_v32 = vadd.f32 %v2181_v31, %v2180_v29 }
 0x82f   :  { %v2183_v33 = vrot.slane %v2182_v32, 1 }
 0x831   :  { %v2184_v34 = vadd.f32 %v2183_v33, %v2182_v32 }
 0x833   :  { %v2185_v35 = vmul.f32 0.041666668, %v2184_v34 }
 0x835   :  { %v2186_v36 = vadd.f32 1e-05, %v2185_v35 }
 0x837   :  { %4706 = vrsqrt.f32 %v2186_v36 }
 0x844   :  { %v4707_v38 = vpop.eup %4706 }
 0x845   :  { %v2188_v39 = vmul.f32 %v4707_v38, %v995_v37  ;;  %v1010_v37 = vld [vmem:[#allocation32] sm:$0x1] }
 0x847   :  { %v2193_v41 = vrot.slane %v2188_v39, %v6617_v40 }
 0x849   :  { %v2195_v16 = vmul.f32 %v2193_v41, %v2168_v13  ;;  %v2196_v44 = vmul.f32 %v2193_v41, %v2169_v15  ;;  %v2197_v45 = vmul.f32 %v2193_v41, %v2170_v17 }
 0x84b   :  { %v2204_v43 = vadd.f32 %v4001_v42, %v2195_v16  ;;  %v2205_v46 = vadd.f32 %v4001_v42, %v2196_v44  ;;  %v2206_v47 = vadd.f32 %v4001_v42, %v2197_v45  ;;  %v4007_v42 = vld [vmem:[#allocation34] ss:$0 sm:$0xff] }
 0x84d   :  { %4321 = vmatmul.mubr.msk.f32.vlgmr.msra.gmra.mxu1 %vm1693_vm12, %v2204_v43 }
 0x84e   :  { %4323 = vmatprep.mubr.msk.f32.mxu1 %vm6111_vm1, %v6109_v0  ;;  %4355 = vmatpush3.msra.mxu1 %v1030_v48 }
 0x84f   :  { %4356 = vmatprep.subr.mxu1 %v6109_v0 }
 0x850   :  { %4357 = vmatpush3.msra.mxu1 %v1029_v61  ;;  %v1021_v61 = vld [vmem:[#allocation38] sm:$0x1] }
 0x851   :  { %4324 = vmatmul.mubr.msk.f32.gmra.mxu1 %vm1693_vm12, %v2205_v46  ;;  %4358 = vmatprep.subr.mxu1 %v6109_v0 }
 0x852   :  { %4326 = vmatprep.mubr.msk.f32.mxu1 %vm6111_vm1, %v6109_v0  ;;  %4359 = vmatpush3.msra.mxu1 %v1028_v49 }
 0x853   :  { %4360 = vmatprep.subr.mxu1 %v6109_v0 }
 0x854   :  { %4361 = vmatpush3.msra.mxu1 %v1027_v50 }
 0x855   :  { %4327 = vmatmul.mubr.msk.f32.gmra.mxu1 %vm1693_vm12, %v2206_v47  ;;  %4362 = vmatprep.subr.mxu1 %v6109_v0 }
 0x856   :  { %4370 = vmatprep.mubr.msk.f32.mxu1 %vm6111_vm1, %v6109_v0  ;;  %4363 = vmatpush3.msra.mxu1 %v1026_v51 }
 0x857   :  { %4364 = vmatprep.subr.mxu1 %v6109_v0 }
 0x858   :  { %4365 = vmatpush3.msra.mxu1 %v1025_v52  ;;  %v4011_v52 = vld [vmem:[#allocation40] ss:$0 sm:$0xff] }
 0x859   :  { %4366 = vmatprep.subr.mxu1 %v6109_v0 }
 0x85a   :  { %4367 = vmatpush3.msra.mxu1 %v1024_v53 }
 0x85b   :  { %4368 = vmatprep.subr.mxu1 %v6109_v0 }
 0x85c   :  { %4369 = vmatpush3.msra.mxu1 %v1023_v54 }
 0x85d   :  { %4404 = vmatprep.subr.bf16.mxu1 %v6109_v0 }
 0x90d   :  { %v2288_v55 = vpop.f32.mrf.mxu1 }
 0x90e   :  { %v2289_v20 = vadd.f32 %v4002_v4, %v2288_v55  ;;  %v4006_v55 = vld [vmem:[#allocation37] ss:$0 sm:$0xff] }
 0x90f   :  { %v4322_v56 = vpop.f32.mrf.mxu1 }
 0x910   :  { %v2323_v3 = vsel %vm1693_vm12, %v2289_v20, 0.0  ;;  %v2314_v56 = vpop.permute.xlu1 %2313 }
 0x911   :  { %v2293_v57 = vpop.f32.mrf.mxu1 }
 0x912   :  { %v2294_v58 = vadd.f32 %v4002_v4, %v2293_v57 }
 0x913   :  { %v4325_v59 = vpop.f32.mrf.mxu1 }
 0x914   :  { %v2324_v60 = vsel %vm1693_vm12, %v2294_v58, 0.0 }
 0x915   :  { %v2298_v2 = vpop.f32.mrf.mxu1  ;;  %v2325_v6 = vadd.f32 %v2324_v60, %v2323_v3  ;;  %v2321_v60 = vadd.f32 %v4006_v55, %v2314_v56 }
 0x916   :  { %v2299_v5 = vadd.f32 %v4002_v4, %v2298_v2  ;;  %v2312_v4 = vpop.permute.xlu0 %2311  ;;  %v2316_v2 = vpop.permute.xlu1 %2315 }
 0x917   :  { %v4328_v62 = vpop.f32.mrf.mxu1  ;;  %v2320_v57 = vadd.f32 %v4006_v55, %v2312_v4 }
 0x918   :  { %v2326_v63 = vsel %vm1693_vm12, %v2299_v5, 0.0 }
 0x919   :  { %v2327_v1 = vadd.f32 %v2326_v63, %v2325_v6  ;;  %v2322_v63 = vadd.f32 %v4006_v55, %v2316_v2  ;;  %v1037_v2 = vld [vmem:[#allocation46 + $0x18] sm:$0xff] }
 0x91b   :  { %v2328_v7 = vrot.slane %v2327_v1, 4 }
 0x91d   :  { %v2329_v8 = vadd.f32 %v2328_v7, %v2327_v1 }
 0x91f   :  { %v2330_v9 = vrot.slane %v2329_v8, 2 }
 0x921   :  { %v2331_v10 = vadd.f32 %v2330_v9, %v2329_v8 }
 0x923   :  { %v2332_v30 = vrot.slane %v2331_v10, 1 }
 0x925   :  { %v2333_v11 = vadd.f32 %v2332_v30, %v2331_v10 }
 0x927   :  { %v2334_v12 = vmul.f32 0.041666668, %v2333_v11 }
 0x929   :  { %v2335_v13 = vsub.f32 %v2289_v20, %v2334_v12  ;;  %v2336_v15 = vsub.f32 %v2294_v58, %v2334_v12  ;;  %v2337_v17 = vsub.f32 %v2299_v5, %v2334_v12 }
 0x92b   :  { %v2338_v18 = vmul.f32 %v2335_v13, %v2335_v13  ;;  %v2339_v19 = vmul.f32 %v2336_v15, %v2336_v15  ;;  %v2340_v21 = vmul.f32 %v2337_v17, %v2337_v17 }
 0x92d   :  { %v2341_v22 = vsel %vm1693_vm12, %v2338_v18, 0.0  ;;  %v2342_v23 = vsel %vm1693_vm12, %v2339_v19, 0.0  ;;  %v2344_v25 = vsel %vm1693_vm12, %v2340_v21, 0.0 }
 0x92e   :  { %v2343_v24 = vadd.f32 %v2342_v23, %v2341_v22 }
 0x930   :  { %v2345_v26 = vadd.f32 %v2344_v25, %v2343_v24 }
 0x932   :  { %v2346_v27 = vrot.slane %v2345_v26, 4 }
 0x934   :  { %v2347_v29 = vadd.f32 %v2346_v27, %v2345_v26 }
 0x936   :  { %v2348_v31 = vrot.slane %v2347_v29, 2 }
 0x938   :  { %v2349_v32 = vadd.f32 %v2348_v31, %v2347_v29 }
 0x93a   :  { %v2350_v33 = vrot.slane %v2349_v32, 1 }
 0x93c   :  { %v2351_v34 = vadd.f32 %v2350_v33, %v2349_v32 }
 0x93e   :  { %v2352_v35 = vmul.f32 0.041666668, %v2351_v34 }
 0x940   :  { %v2353_v36 = vadd.f32 1e-05, %v2352_v35 }
 0x942   :  { %4708 = vrsqrt.f32 %v2353_v36 }
 0x94f   :  { %v4709_v38 = vpop.eup %4708 }
 0x950   :  { %v2355_v39 = vmul.f32 %v4709_v38, %v1010_v37 }
 0x952   :  { %v2360_v41 = vrot.slane %v2355_v39, %v6617_v40 }
 0x954   :  { %v2362_v16 = vmul.f32 %v2360_v41, %v2335_v13  ;;  %v2363_v44 = vmul.f32 %v2360_v41, %v2336_v15  ;;  %v2364_v45 = vmul.f32 %v2360_v41, %v2337_v17 }
 0x956   :  { %v2371_v43 = vadd.f32 %v4007_v42, %v2362_v16  ;;  %v2372_v46 = vadd.f32 %v4007_v42, %v2363_v44  ;;  %v2373_v47 = vadd.f32 %v4007_v42, %v2364_v45 }
 0x958   :  { %4346 = vmatmul.mubr.msk.f32.vlgmr.msra.gmra.mxu0 %vm1693_vm12, %v2371_v43 }
 0x959   :  { %4348 = vmatprep.mubr.msk.f32.mxu0 %vm6111_vm1, %v6109_v0 }
 0x95c   :  { %4349 = vmatmul.mubr.msk.f32.gmra.mxu0 %vm1693_vm12, %v2372_v46 }
 0x95d   :  { %4351 = vmatprep.mubr.msk.f32.mxu0 %vm6111_vm1, %v6109_v0 }
 0x960   :  { %4352 = vmatmul.mubr.msk.f32.gmra.mxu0 %vm1693_vm12, %v2373_v47 }
 0x961   :  { %4395 = vmatprep.mubr.msk.f32.mxu0 %vm6111_vm1, %v6109_v0 }
 0xa18   :  { %v2449_v20 = vpop.f32.mrf.mxu0 }
 0xa19   :  { %v2463_v58 = vadd.f32 %v2449_v20, %v2320_v57  ;;  %v1041_v20 = vld [vmem:[#allocation46 + $0x38] sm:$0xff] }
 0xa1a   :  { %v4347_v59 = vpop.f32.mrf.mxu0  ;;  %4380 = vmatpush3.msra.mxu0 %v1041_v20 }
 0xa1b   :  { %v2466_v5 = vmul.f32 0.0, %v2463_v58  ;;  %4381 = vmatprep.subr.mxu0 %v6109_v0  ;;  %v1039_v59 = vld [vmem:[#allocation46 + $0x28] sm:$0xff] }
 0xa1c   :  { %v2454_v3 = vpop.f32.mrf.mxu0 }
 0xa1d   :  { %v2464_v6 = vadd.f32 %v2454_v3, %v2321_v60  ;;  %v2469_v8 = vmax.f32 %v2463_v58, %v2466_v5  ;;  %v1040_v58 = vld [vmem:[#allocation46 + $0x30] sm:$0xff]  ;;  %v1038_v60 = vld [vmem:[#allocation46 + $0x20] sm:$0xff]  ;;  %v1035_v5 = vld [vmem:[#allocation46 + $0x8] sm:$0xff] }
 0xa1e   :  { %v4350_v62 = vpop.f32.mrf.mxu0  ;;  %4382 = vmatpush3.msra.mxu0 %v1040_v58  ;;  %v1036_v3 = vld [vmem:[#allocation46 + $0x10] sm:$0xff] }
 0xa1f   :  { %v2467_v1 = vmul.f32 0.0, %v2464_v6  ;;  %v2472_v13 = vsel %vm1693_vm12, %v2469_v8, 0.0  ;;  %4383 = vmatprep.subr.mxu0 %v6109_v0  ;;  %v4012_v62 = vld [vmem:[#allocation41] ss:$0 sm:$0xff] }
 0xa20   :  { %v2459_v7 = vpop.f32.mrf.mxu0  ;;  %4384 = vmatpush3.msra.mxu0 %v1039_v59 }
 0xa21   :  { %v2470_v9 = vmax.f32 %v2464_v6, %v2467_v1  ;;  %v2465_v10 = vadd.f32 %v2459_v7, %v2322_v63  ;;  %4385 = vmatprep.subr.mxu0 %v6109_v0  ;;  %v1034_v6 = vld [vmem:[#allocation46] sm:$0xff] }
 0xa22   :  { %v4353_v30 = vpop.f32.mrf.mxu0  ;;  %4386 = vmatpush3.msra.mxu0 %v1038_v60 }
 0xa23   :  { %v2473_v11 = vsel %vm1693_vm12, %v2470_v9, 0.0  ;;  %v2468_v12 = vmul.f32 0.0, %v2465_v10  ;;  %4387 = vmatprep.subr.mxu0 %v6109_v0 }
 0xa24   :  { %v2474_v17 = vadd.f32 %v2473_v11, %v2472_v13  ;;  %4388 = vmatpush3.msra.mxu0 %v1037_v2 }
 0xa25   :  { %v2471_v15 = vmax.f32 %v2465_v10, %v2468_v12  ;;  %4389 = vmatprep.subr.mxu0 %v6109_v0 }
 0xa26   :  { %4390 = vmatpush3.msra.mxu0 %v1036_v3 }
 0xa27   :  { %v2475_v18 = vsel %vm1693_vm12, %v2471_v15, 0.0  ;;  %4391 = vmatprep.subr.mxu0 %v6109_v0 }
 0xa28   :  { %v2476_v19 = vadd.f32 %v2475_v18, %v2474_v17  ;;  %4392 = vmatpush3.msra.mxu0 %v1035_v5 }
 0xa29   :  { %4393 = vmatprep.subr.mxu0 %v6109_v0 }
 0xa2a   :  { %v2477_v21 = vrot.slane %v2476_v19, 4  ;;  %4394 = vmatpush3.msra.mxu0 %v1034_v6 }
 0xa2c   :  { %v2478_v22 = vadd.f32 %v2477_v21, %v2476_v19 }
 0xa2e   :  { %v2479_v23 = vrot.slane %v2478_v22, 2 }
 0xa30   :  { %v2480_v24 = vadd.f32 %v2479_v23, %v2478_v22 }
 0xa32   :  { %v2481_v25 = vrot.slane %v2480_v24, 1 }
 0xa34   :  { %v2482_v26 = vadd.f32 %v2481_v25, %v2480_v24 }
 0xa36   :  { %v2483_v27 = vmul.f32 0.041666668, %v2482_v26 }
 0xa38   :  { %v2484_v29 = vsub.f32 %v2469_v8, %v2483_v27  ;;  %v2485_v31 = vsub.f32 %v2470_v9, %v2483_v27  ;;  %v2486_v32 = vsub.f32 %v2471_v15, %v2483_v27 }
 0xa3a   :  { %v2487_v33 = vmul.f32 %v2484_v29, %v2484_v29  ;;  %v2488_v34 = vmul.f32 %v2485_v31, %v2485_v31  ;;  %v2489_v35 = vmul.f32 %v2486_v32, %v2486_v32 }
 0xa3c   :  { %v2490_v36 = vsel %vm1693_vm12, %v2487_v33, 0.0  ;;  %v2491_v37 = vsel %vm1693_vm12, %v2488_v34, 0.0  ;;  %v2493_v39 = vsel %vm1693_vm12, %v2489_v35, 0.0 }
 0xa3d   :  { %v2492_v38 = vadd.f32 %v2491_v37, %v2490_v36 }
 0xa3f   :  { %v2494_v41 = vadd.f32 %v2493_v39, %v2492_v38 }
 0xa41   :  { %v2495_v42 = vrot.slane %v2494_v41, 4 }
 0xa43   :  { %v2496_v16 = vadd.f32 %v2495_v42, %v2494_v41 }
 0xa45   :  { %v2497_v43 = vrot.slane %v2496_v16, 2 }
 0xa47   :  { %v2498_v44 = vadd.f32 %v2497_v43, %v2496_v16 }
 0xa49   :  { %v2499_v45 = vrot.slane %v2498_v44, 1 }
 0xa4b   :  { %v2500_v46 = vadd.f32 %v2499_v45, %v2498_v44 }
 0xa4d   :  { %v2501_v47 = vmul.f32 0.041666668, %v2500_v46 }
 0xa4f   :  { %v2502_v48 = vadd.f32 1e-05, %v2501_v47 }
 0xa51   :  { %4710 = vrsqrt.f32 %v2502_v48 }
 0xa5e   :  { %v4711_v49 = vpop.eup %4710 }
 0xa5f   :  { %v2504_v50 = vmul.f32 %v4711_v49, %v1021_v61 }
 0xa61   :  { %v2509_v51 = vrot.slane %v2504_v50, %v6617_v40 }
 0xa63   :  { %v2511_v53 = vmul.f32 %v2509_v51, %v2484_v29  ;;  %v2512_v55 = vmul.f32 %v2509_v51, %v2485_v31  ;;  %v2513_v4 = vmul.f32 %v2509_v51, %v2486_v32 }
 0xa65   :  { %v2520_v54 = vadd.f32 %v4011_v52, %v2511_v53  ;;  %v2521_v56 = vadd.f32 %v4011_v52, %v2512_v55  ;;  %v2522_v57 = vadd.f32 %v4011_v52, %v2513_v4 }
 0xa67   :  { %4371 = vmatmul.mubr.msk.f32.vlgmr.msra.gmra.mxu1 %vm1693_vm12, %v2520_v54  ;;  %v1032_v54 = vld [vmem:[#allocation43] sm:$0x1] }
 0xa68   :  { %4373 = vmatprep.mubr.msk.f32.mxu1 %vm6111_vm1, %v6109_v0 }
 0xa6b   :  { %4374 = vmatmul.mubr.msk.f32.gmra.mxu1 %vm1693_vm12, %v2521_v56 }
 0xa6c   :  { %4376 = vmatprep.mubr.msk.f32.mxu1 %vm6111_vm1, %v6109_v0 }
 0xa6f   :  { %4377 = vmatmul.mubr.msk.f32.gmra.mxu1 %vm1693_vm12, %v2522_v57  ;;  %v4016_v57 = vld [vmem:[#allocation44] ss:$0 sm:$0xff] }
 0xa70   :  { %4408 = vmatprep.mubr.msk.bf16.mxu1 %vm6111_vm1, %v6109_v0 }
 0xb27   :  { %v2604_v63 = vpop.f32.mrf.mxu1 }
 0xb28   :  { %v2605_v1 = vadd.f32 %v4012_v62, %v2604_v63 }
 0xb29   :  { %v4372_v7 = vpop.f32.mrf.mxu1 }
 0xb2a   :  { %v2618_v9 = vmul.f32 0.0, %v2605_v1 }
 0xb2b   :  { %v2609_v8 = vpop.f32.mrf.mxu1 }
 0xb2c   :  { %v2610_v10 = vadd.f32 %v4012_v62, %v2609_v8  ;;  %v2621_v13 = vmax.f32 %v2605_v1, %v2618_v9  ;;  %v4017_v1 = vld [vmem:[#allocation47] ss:$0 sm:$0xff] }
 0xb2d   :  { %v4375_v30 = vpop.f32.mrf.mxu1 }
 0xb2e   :  { %v2619_v11 = vmul.f32 0.0, %v2610_v10  ;;  %v2624_v22 = vsel %vm1693_vm12, %v2621_v13, 0.0 }
 0xb2f   :  { %v2614_v12 = vpop.f32.mrf.mxu1 }
 0xb30   :  { %v2622_v15 = vmax.f32 %v2610_v10, %v2619_v11  ;;  %v2615_v17 = vadd.f32 %v4012_v62, %v2614_v12 }
 0xb31   :  { %v4378_v18 = vpop.f32.mrf.mxu1 }
 0xb32   :  { %v2625_v19 = vsel %vm1693_vm12, %v2622_v15, 0.0  ;;  %v2620_v21 = vmul.f32 0.0, %v2615_v17  ;;  %v4739_v18 = vld [vmem:[%s7022_s1 + $0x8] sm:$0xff] }
 0xb33   :  { %v2626_v24 = vadd.f32 %v2625_v19, %v2624_v22  ;;  %v2833_v19 = vsel %vm1312_vm10, %v4739_v18, 0.0 }
 0xb34   :  { %v2623_v23 = vmax.f32 %v2615_v17, %v2620_v21 }
 0xb36   :  { %v2627_v25 = vsel %vm1693_vm12, %v2623_v23, 0.0 }
 0xb37   :  { %v2628_v26 = vadd.f32 %v2627_v25, %v2626_v24 }
 0xb39   :  { %v2629_v27 = vrot.slane %v2628_v26, 4 }
 0xb3b   :  { %v2630_v29 = vadd.f32 %v2629_v27, %v2628_v26 }
 0xb3d   :  { %v2631_v31 = vrot.slane %v2630_v29, 2 }
 0xb3f   :  { %v2632_v32 = vadd.f32 %v2631_v31, %v2630_v29 }
 0xb41   :  { %v2633_v33 = vrot.slane %v2632_v32, 1 }
 0xb43   :  { %v2634_v34 = vadd.f32 %v2633_v33, %v2632_v32 }
 0xb45   :  { %v2635_v35 = vmul.f32 0.041666668, %v2634_v34 }
 0xb47   :  { %v2636_v36 = vsub.f32 %v2621_v13, %v2635_v35  ;;  %v2637_v37 = vsub.f32 %v2622_v15, %v2635_v35  ;;  %v2638_v38 = vsub.f32 %v2623_v23, %v2635_v35  ;;  %v4738_v15 = vld [vmem:[%s7022_s1] sm:$0xff] }
 0xb48   :  { %v2832_v17 = vsel %vm1312_vm10, %v4738_v15, 0.0 }
 0xb49   :  { %v2639_v39 = vmul.f32 %v2636_v36, %v2636_v36  ;;  %v2640_v41 = vmul.f32 %v2637_v37, %v2637_v37  ;;  %v2641_v42 = vmul.f32 %v2638_v38, %v2638_v38  ;;  %v2834_v21 = vadd.f32 %v2833_v19, %v2832_v17 }
 0xb4b   :  { %v2642_v16 = vsel %vm1693_vm12, %v2639_v39, 0.0  ;;  %v2643_v43 = vsel %vm1693_vm12, %v2640_v41, 0.0  ;;  %v2645_v45 = vsel %vm1693_vm12, %v2641_v42, 0.0  ;;  %v2835_v22 = vrot.slane %v2834_v21, 4 }
 0xb4c   :  { %v2644_v44 = vadd.f32 %v2643_v43, %v2642_v16 }
 0xb4d   :  { %v2836_v23 = vadd.f32 %v2835_v22, %v2834_v21 }
 0xb4e   :  { %v2646_v46 = vadd.f32 %v2645_v45, %v2644_v44  ;;  %v1056_v45 = vld [vmem:[#allocation56 + $0x38] sm:$0xff] }
 0xb4f   :  { %v2837_v24 = vrot.slane %v2836_v23, 2  ;;  %4419 = vmatprep.subr.mxu0 %v1056_v45 }
 0xb50   :  { %v2647_v47 = vrot.slane %v2646_v46, 4 }
 0xb51   :  { %v2838_v25 = vadd.f32 %v2837_v24, %v2836_v23 }
 0xb52   :  { %v2648_v48 = vadd.f32 %v2647_v47, %v2646_v46  ;;  %v1055_v46 = vld [vmem:[#allocation56 + $0x30] sm:$0xff] }
 0xb53   :  { %v2839_v26 = vrot.slane %v2838_v25, 1 }
 0xb54   :  { %v2649_v61 = vrot.slane %v2648_v48, 2 }
 0xb55   :  { %v2840_v27 = vadd.f32 %v2839_v26, %v2838_v25 }
 0xb56   :  { %v2650_v49 = vadd.f32 %v2649_v61, %v2648_v48  ;;  %v1043_v48 = vld [vmem:[#allocation49] sm:$0x1] }
 0xb57   :  { %v2842_v29 = vmul.f32 0.0625, %v2840_v27  ;;  %v1054_v61 = vld [vmem:[#allocation56 + $0x28] sm:$0xff] }
 0xb58   :  { %v2651_v50 = vrot.slane %v2650_v49, 1 }
 0xb59   :  { %v2843_v31 = vsub.f32 %v4738_v15, %v2842_v29  ;;  %v2844_v32 = vsub.f32 %v4739_v18, %v2842_v29 }
 0xb5a   :  { %v2652_v51 = vadd.f32 %v2651_v50, %v2650_v49  ;;  %v1053_v50 = vld [vmem:[#allocation56 + $0x20] sm:$0xff] }
 0xb5b   :  { %v2845_v33 = vmul.f32 %v2843_v31, %v2843_v31  ;;  %v2846_v34 = vmul.f32 %v2844_v32, %v2844_v32 }
 0xb5c   :  { %v2653_v52 = vmul.f32 0.041666668, %v2652_v51 }
 0xb5d   :  { %v2848_v35 = vsel %vm1312_vm10, %v2846_v34, 0.0 }
 0xb5e   :  { %v2654_v53 = vadd.f32 1e-05, %v2653_v52  ;;  %v1052_v52 = vld [vmem:[#allocation56 + $0x18] sm:$0xff] }
 0xb60   :  { %4712 = vrsqrt.f32 %v2654_v53  ;;  %v1046_v53 = vld [vmem:[#allocation52 + $0x8] sm:$0x1] }
 0xb6d   :  { %v4713_v55 = vpop.eup %4712 }
 0xb6e   :  { %v2656_v4 = vmul.f32 %v4713_v55, %v1032_v54  ;;  %v4022_v55 = vld [vmem:[#allocation50] ss:$0 sm:$0xff] }
 0xb70   :  { %v2661_v56 = vrot.slane %v2656_v4, %v6617_v40 }
 0xb72   :  { %v2663_v20 = vmul.f32 %v2661_v56, %v2636_v36  ;;  %v2664_v59 = vmul.f32 %v2661_v56, %v2637_v37  ;;  %v2665_v60 = vmul.f32 %v2661_v56, %v2638_v38  ;;  %v1051_v56 = vld [vmem:[#allocation56 + $0x10] sm:$0xff] }
 0xb74   :  { %v2672_v58 = vadd.f32 %v4016_v57, %v2663_v20  ;;  %v2673_v2 = vadd.f32 %v4016_v57, %v2664_v59  ;;  %v2674_v3 = vadd.f32 %v4016_v57, %v2665_v60  ;;  %v1045_v57 = vld [vmem:[#allocation52] sm:$0xff]  ;;  %v1049_v60 = vld [vmem:[#allocation56] sm:$0xff] }
 0xb75   :  { %v1050_v59 = vld [vmem:[#allocation56 + $0x8] sm:$0xff] }
 0xb76   :  { %4396 = vmatmul.mubr.msk.f32.vlgmr.msra.gmra.mxu0 %vm1693_vm12, %v2672_v58 }
 0xb77   :  { %4398 = vmatprep.mubr.msk.f32.mxu0 %vm6111_vm1, %v6109_v0  ;;  %4420 = vmatpush3.msra.mxu0 %v1056_v45 }
 0xb78   :  { %4421 = vmatprep.subr.mxu0 %v1055_v46 }
 0xb79   :  { %4422 = vmatpush3.msra.mxu0 %v1055_v46 }
 0xb7a   :  { %4399 = vmatmul.mubr.msk.f32.gmra.mxu0 %vm1693_vm12, %v2673_v2  ;;  %4423 = vmatprep.subr.mxu0 %v1054_v61  ;;  %v2821_v2 = vpop.permute.xlu0 %2820 }
 0xb7b   :  { %4401 = vmatprep.mubr.msk.f32.mxu0 %vm6111_vm1, %v6109_v0  ;;  %4424 = vmatpush3.msra.mxu0 %v1054_v61  ;;  %v1065_v61 = vld [vmem:[#allocation62 + $0x28] sm:$0xff] }
 0xb7c   :  { %4425 = vmatprep.subr.mxu0 %v1053_v50 }
 0xb7d   :  { %4426 = vmatpush3.msra.mxu0 %v1053_v50  ;;  %v1063_v50 = vld [vmem:[#allocation62 + $0x18] sm:$0xff] }
 0xb7e   :  { %4402 = vmatmul.mubr.msk.f32.gmra.mxu0 %vm1693_vm12, %v2674_v3  ;;  %4427 = vmatprep.subr.mxu0 %v1052_v52  ;;  %v2826_v3 = vpop.permute.xlu1 %2825 }
 0xb7f   :  { %4428 = vmatpush3.msra.mxu0 %v1052_v52  ;;  %v1061_v52 = vld [vmem:[#allocation62 + $0x8] sm:$0xff] }
 0xb80   :  { %4429 = vmatprep.subr.mxu0 %v1051_v56 }
 0xb81   :  { %4430 = vmatpush3.msra.mxu0 %v1051_v56 }
 0xb82   :  { %4431 = vmatprep.subr.mxu0 %v1050_v59 }
 0xb83   :  { %4432 = vmatpush3.msra.mxu0 %v1050_v59 }
 0xb84   :  { %4433 = vmatprep.subr.mxu0 %v1049_v60 }
 0xb85   :  { %4434 = vmatpush3.msra.mxu0 %v1049_v60 }
 0xc36   :  { %v2756_v5 = vpop.f32.mrf.mxu0 }
 0xc37   :  { %v2757_v12 = vadd.f32 %v4017_v1, %v2756_v5 }
 0xc38   :  { %v4397_v6 = vpop.f32.mrf.mxu0 }
 0xc3a   :  { %v2761_v62 = vpop.f32.mrf.mxu0 }
 0xc3b   :  { %v2762_v30 = vadd.f32 %v4017_v1, %v2761_v62 }
 0xc3c   :  { %v4400_v63 = vpop.f32.mrf.mxu0 }
 0xc3d   :  { %v2770_v13 = vpack.c.bf16 %v2762_v30, %v2757_v12 }
 0xc3e   :  { %v2766_v7 = vpop.f32.mrf.mxu0 }
 0xc3f   :  { %v2767_v8 = vadd.f32 %v4017_v1, %v2766_v7 }
 0xc40   :  { %v4403_v9 = vpop.f32.mrf.mxu0 }
 0xc41   :  { %v2771_v10 = vpack.c.bf16 %v2767_v8, %v2767_v8 }
 0xc43   :  { %v2773_v11 = vsel %vm1167_vm0, %v2771_v10, 0 }
 0xc44   :  { %4405 = vmatpush3.bf16.msra.mxu1 %v2773_v11 }
 0xc45   :  { %4406 = vmatprep.subr.bf16.mxu1 %v6109_v0 }
 0xc48   :  { %4407 = vmatpush3.bf16.msra.mxu1 %v2770_v13 }
 0xc49   :  { %4412 = vmatprep.subr.msk.mxu1 %vm1364_vm8, %v1046_v53 }
 0xc4b   :  { %4409 = vmatmul.mubr.msk.bf16.vlgmr.msra.gmra.mxu1 %vm1163_vm2, %v6578_v14  ;;  %v2847_v14 = vsel %vm1312_vm10, %v2845_v33, 0.0 }
 0xc4c   :  { %v2849_v36 = vadd.f32 %v2848_v35, %v2847_v14  ;;  %4413 = vmatpush3.msk.msra.mxu1 %vm1364_vm8, %v1046_v53  ;;  %v1060_v53 = vld [vmem:[#allocation62] sm:$0xff] }
 0xc4d   :  { %4414 = vmatprep.subr.mxu1 %v1045_v57 }
 0xc4e   :  { %v2850_v37 = vrot.slane %v2849_v36, 4  ;;  %4415 = vmatpush3.msra.mxu1 %v1045_v57 }
 0xc50   :  { %v2851_v38 = vadd.f32 %v2850_v37, %v2849_v36 }
 0xc52   :  { %v2852_v39 = vrot.slane %v2851_v38, 2 }
 0xc54   :  { %v2853_v41 = vadd.f32 %v2852_v39, %v2851_v38  ;;  %v1047_v38 = vld [vmem:[#allocation53] sm:$0x1] }
 0xc56   :  { %v2854_v42 = vrot.slane %v2853_v41, 1 }
 0xc58   :  { %v2855_v16 = vadd.f32 %v2854_v42, %v2853_v41 }
 0xc5a   :  { %v2856_v43 = vmul.f32 0.0625, %v2855_v16  ;;  %v4027_v16 = vld [vmem:[#allocation55] ss:$0 sm:$0xff] }
 0xc5c   :  { %v2857_v44 = vadd.f32 1e-05, %v2856_v43 }
 0xc5e   :  { %4714 = vrsqrt.f32 %v2857_v44 }
 0xc5f   :  { %4716 = vrcp.f32 %v2821_v2 }
 0xc60   :  { %4718 = vrcp.f32 %v2826_v3 }
 0xc6b   :  { %v4715_v47 = vpop.eup %4714 }
 0xc6c   :  { %v2859_v49 = vmul.f32 %v4715_v47, %v1043_v48  ;;  %v4717_v6 = vpop.eup %4716  ;;  %v1067_v47 = vld [vmem:[#allocation62 + $0x38] sm:$0xff]  ;;  %v1066_v48 = vld [vmem:[#allocation62 + $0x30] sm:$0xff] }
 0xc6d   :  { %v4719_v1 = vpop.eup %4718  ;;  %4438 = vmatprep.subr.mxu1 %v1067_v47 }
 0xc6e   :  { %v2864_v51 = vrot.slane %v2859_v49, %v6617_v40  ;;  %v1064_v49 = vld [vmem:[#allocation62 + $0x20] sm:$0xff] }
 0xc70   :  { %v2866_v54 = vmul.f32 %v2864_v51, %v2843_v31  ;;  %v2867_v4 = vmul.f32 %v2864_v51, %v2844_v32  ;;  %v1062_v51 = vld [vmem:[#allocation62 + $0x10] sm:$0xff] }
 0xc72   :  { %v2874_v20 = vadd.f32 %v4022_v55, %v2866_v54  ;;  %v2875_v58 = vadd.f32 %v4022_v55, %v2867_v4  ;;  %v4026_v54 = vld [vmem:[#allocation58] ss:$0 sm:$0xff] }
 0xc74   :  { %4416 = vmatprep.mubr.msk.f32.mxu1 %vm1312_vm10, %v2874_v20 }
 0xc75   :  { %4417 = vmatmul.mubr.msk.f32.vlgmr.msra.gmra.mxu1 %vm1312_vm10, %v2875_v58 }
 0xc76   :  { %4439 = vmatpush3.msra.mxu1 %v1067_v47  ;;  %v1072_v47 = vld [vmem:[#allocation68 + $0x8] sm:$0xff] }
 0xc77   :  { %4440 = vmatprep.subr.mxu1 %v1066_v48 }
 0xc78   :  { %4441 = vmatpush3.msra.mxu1 %v1066_v48  ;;  %v1071_v48 = vld [vmem:[#allocation68] sm:$0xff] }
 0xc79   :  { %4442 = vmatprep.subr.mxu1 %v1065_v61 }
 0xc7a   :  { %4443 = vmatpush3.msra.mxu1 %v1065_v61  ;;  %v4031_v61 = vld [vmem:[#allocation64] ss:$0 sm:$0xff] }
 0xc7b   :  { %4444 = vmatprep.subr.mxu1 %v1064_v49 }
 0xc7c   :  { %4445 = vmatpush3.msra.mxu1 %v1064_v49 }
 0xc7d   :  { %4446 = vmatprep.subr.mxu1 %v1063_v50 }
 0xc7e   :  { %4447 = vmatpush3.msra.mxu1 %v1063_v50 }
 0xc7f   :  { %4448 = vmatprep.subr.mxu1 %v1062_v51 }
 0xc80   :  { %4449 = vmatpush3.msra.mxu1 %v1062_v51 }
 0xc81   :  { %4450 = vmatprep.subr.mxu1 %v1061_v52 }
 0xc82   :  { %4451 = vmatpush3.msra.mxu1 %v1061_v52 }
 0xc83   :  { %4452 = vmatprep.subr.mxu1 %v1060_v53 }
 0xc84   :  { %4453 = vmatpush3.msra.mxu1 %v1060_v53 }
 0xc85   :  { %4476 = vmatprep.subr.bf16.mxu1 %v6109_v0 }
 0xd0b   :  { %v2809_v5 = vpop.f32.mrf.mxu1 }
 0xd0c   :  { %v2829_v63 = vmul.f32 %v4717_v6, %v2809_v5 }
 0xd0d   :  { %v4410_v62 = vpop.f32.mrf.mxu1 }
 0xd0e   :  { %v2968_v10 = vsel %vm1693_vm12, %v2829_v63, 0.0 }
 0xd0f   :  { %v2812_v7 = vpop.f32.mrf.mxu1 }
 0xd10   :  { %v2831_v8 = vmul.f32 %v4719_v1, %v2812_v7 }
 0xd11   :  { %v4411_v9 = vpop.f32.mrf.mxu1 }
 0xd12   :  { %v2969_v30 = vsel %vm1693_vm12, %v2831_v8, 0.0 }
 0xd13   :  { %v2970_v11 = vadd.f32 %v2969_v30, %v2968_v10 }
 0xd15   :  { %v2971_v12 = vrot.slane %v2970_v11, 4 }
 0xd17   :  { %v2972_v13 = vadd.f32 %v2971_v12, %v2970_v11 }
 0xd19   :  { %v2973_v15 = vrot.slane %v2972_v13, 2 }
 0xd1b   :  { %v2974_v17 = vadd.f32 %v2973_v15, %v2972_v13 }
 0xd1d   :  { %v2975_v18 = vrot.slane %v2974_v17, 1 }
 0xd1f   :  { %v2976_v19 = vadd.f32 %v2975_v18, %v2974_v17 }
 0xd21   :  { %v2977_v21 = vmul.f32 0.0625, %v2976_v19 }
 0xd23   :  { %v2978_v22 = vsub.f32 %v2829_v63, %v2977_v21  ;;  %v2979_v23 = vsub.f32 %v2831_v8, %v2977_v21 }
 0xd25   :  { %v2980_v24 = vmul.f32 %v2978_v22, %v2978_v22  ;;  %v2981_v25 = vmul.f32 %v2979_v23, %v2979_v23 }
 0xd27   :  { %v2982_v26 = vsel %vm1693_vm12, %v2980_v24, 0.0  ;;  %v2983_v27 = vsel %vm1693_vm12, %v2981_v25, 0.0 }
 0xd28   :  { %v2984_v29 = vadd.f32 %v2983_v27, %v2982_v26 }
 0xd2a   :  { %v2985_v31 = vrot.slane %v2984_v29, 4 }
 0xd2c   :  { %v2986_v32 = vadd.f32 %v2985_v31, %v2984_v29 }
 0xd2e   :  { %v2987_v33 = vrot.slane %v2986_v32, 2 }
 0xd30   :  { %v2988_v34 = vadd.f32 %v2987_v33, %v2986_v32  ;;  %v1058_v33 = vld [vmem:[#allocation59] sm:$0x1] }
 0xd32   :  { %v2989_v14 = vrot.slane %v2988_v34, 1 }
 0xd34   :  { %v2990_v35 = vadd.f32 %v2989_v14, %v2988_v34 }
 0xd35   :  { %v4418_v55 = vpop.f32.mrf.mxu1 }
 0xd36   :  { %v2991_v36 = vmul.f32 0.0625, %v2990_v35  ;;  %v2967_v4 = vadd.f32 %v4418_v55, %v4026_v54 }
 0xd37   :  { %v2951_v56 = vpop.f32.mrf.mxu1 }
 0xd38   :  { %v2992_v37 = vadd.f32 1e-05, %v2991_v36  ;;  %v2966_v20 = vadd.f32 %v4026_v54, %v2951_v56  ;;  %v4030_v36 = vld [vmem:[#allocation61] ss:$0 sm:$0xff] }
 0xd3a   :  { %4720 = vrsqrt.f32 %v2992_v37 }
 0xd47   :  { %v4721_v39 = vpop.eup %4720 }
 0xd48   :  { %v2994_v41 = vmul.f32 %v4721_v39, %v1047_v38 }
 0xd4a   :  { %v2999_v42 = vrot.slane %v2994_v41, %v6617_v40 }
 0xd4c   :  { %v3001_v43 = vmul.f32 %v2999_v42, %v2978_v22  ;;  %v3002_v44 = vmul.f32 %v2999_v42, %v2979_v23  ;;  %v1078_v42 = vld [vmem:[#allocation68 + $0x38] sm:$0xff] }
 0xd4d   :  { %4457 = vmatprep.subr.mxu0 %v1078_v42 }
 0xd4e   :  { %v3010_v45 = vadd.f32 %v4027_v16, %v3002_v44  ;;  %v3009_v46 = vadd.f32 %v4027_v16, %v3001_v43  ;;  %v1077_v16 = vld [vmem:[#allocation68 + $0x30] sm:$0xff]  ;;  %v1076_v43 = vld [vmem:[#allocation68 + $0x28] sm:$0xff]  ;;  %v1075_v44 = vld [vmem:[#allocation68 + $0x20] sm:$0xff] }
 0xd50   :  { %4435 = vmatprep.mubr.msk.f32.mxu0 %vm1693_vm12, %v3009_v46  ;;  %v1073_v46 = vld [vmem:[#allocation68 + $0x10] sm:$0xff] }
 0xd51   :  { %4436 = vmatmul.mubr.msk.f32.vlgmr.msra.gmra.mxu0 %vm1693_vm12, %v3010_v45  ;;  %v1074_v45 = vld [vmem:[#allocation68 + $0x18] sm:$0xff] }
 0xd52   :  { %4458 = vmatpush3.msra.mxu0 %v1078_v42  ;;  %v1084_v42 = vld [vmem:[#allocation74 + $0x10] sm:$0xff] }
 0xd53   :  { %4459 = vmatprep.subr.mxu0 %v1077_v16 }
 0xd54   :  { %4460 = vmatpush3.msra.mxu0 %v1077_v16  ;;  %v1083_v16 = vld [vmem:[#allocation74 + $0x8] sm:$0xff] }
 0xd55   :  { %4461 = vmatprep.subr.mxu0 %v1076_v43 }
 0xd56   :  { %4462 = vmatpush3.msra.mxu0 %v1076_v43  ;;  %v1082_v43 = vld [vmem:[#allocation74] sm:$0xff] }
 0xd57   :  { %4463 = vmatprep.subr.mxu0 %v1075_v44 }
 0xd58   :  { %4464 = vmatpush3.msra.mxu0 %v1075_v44  ;;  %v3407_v44 = vpop.permute.xlu0 %3406 }
 0xd59   :  { %4465 = vmatprep.subr.mxu0 %v1074_v45 }
 0xd5a   :  { %4466 = vmatpush3.msra.mxu0 %v1074_v45 }
 0xd5b   :  { %4467 = vmatprep.subr.mxu0 %v1073_v46 }
 0xd5c   :  { %4468 = vmatpush3.msra.mxu0 %v1073_v46 }
 0xd5d   :  { %4469 = vmatprep.subr.mxu0 %v1072_v47 }
 0xd5e   :  { %4470 = vmatpush3.msra.mxu0 %v1072_v47 }
 0xd5f   :  { %4471 = vmatprep.subr.mxu0 %v1071_v48 }
 0xd60   :  { %4472 = vmatpush3.msra.mxu0 %v1071_v48 }
 0xd61   :  { %4501 = vmatprep.subr.mxu0 %v6109_v0 }
 0xe11   :  { %v4437_v57 = vpop.f32.mrf.mxu0 }
 0xe12   :  { %v3093_v58 = vadd.f32 %v4437_v57, %v2967_v4 }
 0xe13   :  { %v3083_v59 = vpop.f32.mrf.mxu0 }
 0xe14   :  { %v3095_v60 = vmul.f32 0.0, %v3093_v58  ;;  %v3092_v2 = vadd.f32 %v3083_v59, %v2966_v20 }
 0xe16   :  { %v3097_v3 = vmax.f32 %v3093_v58, %v3095_v60  ;;  %v3094_v5 = vmul.f32 0.0, %v3092_v2 }
 0xe18   :  { %v3096_v6 = vmax.f32 %v3092_v2, %v3094_v5  ;;  %v3099_v62 = vsel %vm1693_vm12, %v3097_v3, 0.0 }
 0xe1a   :  { %v3098_v63 = vsel %vm1693_vm12, %v3096_v6, 0.0 }
 0xe1b   :  { %v3100_v1 = vadd.f32 %v3099_v62, %v3098_v63 }
 0xe1d   :  { %v3101_v7 = vrot.slane %v3100_v1, 4 }
 0xe1f   :  { %v3102_v8 = vadd.f32 %v3101_v7, %v3100_v1 }
 0xe21   :  { %v3103_v9 = vrot.slane %v3102_v8, 2 }
 0xe23   :  { %v3104_v10 = vadd.f32 %v3103_v9, %v3102_v8 }
 0xe25   :  { %v3105_v30 = vrot.slane %v3104_v10, 1 }
 0xe27   :  { %v3106_v11 = vadd.f32 %v3105_v30, %v3104_v10 }
 0xe29   :  { %v3107_v12 = vmul.f32 0.0625, %v3106_v11 }
 0xe2b   :  { %v3108_v13 = vsub.f32 %v3096_v6, %v3107_v12  ;;  %v3109_v15 = vsub.f32 %v3097_v3, %v3107_v12 }
 0xe2d   :  { %v3110_v17 = vmul.f32 %v3108_v13, %v3108_v13  ;;  %v3111_v18 = vmul.f32 %v3109_v15, %v3109_v15 }
 0xe2f   :  { %v3112_v19 = vsel %vm1693_vm12, %v3110_v17, 0.0  ;;  %v3113_v21 = vsel %vm1693_vm12, %v3111_v18, 0.0 }
 0xe30   :  { %v3114_v22 = vadd.f32 %v3113_v21, %v3112_v19  ;;  %v1069_v21 = vld [vmem:[#allocation65] sm:$0x1] }
 0xe32   :  { %v3115_v23 = vrot.slane %v3114_v22, 4 }
 0xe34   :  { %v3116_v24 = vadd.f32 %v3115_v23, %v3114_v22 }
 0xe36   :  { %v3117_v25 = vrot.slane %v3116_v24, 2 }
 0xe38   :  { %v3118_v26 = vadd.f32 %v3117_v25, %v3116_v24  ;;  %v4034_v25 = vld [vmem:[#allocation67] ss:$0 sm:$0xff] }
 0xe3a   :  { %v3119_v27 = vrot.slane %v3118_v26, 1 }
 0xe3c   :  { %v3120_v29 = vadd.f32 %v3119_v27, %v3118_v26 }
 0xe3e   :  { %v3121_v31 = vmul.f32 0.0625, %v3120_v29 }
 0xe40   :  { %v3122_v32 = vadd.f32 1e-05, %v3121_v31 }
 0xe42   :  { %4722 = vrsqrt.f32 %v3122_v32 }
 0xe4f   :  { %v4723_v34 = vpop.eup %4722 }
 0xe50   :  { %v3124_v14 = vmul.f32 %v4723_v34, %v1058_v33  ;;  %v4035_v33 = vld [vmem:[#allocation70] ss:$0 sm:$0xff] }
 0xe52   :  { %v3129_v35 = vrot.slane %v3124_v14, %v6617_v40 }
 0xe54   :  { %v3131_v37 = vmul.f32 %v3129_v35, %v3108_v13  ;;  %v3132_v38 = vmul.f32 %v3129_v35, %v3109_v15 }
 0xe56   :  { %v3139_v39 = vadd.f32 %v4030_v36, %v3131_v37  ;;  %v3140_v41 = vadd.f32 %v4030_v36, %v3132_v38  ;;  %v1089_v37 = vld [vmem:[#allocation74 + $0x38] sm:$0xff]  ;;  %v1088_v38 = vld [vmem:[#allocation74 + $0x30] sm:$0xff] }
 0xe58   :  { %4454 = vmatprep.mubr.msk.f32.mxu1 %vm1693_vm12, %v3139_v39  ;;  %v1087_v39 = vld [vmem:[#allocation74 + $0x28] sm:$0xff] }
 0xe59   :  { %4455 = vmatmul.mubr.msk.f32.vlgmr.msra.gmra.mxu1 %vm1693_vm12, %v3140_v41  ;;  %v1086_v41 = vld [vmem:[#allocation74 + $0x20] sm:$0xff] }
 0xe5a   :  { %4478 = vmatprep.mubr.msk.bf16.mxu1 %vm6111_vm1, %v6109_v0 }
 0xf19   :  { %v4456_v49 = vpop.f32.mrf.mxu1 }
 0xf1a   :  { %v3225_v50 = vadd.f32 %v4456_v49, %v4031_v61 }
 0xf1b   :  { %v3219_v51 = vpop.f32.mrf.mxu1 }
 0xf1c   :  { %v3229_v52 = vmul.f32 0.0, %v3225_v50  ;;  %v3220_v53 = vadd.f32 %v4031_v61, %v3219_v51 }
 0xf1e   :  { %v3231_v54 = vmax.f32 %v3225_v50, %v3229_v52  ;;  %v3228_v55 = vmul.f32 0.0, %v3220_v53 }
 0xf20   :  { %v3230_v4 = vmax.f32 %v3220_v53, %v3228_v55  ;;  %v3233_v56 = vsel %vm1693_vm12, %v3231_v54, 0.0 }
 0xf22   :  { %v3232_v57 = vsel %vm1693_vm12, %v3230_v4, 0.0 }
 0xf23   :  { %v3234_v20 = vadd.f32 %v3233_v56, %v3232_v57 }
 0xf25   :  { %v3235_v58 = vrot.slane %v3234_v20, 4 }
 0xf27   :  { %v3236_v59 = vadd.f32 %v3235_v58, %v3234_v20 }
 0xf29   :  { %v3237_v60 = vrot.slane %v3236_v59, 2 }
 0xf2b   :  { %v3238_v2 = vadd.f32 %v3237_v60, %v3236_v59 }
 0xf2d   :  { %v3239_v3 = vrot.slane %v3238_v2, 1 }
 0xf2f   :  { %v3240_v5 = vadd.f32 %v3239_v3, %v3238_v2 }
 0xf31   :  { %v3241_v6 = vmul.f32 0.0625, %v3240_v5 }
 0xf33   :  { %v3242_v62 = vsub.f32 %v3230_v4, %v3241_v6  ;;  %v3243_v63 = vsub.f32 %v3231_v54, %v3241_v6 }
 0xf35   :  { %v3244_v1 = vmul.f32 %v3242_v62, %v3242_v62  ;;  %v3245_v7 = vmul.f32 %v3243_v63, %v3243_v63 }
 0xf37   :  { %v3246_v8 = vsel %vm1693_vm12, %v3244_v1, 0.0  ;;  %v3247_v9 = vsel %vm1693_vm12, %v3245_v7, 0.0  ;;  %v1080_v1 = vld [vmem:[#allocation71] sm:$0x1] }
 0xf38   :  { %v3248_v10 = vadd.f32 %v3247_v9, %v3246_v8 }
 0xf3a   :  { %v3249_v30 = vrot.slane %v3248_v10, 4 }
 0xf3c   :  { %v3250_v11 = vadd.f32 %v3249_v30, %v3248_v10  ;;  %v4039_v10 = vld [vmem:[#allocation73] ss:$0 sm:$0xff] }
 0xf3e   :  { %v3251_v12 = vrot.slane %v3250_v11, 2 }
 0xf40   :  { %v3252_v13 = vadd.f32 %v3251_v12, %v3250_v11  ;;  %v1100_v12 = vld [vmem:[#allocation80 + $0x38] sm:$0xff] }
 0xf42   :  { %v3253_v15 = vrot.slane %v3252_v13, 1 }
 0xf44   :  { %v3254_v17 = vadd.f32 %v3253_v15, %v3252_v13  ;;  %v1099_v13 = vld [vmem:[#allocation80 + $0x30] sm:$0xff]  ;;  %v1098_v15 = vld [vmem:[#allocation80 + $0x28] sm:$0xff] }
 0xf46   :  { %v3255_v18 = vmul.f32 0.0625, %v3254_v17  ;;  %v1097_v17 = vld [vmem:[#allocation80 + $0x20] sm:$0xff] }
 0xf48   :  { %v3256_v19 = vadd.f32 1e-05, %v3255_v18  ;;  %v1096_v18 = vld [vmem:[#allocation80 + $0x18] sm:$0xff] }
 0xf4a   :  { %4724 = vrsqrt.f32 %v3256_v19  ;;  %v1095_v19 = vld [vmem:[#allocation80 + $0x10] sm:$0xff] }
 0xf4b   :  { %4726 = vrcp.f32 %v3407_v44 }
 0xf57   :  { %v4725_v22 = vpop.eup %4724 }
 0xf58   :  { %v3258_v23 = vmul.f32 %v4725_v22, %v1069_v21  ;;  %v4727_v45 = vpop.eup %4726  ;;  %v1094_v21 = vld [vmem:[#allocation80 + $0x8] sm:$0xff]  ;;  %v1093_v22 = vld [vmem:[#allocation80] sm:$0xff] }
 0xf5a   :  { %v3263_v24 = vrot.slane %v3258_v23, %v6617_v40  ;;  %v4041_v23 = vld [vmem:[#allocation76] ss:$0 sm:$0xff] }
 0xf5c   :  { %v3265_v26 = vmul.f32 %v3263_v24, %v3242_v62  ;;  %v3266_v27 = vmul.f32 %v3263_v24, %v3243_v63 }
 0xf5e   :  { %v3273_v29 = vadd.f32 %v4034_v25, %v3265_v26  ;;  %v3274_v31 = vadd.f32 %v4034_v25, %v3266_v27 }
 0xf60   :  { %4473 = vmatprep.mubr.msk.f32.mxu0 %vm1693_vm12, %v3273_v29 }
 0xf61   :  { %4474 = vmatmul.mubr.msk.f32.vlgmr.msra.gmra.mxu0 %vm1693_vm12, %v3274_v31 }
 0xf62   :  { %4517 = vmatprep.mubr.msk.f32.mxu0 %vm6111_vm1, %v6109_v0  ;;  %4502 = vmatpush3.msra.mxu0 %v1100_v12 }
 0xf63   :  { %4503 = vmatprep.subr.mxu0 %v6109_v0 }
 0xf64   :  { %4504 = vmatpush3.msra.mxu0 %v1099_v13 }
 0xf65   :  { %4505 = vmatprep.subr.mxu0 %v6109_v0 }
 0xf66   :  { %4506 = vmatpush3.msra.mxu0 %v1098_v15 }
 0xf67   :  { %4507 = vmatprep.subr.mxu0 %v6109_v0 }
 0xf68   :  { %4508 = vmatpush3.msra.mxu0 %v1097_v17 }
 0xf69   :  { %4509 = vmatprep.subr.mxu0 %v6109_v0 }
 0xf6a   :  { %4510 = vmatpush3.msra.mxu0 %v1096_v18 }
 0xf6b   :  { %4511 = vmatprep.subr.mxu0 %v6109_v0 }
 0xf6c   :  { %4512 = vmatpush3.msra.mxu0 %v1095_v19 }
 0xf6d   :  { %4513 = vmatprep.subr.mxu0 %v6109_v0 }
 0xf6e   :  { %4514 = vmatpush3.msra.mxu0 %v1094_v21 }
 0xf6f   :  { %4515 = vmatprep.subr.mxu0 %v6109_v0 }
 0xf70   :  { %4516 = vmatpush3.msra.mxu0 %v1093_v22 }
 0xf71   :  { %4539 = vmatprep.subr.mxu0 %v6109_v0 }
0x1021   :  { %v4475_v32 = vpop.f32.mrf.mxu0 }
0x1022   :  { %v3359_v14 = vadd.f32 %v4475_v32, %v4035_v33 }
0x1023   :  { %v3353_v34 = vpop.f32.mrf.mxu0 }
0x1024   :  { %v3354_v35 = vadd.f32 %v4035_v33, %v3353_v34 }
0x1026   :  { %v3362_v36 = vpack.c.bf16 %v3359_v14, %v3354_v35 }
0x1028   :  { %4477 = vmatpush3.bf16.msra.mxu1 %v3362_v36 }
0x1029   :  { %4482 = vmatprep.subr.mxu1 %v6109_v0 }
0x102b   :  { %4479 = vmatmul.mubr.msk.bf16.vlgmr.msra.gmra.mxu1 %vm1256_vm9, %v6596_v28  ;;  %v1085_v28 = vld [vmem:[#allocation74 + $0x18] sm:$0xff] }
0x102c   :  { %4498 = vmatprep.mubr.msk.f32.mxu1 %vm6111_vm1, %v6109_v0  ;;  %4483 = vmatpush3.msra.mxu1 %v1089_v37 }
0x102d   :  { %4484 = vmatprep.subr.mxu1 %v6109_v0 }
0x102e   :  { %4485 = vmatpush3.msra.mxu1 %v1088_v38 }
0x102f   :  { %4486 = vmatprep.subr.mxu1 %v6109_v0 }
0x1030   :  { %4487 = vmatpush3.msra.mxu1 %v1087_v39 }
0x1031   :  { %4488 = vmatprep.subr.mxu1 %v6109_v0 }
0x1032   :  { %4489 = vmatpush3.msra.mxu1 %v1086_v41 }
0x1033   :  { %4490 = vmatprep.subr.mxu1 %v6109_v0 }
0x1034   :  { %4491 = vmatpush3.msra.mxu1 %v1085_v28 }
0x1035   :  { %4492 = vmatprep.subr.mxu1 %v6109_v0 }
0x1036   :  { %4493 = vmatpush3.msra.mxu1 %v1084_v42 }
0x1037   :  { %4494 = vmatprep.subr.mxu1 %v6109_v0 }
0x1038   :  { %4495 = vmatpush3.msra.mxu1 %v1083_v16 }
0x1039   :  { %4496 = vmatprep.subr.mxu1 %v6109_v0 }
0x103a   :  { %4497 = vmatpush3.msra.mxu1 %v1082_v43 }
0x103b   :  { %4520 = vmatprep.subr.mxu1 %v6109_v0 }
0x10eb   :  { %v3397_v46 = vpop.f32.mrf.mxu1 }
0x10ec   :  { %v3410_v47 = vmul.f32 %v4727_v45, %v3397_v46 }
0x10ed   :  { %v4480_v48 = vpop.f32.mrf.mxu1 }
0x10ee   :  { %v3412_v61 = vsel %vm3411_vm13, %v3410_v47, 0.0  ;;  %v1091_v48 = vld [vmem:[#allocation77] sm:$0x1] }
0x10ef   :  { %v3413_v49 = vrot.slane %v3412_v61, 4  ;;  %v3400_v50 = vpop.f32.mrf.mxu1 }
0x10f1   :  { %v3414_v51 = vadd.f32 %v3413_v49, %v3412_v61  ;;  %v4481_v52 = vpop.f32.mrf.mxu1 }
0x10f3   :  { %v3415_v53 = vrot.slane %v3414_v51, 2 }
0x10f5   :  { %v3416_v54 = vadd.f32 %v3415_v53, %v3414_v51  ;;  %v4042_v51 = vld [vmem:[#allocation79] ss:$0 sm:$0xff] }
0x10f7   :  { %v3417_v55 = vrot.slane %v3416_v54, 1 }
0x10f9   :  { %v3418_v4 = vadd.f32 %v3417_v55, %v3416_v54  ;;  %v1111_v54 = vld [vmem:[#allocation86 + $0x38] sm:$0xff]  ;;  %v1110_v55 = vld [vmem:[#allocation86 + $0x30] sm:$0xff] }
0x10fb   :  { %v3420_v56 = vmul.f32 0.5, %v3418_v4  ;;  %v1109_v4 = vld [vmem:[#allocation86 + $0x28] sm:$0xff] }
0x10fd   :  { %v3421_v57 = vsub.f32 %v3410_v47, %v3420_v56  ;;  %v1108_v56 = vld [vmem:[#allocation86 + $0x20] sm:$0xff] }
0x10ff   :  { %v3422_v20 = vmul.f32 %v3421_v57, %v3421_v57 }
0x1101   :  { %v3423_v58 = vsel %vm3411_vm13, %v3422_v20, 0.0  ;;  %v1106_v20 = vld [vmem:[#allocation86 + $0x10] sm:$0xff] }
0x1102   :  { %v3424_v59 = vrot.slane %v3423_v58, 4 }
0x1104   :  { %v3425_v60 = vadd.f32 %v3424_v59, %v3423_v58  ;;  %v1105_v58 = vld [vmem:[#allocation86 + $0x8] sm:$0xff]  ;;  %v1104_v59 = vld [vmem:[#allocation86] sm:$0xff] }
0x1106   :  { %v3426_v2 = vrot.slane %v3425_v60, 2 }
0x1108   :  { %v3427_v3 = vadd.f32 %v3426_v2, %v3425_v60  ;;  %v1120_v60 = vld [vmem:[%s6448_s3 + $0x38] sm:$0xff]  ;;  %v1119_v2 = vld [vmem:[%s6448_s3 + $0x30] sm:$0xff] }
0x110a   :  { %v3428_v5 = vrot.slane %v3427_v3, 1 }
0x110c   :  { %v3429_v6 = vadd.f32 %v3428_v5, %v3427_v3  ;;  %v1118_v3 = vld [vmem:[%s6448_s3 + $0x28] sm:$0xff]  ;;  %v1117_v5 = vld [vmem:[%s6448_s3 + $0x20] sm:$0xff] }
0x110e   :  { %v3430_v62 = vmul.f32 0.5, %v3429_v6  ;;  %v1116_v6 = vld [vmem:[%s6448_s3 + $0x18] sm:$0xff] }
0x1110   :  { %v3431_v63 = vadd.f32 1e-05, %v3430_v62  ;;  %v1115_v62 = vld [vmem:[%s6448_s3 + $0x10] sm:$0xff] }
0x1112   :  { %4728 = vrsqrt.f32 %v3431_v63  ;;  %v4043_v63 = vld [vmem:[#allocation82] ss:$0 sm:$0xff] }
0x111f   :  { %v4729_v7 = vpop.eup %4728 }
0x1120   :  { %v3433_v8 = vmul.f32 %v4729_v7, %v1080_v1 }
0x1122   :  { %v3438_v9 = vrot.slane %v3433_v8, %v6617_v40 }
0x1124   :  { %v3440_v30 = vmul.f32 %v3438_v9, %v3421_v57  ;;  %v1107_v57 = vld [vmem:[#allocation86 + $0x18] sm:$0xff] }
0x1126   :  { %v3447_v11 = vadd.f32 %v4039_v10, %v3440_v30 }
0x1128   :  { %4499 = vmatmul.mubr.msk.f32.vlgmr.msra.gmra.mxu1 %vm1693_vm12, %v3447_v11 }
0x1129   :  { %4536 = vmatprep.mubr.msk.f32.mxu1 %vm6111_vm1, %v6109_v0  ;;  %4521 = vmatpush3.msra.mxu1 %v1111_v54 }
0x112a   :  { %4522 = vmatprep.subr.mxu1 %v6109_v0 }
0x112b   :  { %4523 = vmatpush3.msra.mxu1 %v1110_v55 }
0x112c   :  { %4524 = vmatprep.subr.mxu1 %v6109_v0 }
0x112d   :  { %4525 = vmatpush3.msra.mxu1 %v1109_v4 }
0x112e   :  { %4526 = vmatprep.subr.mxu1 %v6109_v0 }
0x112f   :  { %4527 = vmatpush3.msra.mxu1 %v1108_v56 }
0x1130   :  { %4528 = vmatprep.subr.mxu1 %v6109_v0 }
0x1131   :  { %4529 = vmatpush3.msra.mxu1 %v1107_v57 }
0x1132   :  { %4530 = vmatprep.subr.mxu1 %v6109_v0 }
0x1133   :  { %4531 = vmatpush3.msra.mxu1 %v1106_v20 }
0x1134   :  { %4532 = vmatprep.subr.mxu1 %v6109_v0 }
0x1135   :  { %4533 = vmatpush3.msra.mxu1 %v1105_v58 }
0x1136   :  { %4534 = vmatprep.subr.mxu1 %v6109_v0 }
0x1137   :  { %4535 = vmatpush3.msra.mxu1 %v1104_v59 }
0x11e8   :  { %v3517_v24 = vpop.f32.mrf.mxu1 }
0x11e9   :  { %v3527_v25 = vadd.f32 %v4041_v23, %v3517_v24 }
0x11ea   :  { %v4500_v26 = vpop.f32.mrf.mxu1 }
0x11eb   :  { %v3528_v27 = vmul.f32 0.0, %v3527_v25 }
0x11ed   :  { %v3529_v29 = vmax.f32 %v3527_v25, %v3528_v27 }
0x11ef   :  { %v3530_v31 = vsel %vm3411_vm13, %v3529_v29, 0.0 }
0x11f0   :  { %v3531_v32 = vrot.slane %v3530_v31, 4 }
0x11f2   :  { %v3532_v33 = vadd.f32 %v3531_v32, %v3530_v31 }
0x11f4   :  { %v3533_v34 = vrot.slane %v3532_v33, 2 }
0x11f6   :  { %v3534_v14 = vadd.f32 %v3533_v34, %v3532_v33  ;;  %v1102_v34 = vld [vmem:[#allocation83] sm:$0x1] }
0x11f8   :  { %v3535_v35 = vrot.slane %v3534_v14, 1 }
0x11fa   :  { %v3536_v36 = vadd.f32 %v3535_v35, %v3534_v14 }
0x11fc   :  { %v3537_v37 = vmul.f32 0.5, %v3536_v36 }
0x11fe   :  { %v3538_v38 = vsub.f32 %v3529_v29, %v3537_v37  ;;  %v4045_v37 = vld [vmem:[#allocation85] ss:$0 sm:$0xff] }
0x1200   :  { %v3539_v39 = vmul.f32 %v3538_v38, %v3538_v38 }
0x1202   :  { %v3540_v41 = vsel %vm3411_vm13, %v3539_v39, 0.0 }
0x1203   :  { %v3541_v28 = vrot.slane %v3540_v41, 4 }
0x1205   :  { %v3542_v42 = vadd.f32 %v3541_v28, %v3540_v41  ;;  %v1114_v41 = vld [vmem:[%s6448_s3 + $0x8] sm:$0xff]  ;;  %v1113_v28 = vld [vmem:[%s6448_s3] sm:$0xff]  ;;  %s6114_s3 = smov [#allocation91]  }
0x1206   :  { %s3858_s7 = sshll.u32 %s6114_s3, 4  ;;  %s3859_s7 = int_to_ptr.vmem [resolvable:$true] %s3858_s7 }
0x1207   :  { %v3543_v16 = vrot.slane %v3542_v42, 2  ;;  %s5900_s13 = scalar_lea.vmem %s3859_s7, 32  ;;  %p5905_p11 = scmp.lt.s32.totalorder %s3859_s7, %s3859_s7 }
0x1208   :  { %p5901_p10 = scmp.ne.s32.totalorder %s3859_s7, %s5900_s13  ;;  %p5906_p12 = scmp.lt.s32.totalorder %s5900_s13, %s5900_s13 }
0x1209   :  { %v3544_v43 = vadd.f32 %v3543_v16, %v3542_v42  ;;  %v4046_v42 = vld [vmem:[#allocation88] ss:$0 sm:$0xff] }
0x120a   :  { %p5907_p13 = por %p5906_p12, %p5905_p11 }
0x120b   :  { %v3545_v44 = vrot.slane %v3544_v43, 1 }
0x120c   :  { %p5908_p0 = pnand %p5907_p13, %p5901_p10 }
0x120d   :  { %v3546_v45 = vadd.f32 %v3545_v44, %v3544_v43 }
0x120f   :  { %v3547_v46 = vmul.f32 0.5, %v3546_v45  ;;  %v4048_v45 = vld [vmem:[#allocation89] ss:$0 sm:$0xff] }
0x1211   :  { %v3548_v47 = vadd.f32 1e-05, %v3547_v46 }
0x1213   :  { %4730 = vrsqrt.f32 %v3548_v47 }
0x1220   :  { %v4731_v61 = vpop.eup %4730 }
0x1221   :  { %v3550_v49 = vmul.f32 %v4731_v61, %v1091_v48 }
0x1223   :  { %v3555_v50 = vrot.slane %v3550_v49, %v6617_v40 }
0x1225   :  { %v3557_v52 = vmul.f32 %v3555_v50, %v3538_v38 }
0x1227   :  { %v3564_v53 = vadd.f32 %v4042_v51, %v3557_v52 }
0x1229   :  { %4518 = vmatmul.mubr.msk.f32.vlgmr.msra.gmra.mxu0 %vm1693_vm12, %v3564_v53 }
0x122a   :  { %4555 = vmatprep.mubr.msk.f32.mxu0 %vm6111_vm1, %v6109_v0  ;;  %4540 = vmatpush3.msra.mxu0 %v1120_v60 }
0x122b   :  { %4541 = vmatprep.subr.mxu0 %v6109_v0 }
0x122c   :  { %4542 = vmatpush3.msra.mxu0 %v1119_v2 }
0x122d   :  { %4543 = vmatprep.subr.mxu0 %v6109_v0 }
0x122e   :  { %4544 = vmatpush3.msra.mxu0 %v1118_v3 }
0x122f   :  { %4545 = vmatprep.subr.mxu0 %v6109_v0 }
0x1230   :  { %4546 = vmatpush3.msra.mxu0 %v1117_v5 }
0x1231   :  { %4547 = vmatprep.subr.mxu0 %v6109_v0 }
0x1232   :  { %4548 = vmatpush3.msra.mxu0 %v1116_v6 }
0x1233   :  { %4549 = vmatprep.subr.mxu0 %v6109_v0 }
0x1234   :  { %4550 = vmatpush3.msra.mxu0 %v1115_v62 }
0x1235   :  { %4551 = vmatprep.subr.mxu0 %v6109_v0 }
0x1236   :  { %4552 = vmatpush3.msra.mxu0 %v1114_v41 }
0x1237   :  { %4553 = vmatprep.subr.mxu0 %v6109_v0 }
0x1238   :  { %4554 = vmatpush3.msra.mxu0 %v1113_v28 }
0x12e9   :  { %v3640_v1 = vpop.f32.mrf.mxu0 }
0x12ea   :  { %v3641_v7 = vadd.f32 %v4043_v63, %v3640_v1 }
0x12eb   :  { %v4519_v8 = vpop.f32.mrf.mxu0 }
0x12ec   :  { %v3644_v9 = vmul.f32 0.0, %v3641_v7 }
0x12ee   :  { %v3645_v10 = vmax.f32 %v3641_v7, %v3644_v9 }
0x12f0   :  { %v3646_v30 = vsel %vm3411_vm13, %v3645_v10, 0.0 }
0x12f1   :  { %v3647_v11 = vrot.slane %v3646_v30, 4 }
0x12f3   :  { %v3648_v12 = vadd.f32 %v3647_v11, %v3646_v30 }
0x12f5   :  { %v3649_v13 = vrot.slane %v3648_v12, 2 }
0x12f7   :  { %v3650_v15 = vadd.f32 %v3649_v13, %v3648_v12 }
0x12f9   :  { %v3651_v17 = vrot.slane %v3650_v15, 1 }
0x12fb   :  { %v3652_v18 = vadd.f32 %v3651_v17, %v3650_v15 }
0x12fd   :  { %v3653_v19 = vmul.f32 0.5, %v3652_v18 }
0x12ff   :  { %v3654_v21 = vsub.f32 %v3645_v10, %v3653_v19 }
0x1301   :  { %v3655_v22 = vmul.f32 %v3654_v21, %v3654_v21 }
0x1303   :  { %v3656_v23 = vsel %vm3411_vm13, %v3655_v22, 0.0 }
0x1304   :  { %v3657_v24 = vrot.slane %v3656_v23, 4 }
0x1306   :  { %v3658_v25 = vadd.f32 %v3657_v24, %v3656_v23 }
0x1308   :  { %v3659_v26 = vrot.slane %v3658_v25, 2 }
0x130a   :  { %v3660_v27 = vadd.f32 %v3659_v26, %v3658_v25 }
0x130c   :  { %v3661_v29 = vrot.slane %v3660_v27, 1 }
0x130e   :  { %v3662_v31 = vadd.f32 %v3661_v29, %v3660_v27 }
0x1310   :  { %v3663_v32 = vmul.f32 0.5, %v3662_v31 }
0x1312   :  { %v3664_v33 = vadd.f32 1e-05, %v3663_v32 }
0x1314   :  { %4732 = vrsqrt.f32 %v3664_v33 }
0x1321   :  { %v4733_v14 = vpop.eup %4732 }
0x1322   :  { %v3666_v35 = vmul.f32 %v4733_v14, %v1102_v34 }
0x1324   :  { %v3671_v36 = vrot.slane %v3666_v35, %v6617_v40 }
0x1326   :  { %v3673_v38 = vmul.f32 %v3671_v36, %v3654_v21 }
0x1328   :  { %v3680_v39 = vadd.f32 %v4045_v37, %v3673_v38 }
0x132a   :  { %4537 = vmatmul.mubr.msk.f32.vlgmr.msra.gmra.mxu1 %vm1693_vm12, %v3680_v39 }
0x13ea   :  { %v3756_v16 = vpop.f32.mrf.mxu1 }
0x13eb   :  { %v3757_v43 = vadd.f32 %v4046_v42, %v3756_v16 }
0x13ec   :  { %v4538_v44 = vpop.f32.mrf.mxu1 }
0x13ed   :  { %4556 = vmatmul.mubr.msk.f32.vlgmr.msra.gmra.mxu0 %vm1693_vm12, %v3757_v43 }
0x14ad   :  { %v3835_v46 = vpop.f32.mrf.mxu0 }
0x14ae   :  { %v3836_v40 = vadd.f32 %v4048_v45, %v3835_v46 }
0x14af   :  { %v4557_v47 = vpop.f32.mrf.mxu0 }
0x14b0   :  { %v3840_v48 = vsel %vm3839_vm14, %v3836_v40, -inf }
0x14b1   :  { %3841 = vmax.xlane.f32.xlu1 %v3840_v48 }
0x153a   :  { %v3842_v61 = vpop.xlane.xlu1 %3841 }
0x153b   :  { %v3843_v49 = vsub.f32 %v3836_v40, %v3842_v61 }
0x153d   :  { %v3844_v50 = vmul.f32 1.442695, %v3843_v49 }
0x153f   :  { %4734 = vpow2.f32 %v3844_v50 }
0x154c   :  { %v4735_v0 = vpop.eup %4734 }
0x154d   :  { %v3846_v51 = vsel %vm3839_vm14, %v4735_v0, 0.0 }
0x154e   :  { %3847 = vadd.xlane.f32.xlu0 %v3846_v51 }
0x15d7   :  { %v3848_v52 = vpop.xlane.xlu0 %3847 }
0x15d8   :  { %4736 = vrcp.f32 %v3848_v52 }
0x15e5   :  { %v4737_v53 = vpop.eup %4736 }
0x15e6   :  { %v3850_v54 = vmul.f32 %v4737_v53, %v4735_v0 }
0x15e8   :  { %3851 = vst.msk [vmem:[#allocation91] sm:$0x3] %vm3839_vm14, %v3850_v54 }
0x15e9   :  { %5911 = shalt.err (!%p5908_p0)
}
0x15ea   :  { %3861 = dma.vmem_to_hbm [thread:$0]  %s3859_s7, 32, %s6458_s25, [#allocation4]  }
0x15eb   :  { %5980 = dma.done.wait [#allocation4], 32  }
0x15ec   :  { %5981 = vsyncadd [#allocation4], 4294967264 }
0x15ed   :  { %3865 = vsyncpa [#allocation3], 1 }
0x15ee   :  { %3866 = vsyncpa [#allocation6], 1 }
0x15ef   :  { %3867 = vsyncpa [#allocation9], 1 }
0x15f0   :  { %3868 = vsyncpa [#allocation12], 1 }
0x15f1   :  { %3869 = vsyncpa [#allocation15], 1 }
0x15f2   :  { %3870 = vsyncpa [#allocation18], 1 }
0x15f3   :  { %3871 = vsyncpa [#allocation21], 1 }
0x15f4   :  { %3872 = vsyncpa [#allocation24], 1 }
0x15f5   :  { %3873 = vsyncpa [#allocation27], 1 }
0x15f6   :  { %3874 = vsyncpa [#allocation30], 1 }
0x15f7   :  { %3875 = vsyncpa [#allocation33], 1 }
0x15f8   :  { %3876 = vsyncpa [#allocation36], 1 }
0x15f9   :  { %3877 = vsyncpa [#allocation39], 1 }
0x15fa   :  { %3878 = vsyncpa [#allocation42], 1 }
0x15fb   :  { %3879 = vsyncpa [#allocation45], 1 }
0x15fc   :  { %3880 = vsyncpa [#allocation48], 1 }
0x15fd   :  { %3881 = vsyncpa [#allocation51], 1 }
0x15fe   :  { %3882 = vsyncpa [#allocation54], 1 }
0x15ff   :  { %3883 = vsyncpa [#allocation57], 1 }
0x1600   :  { %3884 = vsyncpa [#allocation60], 1 }
0x1601   :  { %3885 = vsyncpa [#allocation63], 1 }
0x1602   :  { %3886 = vsyncpa [#allocation66], 1 }
0x1603   :  { %3887 = vsyncpa [#allocation69], 1 }
0x1604   :  { %3888 = vsyncpa [#allocation72], 1 }
0x1605   :  { %3889 = vsyncpa [#allocation75], 1 }
0x1606   :  { %3890 = vsyncpa [#allocation78], 1 }
0x1607   :  { %3891 = vsyncpa [#allocation81], 1 }
0x1608   :  { %3892 = vsyncpa [#allocation84], 1 }
0x1609   :  { %3893 = vsyncpa [#allocation87], 1 }
0x160a   :  { %3894 = vsyncpa [#allocation90], 1 }
0x160b   :  { %3895 = vsyncpa [#allocation4], 1 }

</bundles_post_ra>
